<compile_context>
chip_gen: v6e
topology: v6e:2x2x1
jax: 0.10.0
libtpu: 0.0.40
codegen_flags: <defaults>
</compile_context>

<pallas_src>
import functools

import jax
import jax.numpy as jnp
from jax import lax
from jax.experimental import pallas as pl
from jax.experimental.pallas import tpu as pltpu

# ---- small synthetic GPT-2 config (consistent with TOPICModel.__init__ shapes) ----
N_LAYER = 2
N_HEAD = 2
N_EMBD = 32
HEAD_DIM = N_EMBD // N_HEAD
VOCAB = 64
N_POS = 32

# per-layer weight arrays, stacked along a leading layer axis (kernel arg order)
_WKEYS = ("ln1_g", "ln1_b", "c_attn_w", "c_attn_b", "c_proj_w", "c_proj_b",
          "ln2_g", "ln2_b", "fc_w", "fc_b", "proj_w", "proj_b")


def _full_spec(shape):
    """Whole-array VMEM block (same block every grid step)."""
    nd = len(shape)
    return pl.BlockSpec(shape, lambda i, _nd=nd: (0,) * _nd)


# --------------------------- in-kernel building blocks ---------------------------

def _layer_norm(x, g, b, eps=1e-5):
    mu = jnp.mean(x, axis=-1, keepdims=True)
    var = jnp.mean((x - mu) ** 2, axis=-1, keepdims=True)
    return (x - mu) * lax.rsqrt(var + eps) * g + b


def _gpt2_layer(h, causal, ln1g, ln1b, wqkv, bqkv, wpro, bpro, ln2g, ln2b,
                wfc, bfc, wmp, bmp, kp, vp, t, sp):
    """One GPT-2 block for a single batch element.

    h: (t, E).  kp/vp: (H, sp, Dh) past keys/values or None.
    Returns (new_h, k_present (t,E), v_present (t,E)).
    """
    x = _layer_norm(h, ln1g, ln1b)
    qkv = jnp.dot(x, wqkv, preferred_element_type=jnp.float32) + bqkv    # (t, 3E)
    k_present = qkv[:, N_EMBD:2 * N_EMBD]
    v_present = qkv[:, 2 * N_EMBD:]
    scale = 1.0 / float(HEAD_DIM) ** 0.5                                 # fold into q

    attn = jnp.zeros((t, N_EMBD), jnp.float32)
    for hh in range(N_HEAD):                                             # static H=2 loop
        lo = hh * HEAD_DIM
        hi = lo + HEAD_DIM
        qh = qkv[:, lo:hi] * scale                                       # (t, Dh)
        kh = qkv[:, N_EMBD + lo:N_EMBD + hi]                             # (t, Dh)
        vh = qkv[:, 2 * N_EMBD + lo:2 * N_EMBD + hi]                     # (t, Dh)

        s_new = lax.dot_general(qh, kh, (((1,), (1,)), ((), ())),
                                preferred_element_type=jnp.float32)      # (t, t)
        s_new = jnp.where(causal, s_new, jnp.float32(-1e30))
        if sp > 0:
            # all past positions are visible to every query -> no mask needed
            s_p = lax.dot_general(qh, kp[hh], (((1,), (1,)), ((), ())),
                                  preferred_element_type=jnp.float32)    # (t, sp)
            m = jnp.maximum(jnp.max(s_new, axis=-1, keepdims=True),
                            jnp.max(s_p, axis=-1, keepdims=True))
            e_new = jnp.exp(s_new - m)
            e_p = jnp.exp(s_p - m)
            denom = (jnp.sum(e_new, axis=-1, keepdims=True)
                     + jnp.sum(e_p, axis=-1, keepdims=True))
            ctx = (jnp.dot(e_new, vh, preferred_element_type=jnp.float32)
                   + jnp.dot(e_p, vp[hh], preferred_element_type=jnp.float32))
        else:
            m = jnp.max(s_new, axis=-1, keepdims=True)
            e_new = jnp.exp(s_new - m)
            denom = jnp.sum(e_new, axis=-1, keepdims=True)
            ctx = jnp.dot(e_new, vh, preferred_element_type=jnp.float32)
        ctx = ctx * pl.reciprocal(denom, approx=True)                    # (t, Dh)
        # merge-heads + out-projection folded: sum_h ctx_h @ wpro[rows of head h]
        attn = attn + jnp.dot(ctx, wpro[lo:hi, :],
                              preferred_element_type=jnp.float32)

    h = h + attn + bpro
    x2 = _layer_norm(h, ln2g, ln2b)
    mlp = jnp.dot(x2, wfc, preferred_element_type=jnp.float32) + bfc
    mlp = jax.nn.gelu(mlp)                                               # GPT-2 tanh gelu
    mlp = jnp.dot(mlp, wmp, preferred_element_type=jnp.float32) + bmp
    return h + mlp, k_present, v_present


def _causal_mask(t):
    qi = lax.broadcasted_iota(jnp.int32, (t, t), 0)
    kj = lax.broadcasted_iota(jnp.int32, (t, t), 1)
    return kj <= qi


# ----------------------------- fused Pallas kernels -----------------------------

def _gpt2_present_kernel(h_ref,
                         ln1g, ln1b, wqkv, bqkv, wpro, bpro,
                         ln2g, ln2b, wfc, bfc, wmp, bmp,
                         ks_ref, vs_ref, *, t):
    """Whole GPT-2 stack (no past), one batch element per grid step.

    Outputs only the per-layer K/V presents (the logits of these two lm_model
    calls are unused by TOPICModel)."""
    h = h_ref[0]                                                         # (t, E)
    causal = _causal_mask(t)
    for l in range(N_LAYER):
        h, k2, v2 = _gpt2_layer(h, causal,
                                ln1g[l], ln1b[l], wqkv[l], bqkv[l],
                                wpro[l], bpro[l], ln2g[l], ln2b[l],
                                wfc[l], bfc[l], wmp[l], bmp[l],
                                None, None, t, 0)
        ks_ref[l, 0] = k2
        vs_ref[l, 0] = v2


def _gpt2_loss_kernel(h_ref, kp_ref, vp_ref, tgt_ref, msk_ref,
                      ln1g, ln1b, wqkv, bqkv, wpro, bpro,
                      ln2g, ln2b, wfc, bfc, wmp, bmp,
                      lnfg, lnfb, wte_ref,
                      num_ref, den_ref, *, t, sp):
    """Whole GPT-2 stack WITH past + final LN + lm head + LogSoftmax +
    MaskedNLLCriterion partials, one batch element per grid step."""
    h = h_ref[0]                                                         # (t, E)
    causal = _causal_mask(t)
    for l in range(N_LAYER):
        h, _, _ = _gpt2_layer(h, causal,
                              ln1g[l], ln1b[l], wqkv[l], bqkv[l],
                              wpro[l], bpro[l], ln2g[l], ln2b[l],
                              wfc[l], bfc[l], wmp[l], bmp[l],
                              kp_ref[l, 0], vp_ref[l, 0], t, sp)
    hf = _layer_norm(h, lnfg[...], lnfb[...])
    # lm head: contract on E against the *untransposed* wte (no zero bias)
    logits = lax.dot_general(hf, wte_ref[...], (((1,), (1,)), ((), ())),
                             preferred_element_type=jnp.float32)         # (t, V)
    mx = jnp.max(logits, axis=-1, keepdims=True)
    lse = jnp.log(jnp.sum(jnp.exp(logits - mx), axis=-1, keepdims=True)) + mx
    tgt = tgt_ref[0]                                                     # (t, 1) int32
    vid = lax.broadcasted_iota(jnp.int32, (t, VOCAB), 1)
    sel = jnp.sum(jnp.where(vid == tgt, logits, 0.0), axis=-1, keepdims=True)
    logprob = sel - lse                                                  # (t, 1)
    m = msk_ref[0].astype(jnp.float32)                                   # (t, 1)
    num_ref[0] = jnp.sum(logprob * m, axis=0, keepdims=True)             # (1, 1)
    den_ref[0] = jnp.sum(m, axis=0, keepdims=True)                       # (1, 1)


def _transfer_mlp_kernel(x_ref, w1_ref, b1_ref, w2_ref, b2_ref, o_ref):
    """Fused Linear -> ReLU -> Linear; one past-transfer weight group per grid step."""
    x = x_ref[0]                                                         # (Mmax, E)
    hdn = jnp.dot(x, w1_ref[0], preferred_element_type=jnp.float32) + b1_ref[0]
    hdn = jnp.maximum(hdn, 0.0)
    o_ref[0] = jnp.dot(hdn, w2_ref[0], preferred_element_type=jnp.float32) + b2_ref[0]


# --------------------------------- wrappers ---------------------------------

def gpt2_presents(g, input_ids, position_ids):
    """lm_model(ids) with past=None; returns per-layer presents (2,B,H,t,Dh)."""
    b, t = input_ids.shape
    h0 = g["wte"][input_ids] + g["wpe"][position_ids]                    # (B, t, E)
    weights = [g[k] for k in _WKEYS]
    ks, vs = pl.pallas_call(
        functools.partial(_gpt2_present_kernel, t=t),
        grid=(b,),
        in_specs=[pl.BlockSpec((1, t, N_EMBD), lambda i: (i, 0, 0))]
                 + [_full_spec(w.shape) for w in weights],
        out_specs=[pl.BlockSpec((N_LAYER, 1, t, N_EMBD),
                                lambda i: (0, i, 0, 0))] * 2,
        out_shape=[jax.ShapeDtypeStruct((N_LAYER, b, t, N_EMBD), jnp.float32)] * 2,
        compiler_params=pltpu.CompilerParams(dimension_semantics=("parallel",)),
    )(h0, *weights)
    presents = []
    for l in range(N_LAYER):
        k4 = ks[l].reshape(b, t, N_HEAD, HEAD_DIM).transpose(0, 2, 1, 3)
        v4 = vs[l].reshape(b, t, N_HEAD, HEAD_DIM).transpose(0, 2, 1, 3)
        presents.append(jnp.stack([k4, v4], axis=0))                     # (2,B,H,t,Dh)
    return tuple(presents)


def gpt2_masked_nll(g, input_ids, position_ids, past, tgt, mask):
    """lm_model(ids, past) fused with LogSoftmax + MaskedNLLCriterion."""
    b, t = input_ids.shape
    sp = past[0].shape[3]
    h0 = g["wte"][input_ids] + g["wpe"][position_ids]                    # (B, t, E)
    kp = jnp.stack([p[0] for p in past], axis=0)                         # (L,B,H,sp,Dh)
    vp = jnp.stack([p[1] for p in past], axis=0)
    tgt3 = tgt.astype(jnp.int32)[..., None]                              # (B, t, 1)
    msk3 = mask.astype(jnp.int32)[..., None]                             # (B, t, 1)
    weights = [g[k] for k in _WKEYS] + [g["lnf_g"], g["lnf_b"], g["wte"]]
    num, den = pl.pallas_call(
        functools.partial(_gpt2_loss_kernel, t=t, sp=sp),
        grid=(b,),
        in_specs=[pl.BlockSpec((1, t, N_EMBD), lambda i: (i, 0, 0)),
                  pl.BlockSpec((N_LAYER, 1, N_HEAD, sp, HEAD_DIM),
                               lambda i: (0, i, 0, 0, 0)),
                  pl.BlockSpec((N_LAYER, 1, N_HEAD, sp, HEAD_DIM),
                               lambda i: (0, i, 0, 0, 0)),
                  pl.BlockSpec((1, t, 1), lambda i: (i, 0, 0)),
                  pl.BlockSpec((1, t, 1), lambda i: (i, 0, 0))]
                 + [_full_spec(w.shape) for w in weights],
        out_specs=[pl.BlockSpec((1, 1, 1), lambda i: (i, 0, 0))] * 2,
        out_shape=[jax.ShapeDtypeStruct((b, 1, 1), jnp.float32)] * 2,
        compiler_params=pltpu.CompilerParams(dimension_semantics=("parallel",)),
    )(h0, kp, vp, tgt3, msk3, *weights)
    return -(jnp.sum(num) / jnp.sum(den))


def transfer_all_pasts(tr, label_past, domain_past):
    """All 2*L past-transfer MLPs (label layers then domain layers) in ONE call."""
    b = label_past[0].shape[1]
    s_l = label_past[0].shape[3]
    s_d = domain_past[0].shape[3]
    m_l = 2 * b * s_l
    m_d = 2 * b * s_d
    m_max = max(m_l, m_d)
    xs = []
    # exact TOPICModel.transfer_past raw reshape (mixes H and S); dropout = eval identity
    for p in label_past:
        xs.append(jnp.pad(p.reshape(m_l, N_EMBD), ((0, m_max - m_l), (0, 0))))
    for p in domain_past:
        xs.append(jnp.pad(p.reshape(m_d, N_EMBD), ((0, m_max - m_d), (0, 0))))
    x_all = jnp.stack(xs, axis=0)                                        # (2L, Mmax, E)
    grp = 2 * N_LAYER
    y = pl.pallas_call(
        _transfer_mlp_kernel,
        grid=(grp,),
        in_specs=[pl.BlockSpec((1, m_max, N_EMBD), lambda i: (i, 0, 0)),
                  pl.BlockSpec((1, N_EMBD, N_EMBD), lambda i: (i, 0, 0)),
                  pl.BlockSpec((1, 1, N_EMBD), lambda i: (i, 0, 0)),
                  pl.BlockSpec((1, N_EMBD, N_EMBD), lambda i: (i, 0, 0)),
                  pl.BlockSpec((1, 1, N_EMBD), lambda i: (i, 0, 0))],
        out_specs=pl.BlockSpec((1, m_max, N_EMBD), lambda i: (i, 0, 0)),
        out_shape=jax.ShapeDtypeStruct((grp, m_max, N_EMBD), jnp.float32),
        compiler_params=pltpu.CompilerParams(dimension_semantics=("parallel",)),
    )(x_all, tr["w1"], tr["b1"], tr["w2"], tr["b2"])
    label_out = tuple(y[l, :m_l].reshape(2, b, N_HEAD, s_l, HEAD_DIM)
                      for l in range(N_LAYER))
    domain_out = tuple(y[N_LAYER + l, :m_d].reshape(2, b, N_HEAD, s_d, HEAD_DIM)
                       for l in range(N_LAYER))
    return label_out, domain_out


def topic_model_forward(params, input_ids, masks, domain_label_ids):
    g = params["gpt2"]
    tr = params["transfer"]
    domain_ids = domain_label_ids[:, 0:1]                                # (B, 1)
    label_ids = domain_label_ids[:, 1:]                                  # (B, L)

    pos_d = jnp.arange(domain_ids.shape[1])[None, :]
    pos_l = jnp.arange(label_ids.shape[1])[None, :]
    domain_past = gpt2_presents(g, domain_ids, pos_d)                    # logits unused
    label_past = gpt2_presents(g, label_ids, pos_l)

    label_tp, domain_tp = transfer_all_pasts(tr, label_past, domain_past)
    transfered_past = tuple(jnp.concatenate([d, l], axis=-2)
                            for d, l in zip(domain_tp, label_tp))

    t_in = input_ids.shape[1] - 1
    position_ids = jnp.arange(0, t_in)[None, :]                          # as in PyTorch
    loss = gpt2_masked_nll(g, input_ids[:, :-1], position_ids, transfered_past,
                           input_ids[:, 1:], masks[:, 1:])
    # kl_scale = 0 and bayes = False -> KL / bayes branches skipped (module defaults)
    print_ce_loss = loss
    print_kl_loss = jnp.float32(0.0)
    return loss, print_ce_loss, print_kl_loss


# ---------------------------- parameter init --------------------------------

def init_params(key):
    keys = jax.random.split(key, 32)
    it = iter(keys)

    def nrm(shape, scale=0.02):
        return (scale * jax.random.normal(next(it), shape)).astype(jnp.float32)

    E, L = N_EMBD, N_LAYER
    gpt2 = {
        "wte": nrm((VOCAB, E)),
        "wpe": nrm((N_POS, E)),
        "lnf_g": jnp.ones((1, E), jnp.float32),
        "lnf_b": jnp.zeros((1, E), jnp.float32),
        # per-layer weights pre-stacked along a leading layer axis (no per-forward stacking)
        "ln1_g": jnp.ones((L, 1, E), jnp.float32),
        "ln1_b": jnp.zeros((L, 1, E), jnp.float32),
        "c_attn_w": nrm((L, E, 3 * E)),
        "c_attn_b": jnp.zeros((L, 1, 3 * E), jnp.float32),
        "c_proj_w": nrm((L, E, E)),
        "c_proj_b": jnp.zeros((L, 1, E), jnp.float32),
        "ln2_g": jnp.ones((L, 1, E), jnp.float32),
        "ln2_b": jnp.zeros((L, 1, E), jnp.float32),
        "fc_w": nrm((L, E, 4 * E)),
        "fc_b": jnp.zeros((L, 1, 4 * E), jnp.float32),
        "proj_w": nrm((L, 4 * E, E)),
        "proj_b": jnp.zeros((L, 1, E), jnp.float32),
    }
    # past-transfer MLPs, groups ordered [label_0..label_{L-1}, domain_0..domain_{L-1}]
    transfer = {
        "w1": nrm((2 * L, E, E)),
        "b1": jnp.zeros((2 * L, 1, E), jnp.float32),
        "w2": nrm((2 * L, E, E)),
        "b2": jnp.zeros((2 * L, 1, E), jnp.float32),
    }
    return {"gpt2": gpt2, "transfer": transfer}


if __name__ == "__main__":
    key = jax.random.PRNGKey(0)
    pkey, ikey, dkey = jax.random.split(key, 3)
    params = init_params(pkey)

    B, T, L = 2, 8, 2                                   # batch, seq, label length
    input_ids = jax.random.randint(ikey, (B, T), 0, VOCAB, dtype=jnp.int32)
    domain_label_ids = jax.random.randint(dkey, (B, 1 + L), 0, VOCAB, dtype=jnp.int32)
    masks = jnp.ones((B, T), dtype=jnp.int32)

    fwd = jax.jit(topic_model_forward)
    loss, ce, kl = fwd(params, input_ids, masks, domain_label_ids)
    jax.block_until_ready(loss)
    print("KERNEL_OK")
</pallas_src>

<mosaic_0001>
module attributes {stable_mosaic.version = 11 : i64} {
  func.func @_gpt2_present_kernel(%arg0: i32, %arg1: memref<1x2x32xf32, #tpu.memory_space<vmem>>, %arg2: memref<2x1x32xf32, #tpu.memory_space<vmem>>, %arg3: memref<2x1x32xf32, #tpu.memory_space<vmem>>, %arg4: memref<2x32x96xf32, #tpu.memory_space<vmem>>, %arg5: memref<2x1x96xf32, #tpu.memory_space<vmem>>, %arg6: memref<2x32x32xf32, #tpu.memory_space<vmem>>, %arg7: memref<2x1x32xf32, #tpu.memory_space<vmem>>, %arg8: memref<2x1x32xf32, #tpu.memory_space<vmem>>, %arg9: memref<2x1x32xf32, #tpu.memory_space<vmem>>, %arg10: memref<2x32x128xf32, #tpu.memory_space<vmem>>, %arg11: memref<2x1x128xf32, #tpu.memory_space<vmem>>, %arg12: memref<2x128x32xf32, #tpu.memory_space<vmem>>, %arg13: memref<2x1x32xf32, #tpu.memory_space<vmem>>, %arg14: memref<2x1x2x32xf32, #tpu.memory_space<vmem>>, %arg15: memref<2x1x2x32xf32, #tpu.memory_space<vmem>>) attributes {dimension_semantics = [#tpu.dimension_semantics<parallel>], iteration_bounds = array<i64: 2>, scalar_prefetch = 0 : i64, scratch_operands = 0 : i64, tpu.core_type = #tpu.core_type<tc>, window_params = [{transform_indices = @transform_0, window_bounds = array<i64: 1, 2, 32>}, {pipeline_mode = #tpu.pipeline_mode<synchronous>, transform_indices = @transform_1, window_bounds = array<i64: 2, 1, 32>}, {pipeline_mode = #tpu.pipeline_mode<synchronous>, transform_indices = @transform_2, window_bounds = array<i64: 2, 1, 32>}, {pipeline_mode = #tpu.pipeline_mode<synchronous>, transform_indices = @transform_3, window_bounds = array<i64: 2, 32, 96>}, {pipeline_mode = #tpu.pipeline_mode<synchronous>, transform_indices = @transform_4, window_bounds = array<i64: 2, 1, 96>}, {pipeline_mode = #tpu.pipeline_mode<synchronous>, transform_indices = @transform_5, window_bounds = array<i64: 2, 32, 32>}, {pipeline_mode = #tpu.pipeline_mode<synchronous>, transform_indices = @transform_6, window_bounds = array<i64: 2, 1, 32>}, {pipeline_mode = #tpu.pipeline_mode<synchronous>, transform_indices = @transform_7, window_bounds = array<i64: 2, 1, 32>}, {pipeline_mode = #tpu.pipeline_mode<synchronous>, transform_indices = @transform_8, window_bounds = array<i64: 2, 1, 32>}, {pipeline_mode = #tpu.pipeline_mode<synchronous>, transform_indices = @transform_9, window_bounds = array<i64: 2, 32, 128>}, {pipeline_mode = #tpu.pipeline_mode<synchronous>, transform_indices = @transform_10, window_bounds = array<i64: 2, 1, 128>}, {pipeline_mode = #tpu.pipeline_mode<synchronous>, transform_indices = @transform_11, window_bounds = array<i64: 2, 128, 32>}, {pipeline_mode = #tpu.pipeline_mode<synchronous>, transform_indices = @transform_12, window_bounds = array<i64: 2, 1, 32>}, {transform_indices = @transform_13, window_bounds = array<i64: 2, 1, 2, 32>}, {transform_indices = @transform_14, window_bounds = array<i64: 2, 1, 2, 32>}]} {
    %c0 = arith.constant 0 : index
    %c0_0 = arith.constant 0 : index
    %c0_1 = arith.constant 0 : index
    %0 = vector.load %arg1[%c0, %c0_0, %c0_1] : memref<1x2x32xf32, #tpu.memory_space<vmem>>, vector<1x2x32xf32>
    %1 = vector.shape_cast %0 : vector<1x2x32xf32> to vector<2x32xf32>
    %2 = tpu.iota {dimensions = array<i32: 0>} : vector<2x2xi32>
    %3 = tpu.iota {dimensions = array<i32: 1>} : vector<2x2xi32>
    %4 = arith.cmpi sle, %3, %2 : vector<2x2xi32>
    %c0_2 = arith.constant 0 : index
    %c0_3 = arith.constant 0 : index
    %c0_4 = arith.constant 0 : index
    %5 = vector.load %arg2[%c0_2, %c0_3, %c0_4] : memref<2x1x32xf32, #tpu.memory_space<vmem>>, vector<1x1x32xf32>
    %6 = vector.shape_cast %5 : vector<1x1x32xf32> to vector<1x32xf32>
    %c0_5 = arith.constant 0 : index
    %c0_6 = arith.constant 0 : index
    %c0_7 = arith.constant 0 : index
    %7 = vector.load %arg3[%c0_5, %c0_6, %c0_7] : memref<2x1x32xf32, #tpu.memory_space<vmem>>, vector<1x1x32xf32>
    %8 = vector.shape_cast %7 : vector<1x1x32xf32> to vector<1x32xf32>
    %c0_8 = arith.constant 0 : index
    %c0_9 = arith.constant 0 : index
    %c0_10 = arith.constant 0 : index
    %9 = vector.load %arg4[%c0_8, %c0_9, %c0_10] : memref<2x32x96xf32, #tpu.memory_space<vmem>>, vector<1x32x96xf32>
    %10 = vector.shape_cast %9 : vector<1x32x96xf32> to vector<32x96xf32>
    %c0_11 = arith.constant 0 : index
    %c0_12 = arith.constant 0 : index
    %c0_13 = arith.constant 0 : index
    %11 = vector.load %arg5[%c0_11, %c0_12, %c0_13] : memref<2x1x96xf32, #tpu.memory_space<vmem>>, vector<1x1x96xf32>
    %12 = vector.shape_cast %11 : vector<1x1x96xf32> to vector<1x96xf32>
    %c0_14 = arith.constant 0 : index
    %c0_15 = arith.constant 0 : index
    %c0_16 = arith.constant 0 : index
    %13 = vector.load %arg6[%c0_14, %c0_15, %c0_16] : memref<2x32x32xf32, #tpu.memory_space<vmem>>, vector<1x32x32xf32>
    %14 = vector.shape_cast %13 : vector<1x32x32xf32> to vector<32x32xf32>
    %c0_17 = arith.constant 0 : index
    %c0_18 = arith.constant 0 : index
    %c0_19 = arith.constant 0 : index
    %15 = vector.load %arg7[%c0_17, %c0_18, %c0_19] : memref<2x1x32xf32, #tpu.memory_space<vmem>>, vector<1x1x32xf32>
    %16 = vector.shape_cast %15 : vector<1x1x32xf32> to vector<1x32xf32>
    %c0_20 = arith.constant 0 : index
    %c0_21 = arith.constant 0 : index
    %c0_22 = arith.constant 0 : index
    %17 = vector.load %arg8[%c0_20, %c0_21, %c0_22] : memref<2x1x32xf32, #tpu.memory_space<vmem>>, vector<1x1x32xf32>
    %18 = vector.shape_cast %17 : vector<1x1x32xf32> to vector<1x32xf32>
    %c0_23 = arith.constant 0 : index
    %c0_24 = arith.constant 0 : index
    %c0_25 = arith.constant 0 : index
    %19 = vector.load %arg9[%c0_23, %c0_24, %c0_25] : memref<2x1x32xf32, #tpu.memory_space<vmem>>, vector<1x1x32xf32>
    %20 = vector.shape_cast %19 : vector<1x1x32xf32> to vector<1x32xf32>
    %c0_26 = arith.constant 0 : index
    %c0_27 = arith.constant 0 : index
    %c0_28 = arith.constant 0 : index
    %21 = vector.load %arg10[%c0_26, %c0_27, %c0_28] : memref<2x32x128xf32, #tpu.memory_space<vmem>>, vector<1x32x128xf32>
    %22 = vector.shape_cast %21 : vector<1x32x128xf32> to vector<32x128xf32>
    %c0_29 = arith.constant 0 : index
    %c0_30 = arith.constant 0 : index
    %c0_31 = arith.constant 0 : index
    %23 = vector.load %arg11[%c0_29, %c0_30, %c0_31] : memref<2x1x128xf32, #tpu.memory_space<vmem>>, vector<1x1x128xf32>
    %24 = vector.shape_cast %23 : vector<1x1x128xf32> to vector<1x128xf32>
    %c0_32 = arith.constant 0 : index
    %c0_33 = arith.constant 0 : index
    %c0_34 = arith.constant 0 : index
    %25 = vector.load %arg12[%c0_32, %c0_33, %c0_34] : memref<2x128x32xf32, #tpu.memory_space<vmem>>, vector<1x128x32xf32>
    %26 = vector.shape_cast %25 : vector<1x128x32xf32> to vector<128x32xf32>
    %c0_35 = arith.constant 0 : index
    %c0_36 = arith.constant 0 : index
    %c0_37 = arith.constant 0 : index
    %27 = vector.load %arg13[%c0_35, %c0_36, %c0_37] : memref<2x1x32xf32, #tpu.memory_space<vmem>>, vector<1x1x32xf32>
    %28 = vector.shape_cast %27 : vector<1x1x32xf32> to vector<1x32xf32>
    %cst = arith.constant dense<0.000000e+00> : vector<2xf32>
    %29 = vector.multi_reduction <add>, %1, %cst [1] : vector<2x32xf32> to vector<2xf32>
    %30 = vector.shape_cast %29 : vector<2xf32> to vector<2x1xf32>
    %cst_38 = arith.constant 3.200000e+01 : f32
    %31 = vector.broadcast %cst_38 : f32 to vector<2x1xf32>
    %32 = arith.divf %30, %31 : vector<2x1xf32>
    %33 = vector.broadcast %32 : vector<2x1xf32> to vector<2x32xf32>
    %34 = arith.subf %1, %33 : vector<2x32xf32>
    %35 = arith.mulf %34, %34 : vector<2x32xf32>
    %cst_39 = arith.constant dense<0.000000e+00> : vector<2xf32>
    %36 = vector.multi_reduction <add>, %35, %cst_39 [1] : vector<2x32xf32> to vector<2xf32>
    %37 = vector.shape_cast %36 : vector<2xf32> to vector<2x1xf32>
    %cst_40 = arith.constant 3.200000e+01 : f32
    %38 = vector.broadcast %cst_40 : f32 to vector<2x1xf32>
    %39 = arith.divf %37, %38 : vector<2x1xf32>
    %40 = vector.broadcast %32 : vector<2x1xf32> to vector<2x32xf32>
    %41 = arith.subf %1, %40 : vector<2x32xf32>
    %cst_41 = arith.constant 9.99999974E-6 : f32
    %42 = vector.broadcast %cst_41 : f32 to vector<2x1xf32>
    %43 = arith.addf %39, %42 : vector<2x1xf32>
    %44 = math.rsqrt %43 : vector<2x1xf32>
    %45 = vector.broadcast %44 : vector<2x1xf32> to vector<2x32xf32>
    %46 = arith.mulf %41, %45 : vector<2x32xf32>
    %47 = vector.broadcast %6 : vector<1x32xf32> to vector<2x32xf32>
    %48 = arith.mulf %46, %47 : vector<2x32xf32>
    %49 = vector.broadcast %8 : vector<1x32xf32> to vector<2x32xf32>
    %50 = arith.addf %48, %49 : vector<2x32xf32>
    %cst_42 = arith.constant dense<0.000000e+00> : vector<2x96xf32>
    %51 = tpu.matmul %50, %10, %cst_42 {dimension_numbers = #tpu.dot_dimension_numbers<[1], [0], [0], [1], [0, 0, 1, 1], [], []>} : vector<2x32xf32>, vector<32x96xf32>, vector<2x96xf32> -> vector<2x96xf32>
    %52 = vector.broadcast %12 : vector<1x96xf32> to vector<2x96xf32>
    %53 = arith.addf %51, %52 : vector<2x96xf32>
    %54 = vector.extract_strided_slice %53 {offsets = [0, 32], sizes = [2, 32], strides = [1, 1]} : vector<2x96xf32> to vector<2x32xf32>
    %55 = vector.extract_strided_slice %53 {offsets = [0, 64], sizes = [2, 32], strides = [1, 1]} : vector<2x96xf32> to vector<2x32xf32>
    %cst_43 = arith.constant 0.000000e+00 : f32
    %56 = vector.broadcast %cst_43 : f32 to vector<2x32xf32>
    %57 = vector.extract_strided_slice %53 {offsets = [0, 0], sizes = [2, 16], strides = [1, 1]} : vector<2x96xf32> to vector<2x16xf32>
    %cst_44 = arith.constant 2.500000e-01 : f32
    %58 = vector.broadcast %cst_44 : f32 to vector<2x16xf32>
    %59 = arith.mulf %57, %58 : vector<2x16xf32>
    %60 = vector.extract_strided_slice %53 {offsets = [0, 32], sizes = [2, 16], strides = [1, 1]} : vector<2x96xf32> to vector<2x16xf32>
    %61 = vector.extract_strided_slice %53 {offsets = [0, 64], sizes = [2, 16], strides = [1, 1]} : vector<2x96xf32> to vector<2x16xf32>
    %cst_45 = arith.constant dense<0.000000e+00> : vector<2x2xf32>
    %62 = tpu.matmul %59, %60, %cst_45 {dimension_numbers = #tpu.dot_dimension_numbers<[1], [1], [0], [0], [0, 0, 1, 0], [], []>} : vector<2x16xf32>, vector<2x16xf32>, vector<2x2xf32> -> vector<2x2xf32>
    %cst_46 = arith.constant -1.000000e+30 : f32
    %63 = vector.broadcast %cst_46 : f32 to vector<2x2xf32>
    %64 = arith.select %4, %62, %63 : vector<2x2xi1>, vector<2x2xf32>
    %cst_47 = arith.constant dense<0xFF800000> : vector<2xf32>
    %65 = vector.multi_reduction <maximumf>, %64, %cst_47 [1] : vector<2x2xf32> to vector<2xf32>
    %66 = vector.shape_cast %65 : vector<2xf32> to vector<2x1xf32>
    %67 = vector.broadcast %66 : vector<2x1xf32> to vector<2x2xf32>
    %68 = arith.subf %64, %67 : vector<2x2xf32>
    %69 = math.exp %68 : vector<2x2xf32>
    %cst_48 = arith.constant dense<0.000000e+00> : vector<2xf32>
    %70 = vector.multi_reduction <add>, %69, %cst_48 [1] : vector<2x2xf32> to vector<2xf32>
    %71 = vector.shape_cast %70 : vector<2xf32> to vector<2x1xf32>
    %cst_49 = arith.constant dense<0.000000e+00> : vector<2x16xf32>
    %72 = tpu.matmul %69, %61, %cst_49 {dimension_numbers = #tpu.dot_dimension_numbers<[1], [0], [0], [1], [0, 0, 1, 1], [], []>} : vector<2x2xf32>, vector<2x16xf32>, vector<2x16xf32> -> vector<2x16xf32>
    %73 = tpu.reciprocal %71 {approx = true} : vector<2x1xf32> -> vector<2x1xf32>
    %74 = vector.broadcast %73 : vector<2x1xf32> to vector<2x16xf32>
    %75 = arith.mulf %72, %74 : vector<2x16xf32>
    %76 = vector.extract_strided_slice %14 {offsets = [0, 0], sizes = [16, 32], strides = [1, 1]} : vector<32x32xf32> to vector<16x32xf32>
    %cst_50 = arith.constant dense<0.000000e+00> : vector<2x32xf32>
    %77 = tpu.matmul %75, %76, %cst_50 {dimension_numbers = #tpu.dot_dimension_numbers<[1], [0], [0], [1], [0, 0, 1, 1], [], []>} : vector<2x16xf32>, vector<16x32xf32>, vector<2x32xf32> -> vector<2x32xf32>
    %78 = arith.addf %56, %77 : vector<2x32xf32>
    %79 = vector.extract_strided_slice %53 {offsets = [0, 16], sizes = [2, 16], strides = [1, 1]} : vector<2x96xf32> to vector<2x16xf32>
    %cst_51 = arith.constant 2.500000e-01 : f32
    %80 = vector.broadcast %cst_51 : f32 to vector<2x16xf32>
    %81 = arith.mulf %79, %80 : vector<2x16xf32>
    %82 = vector.extract_strided_slice %53 {offsets = [0, 48], sizes = [2, 16], strides = [1, 1]} : vector<2x96xf32> to vector<2x16xf32>
    %83 = vector.extract_strided_slice %53 {offsets = [0, 80], sizes = [2, 16], strides = [1, 1]} : vector<2x96xf32> to vector<2x16xf32>
    %cst_52 = arith.constant dense<0.000000e+00> : vector<2x2xf32>
    %84 = tpu.matmul %81, %82, %cst_52 {dimension_numbers = #tpu.dot_dimension_numbers<[1], [1], [0], [0], [0, 0, 1, 0], [], []>} : vector<2x16xf32>, vector<2x16xf32>, vector<2x2xf32> -> vector<2x2xf32>
    %cst_53 = arith.constant -1.000000e+30 : f32
    %85 = vector.broadcast %cst_53 : f32 to vector<2x2xf32>
    %86 = arith.select %4, %84, %85 : vector<2x2xi1>, vector<2x2xf32>
    %cst_54 = arith.constant dense<0xFF800000> : vector<2xf32>
    %87 = vector.multi_reduction <maximumf>, %86, %cst_54 [1] : vector<2x2xf32> to vector<2xf32>
    %88 = vector.shape_cast %87 : vector<2xf32> to vector<2x1xf32>
    %89 = vector.broadcast %88 : vector<2x1xf32> to vector<2x2xf32>
    %90 = arith.subf %86, %89 : vector<2x2xf32>
    %91 = math.exp %90 : vector<2x2xf32>
    %cst_55 = arith.constant dense<0.000000e+00> : vector<2xf32>
    %92 = vector.multi_reduction <add>, %91, %cst_55 [1] : vector<2x2xf32> to vector<2xf32>
    %93 = vector.shape_cast %92 : vector<2xf32> to vector<2x1xf32>
    %cst_56 = arith.constant dense<0.000000e+00> : vector<2x16xf32>
    %94 = tpu.matmul %91, %83, %cst_56 {dimension_numbers = #tpu.dot_dimension_numbers<[1], [0], [0], [1], [0, 0, 1, 1], [], []>} : vector<2x2xf32>, vector<2x16xf32>, vector<2x16xf32> -> vector<2x16xf32>
    %95 = tpu.reciprocal %93 {approx = true} : vector<2x1xf32> -> vector<2x1xf32>
    %96 = vector.broadcast %95 : vector<2x1xf32> to vector<2x16xf32>
    %97 = arith.mulf %94, %96 : vector<2x16xf32>
    %98 = vector.extract_strided_slice %14 {offsets = [16, 0], sizes = [16, 32], strides = [1, 1]} : vector<32x32xf32> to vector<16x32xf32>
    %cst_57 = arith.constant dense<0.000000e+00> : vector<2x32xf32>
    %99 = tpu.matmul %97, %98, %cst_57 {dimension_numbers = #tpu.dot_dimension_numbers<[1], [0], [0], [1], [0, 0, 1, 1], [], []>} : vector<2x16xf32>, vector<16x32xf32>, vector<2x32xf32> -> vector<2x32xf32>
    %100 = arith.addf %78, %99 : vector<2x32xf32>
    %101 = arith.addf %1, %100 : vector<2x32xf32>
    %102 = vector.broadcast %16 : vector<1x32xf32> to vector<2x32xf32>
    %103 = arith.addf %101, %102 : vector<2x32xf32>
    %cst_58 = arith.constant dense<0.000000e+00> : vector<2xf32>
    %104 = vector.multi_reduction <add>, %103, %cst_58 [1] : vector<2x32xf32> to vector<2xf32>
    %105 = vector.shape_cast %104 : vector<2xf32> to vector<2x1xf32>
    %cst_59 = arith.constant 3.200000e+01 : f32
    %106 = vector.broadcast %cst_59 : f32 to vector<2x1xf32>
    %107 = arith.divf %105, %106 : vector<2x1xf32>
    %108 = vector.broadcast %107 : vector<2x1xf32> to vector<2x32xf32>
    %109 = arith.subf %103, %108 : vector<2x32xf32>
    %110 = arith.mulf %109, %109 : vector<2x32xf32>
    %cst_60 = arith.constant dense<0.000000e+00> : vector<2xf32>
    %111 = vector.multi_reduction <add>, %110, %cst_60 [1] : vector<2x32xf32> to vector<2xf32>
    %112 = vector.shape_cast %111 : vector<2xf32> to vector<2x1xf32>
    %cst_61 = arith.constant 3.200000e+01 : f32
    %113 = vector.broadcast %cst_61 : f32 to vector<2x1xf32>
    %114 = arith.divf %112, %113 : vector<2x1xf32>
    %115 = vector.broadcast %107 : vector<2x1xf32> to vector<2x32xf32>
    %116 = arith.subf %103, %115 : vector<2x32xf32>
    %cst_62 = arith.constant 9.99999974E-6 : f32
    %117 = vector.broadcast %cst_62 : f32 to vector<2x1xf32>
    %118 = arith.addf %114, %117 : vector<2x1xf32>
    %119 = math.rsqrt %118 : vector<2x1xf32>
    %120 = vector.broadcast %119 : vector<2x1xf32> to vector<2x32xf32>
    %121 = arith.mulf %116, %120 : vector<2x32xf32>
    %122 = vector.broadcast %18 : vector<1x32xf32> to vector<2x32xf32>
    %123 = arith.mulf %121, %122 : vector<2x32xf32>
    %124 = vector.broadcast %20 : vector<1x32xf32> to vector<2x32xf32>
    %125 = arith.addf %123, %124 : vector<2x32xf32>
    %cst_63 = arith.constant dense<0.000000e+00> : vector<2x128xf32>
    %126 = tpu.matmul %125, %22, %cst_63 {dimension_numbers = #tpu.dot_dimension_numbers<[1], [0], [0], [1], [0, 0, 1, 1], [], []>} : vector<2x32xf32>, vector<32x128xf32>, vector<2x128xf32> -> vector<2x128xf32>
    %127 = vector.broadcast %24 : vector<1x128xf32> to vector<2x128xf32>
    %128 = arith.addf %126, %127 : vector<2x128xf32>
    %129 = arith.mulf %128, %128 : vector<2x128xf32>
    %130 = arith.mulf %128, %129 : vector<2x128xf32>
    %cst_64 = arith.constant 4.471500e-02 : f32
    %131 = vector.broadcast %cst_64 : f32 to vector<2x128xf32>
    %132 = arith.mulf %131, %130 : vector<2x128xf32>
    %133 = arith.addf %128, %132 : vector<2x128xf32>
    %cst_65 = arith.constant 0.797884583 : f32
    %134 = vector.broadcast %cst_65 : f32 to vector<2x128xf32>
    %135 = arith.mulf %134, %133 : vector<2x128xf32>
    %136 = math.tanh %135 : vector<2x128xf32>
    %cst_66 = arith.constant 1.000000e+00 : f32
    %137 = vector.broadcast %cst_66 : f32 to vector<2x128xf32>
    %138 = arith.addf %137, %136 : vector<2x128xf32>
    %cst_67 = arith.constant 5.000000e-01 : f32
    %139 = vector.broadcast %cst_67 : f32 to vector<2x128xf32>
    %140 = arith.mulf %139, %138 : vector<2x128xf32>
    %141 = arith.mulf %128, %140 : vector<2x128xf32>
    %cst_68 = arith.constant dense<0.000000e+00> : vector<2x32xf32>
    %142 = tpu.matmul %141, %26, %cst_68 {dimension_numbers = #tpu.dot_dimension_numbers<[1], [0], [0], [1], [0, 0, 1, 1], [], []>} : vector<2x128xf32>, vector<128x32xf32>, vector<2x32xf32> -> vector<2x32xf32>
    %143 = vector.broadcast %28 : vector<1x32xf32> to vector<2x32xf32>
    %144 = arith.addf %142, %143 : vector<2x32xf32>
    %145 = arith.addf %103, %144 : vector<2x32xf32>
    %c0_69 = arith.constant 0 : index
    %c0_70 = arith.constant 0 : index
    %c0_71 = arith.constant 0 : index
    %c0_72 = arith.constant 0 : index
    %146 = vector.load %arg14[%c0_69, %c0_70, %c0_71, %c0_72] : memref<2x1x2x32xf32, #tpu.memory_space<vmem>>, vector<1x1x2x32xf32>
    %147 = vector.shape_cast %146 : vector<1x1x2x32xf32> to vector<2x32xf32>
    %148 = vector.shape_cast %54 : vector<2x32xf32> to vector<1x1x2x32xf32>
    tpu.vector_store %arg14[%c0_69, %c0_70, %c0_71, %c0_72], %148 {strides = array<i32>} : memref<2x1x2x32xf32, #tpu.memory_space<vmem>>, vector<1x1x2x32xf32>,
    %c0_73 = arith.constant 0 : index
    %c0_74 = arith.constant 0 : index
    %c0_75 = arith.constant 0 : index
    %c0_76 = arith.constant 0 : index
    %149 = vector.load %arg15[%c0_73, %c0_74, %c0_75, %c0_76] : memref<2x1x2x32xf32, #tpu.memory_space<vmem>>, vector<1x1x2x32xf32>
    %150 = vector.shape_cast %149 : vector<1x1x2x32xf32> to vector<2x32xf32>
    %151 = vector.shape_cast %55 : vector<2x32xf32> to vector<1x1x2x32xf32>
    tpu.vector_store %arg15[%c0_73, %c0_74, %c0_75, %c0_76], %151 {strides = array<i32>} : memref<2x1x2x32xf32, #tpu.memory_space<vmem>>, vector<1x1x2x32xf32>,
    %c1 = arith.constant 1 : index
    %c0_77 = arith.constant 0 : index
    %c0_78 = arith.constant 0 : index
    %152 = vector.load %arg2[%c1, %c0_77, %c0_78] : memref<2x1x32xf32, #tpu.memory_space<vmem>>, vector<1x1x32xf32>
    %153 = vector.shape_cast %152 : vector<1x1x32xf32> to vector<1x32xf32>
    %c1_79 = arith.constant 1 : index
    %c0_80 = arith.constant 0 : index
    %c0_81 = arith.constant 0 : index
    %154 = vector.load %arg3[%c1_79, %c0_80, %c0_81] : memref<2x1x32xf32, #tpu.memory_space<vmem>>, vector<1x1x32xf32>
    %155 = vector.shape_cast %154 : vector<1x1x32xf32> to vector<1x32xf32>
    %c1_82 = arith.constant 1 : index
    %c0_83 = arith.constant 0 : index
    %c0_84 = arith.constant 0 : index
    %156 = vector.load %arg4[%c1_82, %c0_83, %c0_84] : memref<2x32x96xf32, #tpu.memory_space<vmem>>, vector<1x32x96xf32>
    %157 = vector.shape_cast %156 : vector<1x32x96xf32> to vector<32x96xf32>
    %c1_85 = arith.constant 1 : index
    %c0_86 = arith.constant 0 : index
    %c0_87 = arith.constant 0 : index
    %158 = vector.load %arg5[%c1_85, %c0_86, %c0_87] : memref<2x1x96xf32, #tpu.memory_space<vmem>>, vector<1x1x96xf32>
    %159 = vector.shape_cast %158 : vector<1x1x96xf32> to vector<1x96xf32>
    %cst_88 = arith.constant dense<0.000000e+00> : vector<2xf32>
    %160 = vector.multi_reduction <add>, %145, %cst_88 [1] : vector<2x32xf32> to vector<2xf32>
    %161 = vector.shape_cast %160 : vector<2xf32> to vector<2x1xf32>
    %cst_89 = arith.constant 3.200000e+01 : f32
    %162 = vector.broadcast %cst_89 : f32 to vector<2x1xf32>
    %163 = arith.divf %161, %162 : vector<2x1xf32>
    %164 = vector.broadcast %163 : vector<2x1xf32> to vector<2x32xf32>
    %165 = arith.subf %145, %164 : vector<2x32xf32>
    %166 = arith.mulf %165, %165 : vector<2x32xf32>
    %cst_90 = arith.constant dense<0.000000e+00> : vector<2xf32>
    %167 = vector.multi_reduction <add>, %166, %cst_90 [1] : vector<2x32xf32> to vector<2xf32>
    %168 = vector.shape_cast %167 : vector<2xf32> to vector<2x1xf32>
    %cst_91 = arith.constant 3.200000e+01 : f32
    %169 = vector.broadcast %cst_91 : f32 to vector<2x1xf32>
    %170 = arith.divf %168, %169 : vector<2x1xf32>
    %171 = vector.broadcast %163 : vector<2x1xf32> to vector<2x32xf32>
    %172 = arith.subf %145, %171 : vector<2x32xf32>
    %cst_92 = arith.constant 9.99999974E-6 : f32
    %173 = vector.broadcast %cst_92 : f32 to vector<2x1xf32>
    %174 = arith.addf %170, %173 : vector<2x1xf32>
    %175 = math.rsqrt %174 : vector<2x1xf32>
    %176 = vector.broadcast %175 : vector<2x1xf32> to vector<2x32xf32>
    %177 = arith.mulf %172, %176 : vector<2x32xf32>
    %178 = vector.broadcast %153 : vector<1x32xf32> to vector<2x32xf32>
    %179 = arith.mulf %177, %178 : vector<2x32xf32>
    %180 = vector.broadcast %155 : vector<1x32xf32> to vector<2x32xf32>
    %181 = arith.addf %179, %180 : vector<2x32xf32>
    %cst_93 = arith.constant dense<0.000000e+00> : vector<2x96xf32>
    %182 = tpu.matmul %181, %157, %cst_93 {dimension_numbers = #tpu.dot_dimension_numbers<[1], [0], [0], [1], [0, 0, 1, 1], [], []>} : vector<2x32xf32>, vector<32x96xf32>, vector<2x96xf32> -> vector<2x96xf32>
    %183 = vector.broadcast %159 : vector<1x96xf32> to vector<2x96xf32>
    %184 = arith.addf %182, %183 : vector<2x96xf32>
    %185 = vector.extract_strided_slice %184 {offsets = [0, 32], sizes = [2, 32], strides = [1, 1]} : vector<2x96xf32> to vector<2x32xf32>
    %186 = vector.extract_strided_slice %184 {offsets = [0, 64], sizes = [2, 32], strides = [1, 1]} : vector<2x96xf32> to vector<2x32xf32>
    %c1_94 = arith.constant 1 : index
    %c0_95 = arith.constant 0 : index
    %c0_96 = arith.constant 0 : index
    %c0_97 = arith.constant 0 : index
    %187 = vector.load %arg14[%c1_94, %c0_95, %c0_96, %c0_97] : memref<2x1x2x32xf32, #tpu.memory_space<vmem>>, vector<1x1x2x32xf32>
    %188 = vector.shape_cast %187 : vector<1x1x2x32xf32> to vector<2x32xf32>
    %189 = vector.shape_cast %185 : vector<2x32xf32> to vector<1x1x2x32xf32>
    tpu.vector_store %arg14[%c1_94, %c0_95, %c0_96, %c0_97], %189 {strides = array<i32>} : memref<2x1x2x32xf32, #tpu.memory_space<vmem>>, vector<1x1x2x32xf32>,
    %c1_98 = arith.constant 1 : index
    %c0_99 = arith.constant 0 : index
    %c0_100 = arith.constant 0 : index
    %c0_101 = arith.constant 0 : index
    %190 = vector.load %arg15[%c1_98, %c0_99, %c0_100, %c0_101] : memref<2x1x2x32xf32, #tpu.memory_space<vmem>>, vector<1x1x2x32xf32>
    %191 = vector.shape_cast %190 : vector<1x1x2x32xf32> to vector<2x32xf32>
    %192 = vector.shape_cast %186 : vector<2x32xf32> to vector<1x1x2x32xf32>
    tpu.vector_store %arg15[%c1_98, %c0_99, %c0_100, %c0_101], %192 {strides = array<i32>} : memref<2x1x2x32xf32, #tpu.memory_space<vmem>>, vector<1x1x2x32xf32>,
    return
  }
  func.func @transform_0(%arg0: i32) -> (i32, i32, i32) {
    %c0_i32 = arith.constant 0 : i32
    %c0_i32_0 = arith.constant 0 : i32
    %c0_i32_1 = arith.constant 0 : i32
    return %arg0, %c0_i32, %c0_i32_0 : i32, i32, i32
  }
  func.func @transform_1(%arg0: i32) -> (i32, i32, i32) {
    %c0_i32 = arith.constant 0 : i32
    %c0_i32_0 = arith.constant 0 : i32
    %c0_i32_1 = arith.constant 0 : i32
    %c0_i32_2 = arith.constant 0 : i32
    return %c0_i32, %c0_i32_0, %c0_i32_1 : i32, i32, i32
  }
  func.func @transform_2(%arg0: i32) -> (i32, i32, i32) {
    %c0_i32 = arith.constant 0 : i32
    %c0_i32_0 = arith.constant 0 : i32
    %c0_i32_1 = arith.constant 0 : i32
    %c0_i32_2 = arith.constant 0 : i32
    return %c0_i32, %c0_i32_0, %c0_i32_1 : i32, i32, i32
  }
  func.func @transform_3(%arg0: i32) -> (i32, i32, i32) {
    %c0_i32 = arith.constant 0 : i32
    %c0_i32_0 = arith.constant 0 : i32
    %c0_i32_1 = arith.constant 0 : i32
    %c0_i32_2 = arith.constant 0 : i32
    return %c0_i32, %c0_i32_0, %c0_i32_1 : i32, i32, i32
  }
  func.func @transform_4(%arg0: i32) -> (i32, i32, i32) {
    %c0_i32 = arith.constant 0 : i32
    %c0_i32_0 = arith.constant 0 : i32
    %c0_i32_1 = arith.constant 0 : i32
    %c0_i32_2 = arith.constant 0 : i32
    return %c0_i32, %c0_i32_0, %c0_i32_1 : i32, i32, i32
  }
  func.func @transform_5(%arg0: i32) -> (i32, i32, i32) {
    %c0_i32 = arith.constant 0 : i32
    %c0_i32_0 = arith.constant 0 : i32
    %c0_i32_1 = arith.constant 0 : i32
    %c0_i32_2 = arith.constant 0 : i32
    return %c0_i32, %c0_i32_0, %c0_i32_1 : i32, i32, i32
  }
  func.func @transform_6(%arg0: i32) -> (i32, i32, i32) {
    %c0_i32 = arith.constant 0 : i32
    %c0_i32_0 = arith.constant 0 : i32
    %c0_i32_1 = arith.constant 0 : i32
    %c0_i32_2 = arith.constant 0 : i32
    return %c0_i32, %c0_i32_0, %c0_i32_1 : i32, i32, i32
  }
  func.func @transform_7(%arg0: i32) -> (i32, i32, i32) {
    %c0_i32 = arith.constant 0 : i32
    %c0_i32_0 = arith.constant 0 : i32
    %c0_i32_1 = arith.constant 0 : i32
    %c0_i32_2 = arith.constant 0 : i32
    return %c0_i32, %c0_i32_0, %c0_i32_1 : i32, i32, i32
  }
  func.func @transform_8(%arg0: i32) -> (i32, i32, i32) {
    %c0_i32 = arith.constant 0 : i32
    %c0_i32_0 = arith.constant 0 : i32
    %c0_i32_1 = arith.constant 0 : i32
    %c0_i32_2 = arith.constant 0 : i32
    return %c0_i32, %c0_i32_0, %c0_i32_1 : i32, i32, i32
  }
  func.func @transform_9(%arg0: i32) -> (i32, i32, i32) {
    %c0_i32 = arith.constant 0 : i32
    %c0_i32_0 = arith.constant 0 : i32
    %c0_i32_1 = arith.constant 0 : i32
    %c0_i32_2 = arith.constant 0 : i32
    return %c0_i32, %c0_i32_0, %c0_i32_1 : i32, i32, i32
  }
  func.func @transform_10(%arg0: i32) -> (i32, i32, i32) {
    %c0_i32 = arith.constant 0 : i32
    %c0_i32_0 = arith.constant 0 : i32
    %c0_i32_1 = arith.constant 0 : i32
    %c0_i32_2 = arith.constant 0 : i32
    return %c0_i32, %c0_i32_0, %c0_i32_1 : i32, i32, i32
  }
  func.func @transform_11(%arg0: i32) -> (i32, i32, i32) {
    %c0_i32 = arith.constant 0 : i32
    %c0_i32_0 = arith.constant 0 : i32
    %c0_i32_1 = arith.constant 0 : i32
    %c0_i32_2 = arith.constant 0 : i32
    return %c0_i32, %c0_i32_0, %c0_i32_1 : i32, i32, i32
  }
  func.func @transform_12(%arg0: i32) -> (i32, i32, i32) {
    %c0_i32 = arith.constant 0 : i32
    %c0_i32_0 = arith.constant 0 : i32
    %c0_i32_1 = arith.constant 0 : i32
    %c0_i32_2 = arith.constant 0 : i32
    return %c0_i32, %c0_i32_0, %c0_i32_1 : i32, i32, i32
  }
  func.func @transform_13(%arg0: i32) -> (i32, i32, i32, i32) {
    %c0_i32 = arith.constant 0 : i32
    %c0_i32_0 = arith.constant 0 : i32
    %c0_i32_1 = arith.constant 0 : i32
    %c0_i32_2 = arith.constant 0 : i32
    return %c0_i32, %arg0, %c0_i32_0, %c0_i32_1 : i32, i32, i32, i32
  }
  func.func @transform_14(%arg0: i32) -> (i32, i32, i32, i32) {
    %c0_i32 = arith.constant 0 : i32
    %c0_i32_0 = arith.constant 0 : i32
    %c0_i32_1 = arith.constant 0 : i32
    %c0_i32_2 = arith.constant 0 : i32
    return %c0_i32, %arg0, %c0_i32_0, %c0_i32_1 : i32, i32, i32, i32
  }
}

module attributes {stable_mosaic.version = 11 : i64} {
  func.func @_gpt2_present_kernel(%arg0: i32, %arg1: memref<1x1x32xf32, #tpu.memory_space<vmem>>, %arg2: memref<2x1x32xf32, #tpu.memory_space<vmem>>, %arg3: memref<2x1x32xf32, #tpu.memory_space<vmem>>, %arg4: memref<2x32x96xf32, #tpu.memory_space<vmem>>, %arg5: memref<2x1x96xf32, #tpu.memory_space<vmem>>, %arg6: memref<2x32x32xf32, #tpu.memory_space<vmem>>, %arg7: memref<2x1x32xf32, #tpu.memory_space<vmem>>, %arg8: memref<2x1x32xf32, #tpu.memory_space<vmem>>, %arg9: memref<2x1x32xf32, #tpu.memory_space<vmem>>, %arg10: memref<2x32x128xf32, #tpu.memory_space<vmem>>, %arg11: memref<2x1x128xf32, #tpu.memory_space<vmem>>, %arg12: memref<2x128x32xf32, #tpu.memory_space<vmem>>, %arg13: memref<2x1x32xf32, #tpu.memory_space<vmem>>, %arg14: memref<2x1x1x32xf32, #tpu.memory_space<vmem>>, %arg15: memref<2x1x1x32xf32, #tpu.memory_space<vmem>>) attributes {dimension_semantics = [#tpu.dimension_semantics<parallel>], iteration_bounds = array<i64: 2>, scalar_prefetch = 0 : i64, scratch_operands = 0 : i64, tpu.core_type = #tpu.core_type<tc>, window_params = [{transform_indices = @transform_0, window_bounds = array<i64: 1, 1, 32>}, {pipeline_mode = #tpu.pipeline_mode<synchronous>, transform_indices = @transform_1, window_bounds = array<i64: 2, 1, 32>}, {pipeline_mode = #tpu.pipeline_mode<synchronous>, transform_indices = @transform_2, window_bounds = array<i64: 2, 1, 32>}, {pipeline_mode = #tpu.pipeline_mode<synchronous>, transform_indices = @transform_3, window_bounds = array<i64: 2, 32, 96>}, {pipeline_mode = #tpu.pipeline_mode<synchronous>, transform_indices = @transform_4, window_bounds = array<i64: 2, 1, 96>}, {pipeline_mode = #tpu.pipeline_mode<synchronous>, transform_indices = @transform_5, window_bounds = array<i64: 2, 32, 32>}, {pipeline_mode = #tpu.pipeline_mode<synchronous>, transform_indices = @transform_6, window_bounds = array<i64: 2, 1, 32>}, {pipeline_mode = #tpu.pipeline_mode<synchronous>, transform_indices = @transform_7, window_bounds = array<i64: 2, 1, 32>}, {pipeline_mode = #tpu.pipeline_mode<synchronous>, transform_indices = @transform_8, window_bounds = array<i64: 2, 1, 32>}, {pipeline_mode = #tpu.pipeline_mode<synchronous>, transform_indices = @transform_9, window_bounds = array<i64: 2, 32, 128>}, {pipeline_mode = #tpu.pipeline_mode<synchronous>, transform_indices = @transform_10, window_bounds = array<i64: 2, 1, 128>}, {pipeline_mode = #tpu.pipeline_mode<synchronous>, transform_indices = @transform_11, window_bounds = array<i64: 2, 128, 32>}, {pipeline_mode = #tpu.pipeline_mode<synchronous>, transform_indices = @transform_12, window_bounds = array<i64: 2, 1, 32>}, {transform_indices = @transform_13, window_bounds = array<i64: 2, 1, 1, 32>}, {transform_indices = @transform_14, window_bounds = array<i64: 2, 1, 1, 32>}]} {
    %c0 = arith.constant 0 : index
    %c0_0 = arith.constant 0 : index
    %c0_1 = arith.constant 0 : index
    %0 = vector.load %arg1[%c0, %c0_0, %c0_1] : memref<1x1x32xf32, #tpu.memory_space<vmem>>, vector<1x1x32xf32>
    %1 = vector.shape_cast %0 : vector<1x1x32xf32> to vector<1x32xf32>
    %2 = tpu.iota {dimensions = array<i32: 0>} : vector<1x1xi32>
    %3 = tpu.iota {dimensions = array<i32: 1>} : vector<1x1xi32>
    %4 = arith.cmpi sle, %3, %2 : vector<1x1xi32>
    %c0_2 = arith.constant 0 : index
    %c0_3 = arith.constant 0 : index
    %c0_4 = arith.constant 0 : index
    %5 = vector.load %arg2[%c0_2, %c0_3, %c0_4] : memref<2x1x32xf32, #tpu.memory_space<vmem>>, vector<1x1x32xf32>
    %6 = vector.shape_cast %5 : vector<1x1x32xf32> to vector<1x32xf32>
    %c0_5 = arith.constant 0 : index
    %c0_6 = arith.constant 0 : index
    %c0_7 = arith.constant 0 : index
    %7 = vector.load %arg3[%c0_5, %c0_6, %c0_7] : memref<2x1x32xf32, #tpu.memory_space<vmem>>, vector<1x1x32xf32>
    %8 = vector.shape_cast %7 : vector<1x1x32xf32> to vector<1x32xf32>
    %c0_8 = arith.constant 0 : index
    %c0_9 = arith.constant 0 : index
    %c0_10 = arith.constant 0 : index
    %9 = vector.load %arg4[%c0_8, %c0_9, %c0_10] : memref<2x32x96xf32, #tpu.memory_space<vmem>>, vector<1x32x96xf32>
    %10 = vector.shape_cast %9 : vector<1x32x96xf32> to vector<32x96xf32>
    %c0_11 = arith.constant 0 : index
    %c0_12 = arith.constant 0 : index
    %c0_13 = arith.constant 0 : index
    %11 = vector.load %arg5[%c0_11, %c0_12, %c0_13] : memref<2x1x96xf32, #tpu.memory_space<vmem>>, vector<1x1x96xf32>
    %12 = vector.shape_cast %11 : vector<1x1x96xf32> to vector<1x96xf32>
    %c0_14 = arith.constant 0 : index
    %c0_15 = arith.constant 0 : index
    %c0_16 = arith.constant 0 : index
    %13 = vector.load %arg6[%c0_14, %c0_15, %c0_16] : memref<2x32x32xf32, #tpu.memory_space<vmem>>, vector<1x32x32xf32>
    %14 = vector.shape_cast %13 : vector<1x32x32xf32> to vector<32x32xf32>
    %c0_17 = arith.constant 0 : index
    %c0_18 = arith.constant 0 : index
    %c0_19 = arith.constant 0 : index
    %15 = vector.load %arg7[%c0_17, %c0_18, %c0_19] : memref<2x1x32xf32, #tpu.memory_space<vmem>>, vector<1x1x32xf32>
    %16 = vector.shape_cast %15 : vector<1x1x32xf32> to vector<1x32xf32>
    %c0_20 = arith.constant 0 : index
    %c0_21 = arith.constant 0 : index
    %c0_22 = arith.constant 0 : index
    %17 = vector.load %arg8[%c0_20, %c0_21, %c0_22] : memref<2x1x32xf32, #tpu.memory_space<vmem>>, vector<1x1x32xf32>
    %18 = vector.shape_cast %17 : vector<1x1x32xf32> to vector<1x32xf32>
    %c0_23 = arith.constant 0 : index
    %c0_24 = arith.constant 0 : index
    %c0_25 = arith.constant 0 : index
    %19 = vector.load %arg9[%c0_23, %c0_24, %c0_25] : memref<2x1x32xf32, #tpu.memory_space<vmem>>, vector<1x1x32xf32>
    %20 = vector.shape_cast %19 : vector<1x1x32xf32> to vector<1x32xf32>
    %c0_26 = arith.constant 0 : index
    %c0_27 = arith.constant 0 : index
    %c0_28 = arith.constant 0 : index
    %21 = vector.load %arg10[%c0_26, %c0_27, %c0_28] : memref<2x32x128xf32, #tpu.memory_space<vmem>>, vector<1x32x128xf32>
    %22 = vector.shape_cast %21 : vector<1x32x128xf32> to vector<32x128xf32>
    %c0_29 = arith.constant 0 : index
    %c0_30 = arith.constant 0 : index
    %c0_31 = arith.constant 0 : index
    %23 = vector.load %arg11[%c0_29, %c0_30, %c0_31] : memref<2x1x128xf32, #tpu.memory_space<vmem>>, vector<1x1x128xf32>
    %24 = vector.shape_cast %23 : vector<1x1x128xf32> to vector<1x128xf32>
    %c0_32 = arith.constant 0 : index
    %c0_33 = arith.constant 0 : index
    %c0_34 = arith.constant 0 : index
    %25 = vector.load %arg12[%c0_32, %c0_33, %c0_34] : memref<2x128x32xf32, #tpu.memory_space<vmem>>, vector<1x128x32xf32>
    %26 = vector.shape_cast %25 : vector<1x128x32xf32> to vector<128x32xf32>
    %c0_35 = arith.constant 0 : index
    %c0_36 = arith.constant 0 : index
    %c0_37 = arith.constant 0 : index
    %27 = vector.load %arg13[%c0_35, %c0_36, %c0_37] : memref<2x1x32xf32, #tpu.memory_space<vmem>>, vector<1x1x32xf32>
    %28 = vector.shape_cast %27 : vector<1x1x32xf32> to vector<1x32xf32>
    %cst = arith.constant dense<0.000000e+00> : vector<1xf32>
    %29 = vector.multi_reduction <add>, %1, %cst [1] : vector<1x32xf32> to vector<1xf32>
    %30 = vector.shape_cast %29 : vector<1xf32> to vector<1x1xf32>
    %cst_38 = arith.constant 3.200000e+01 : f32
    %31 = vector.broadcast %cst_38 : f32 to vector<1x1xf32>
    %32 = arith.divf %30, %31 : vector<1x1xf32>
    %33 = vector.broadcast %32 : vector<1x1xf32> to vector<1x32xf32>
    %34 = arith.subf %1, %33 : vector<1x32xf32>
    %35 = arith.mulf %34, %34 : vector<1x32xf32>
    %cst_39 = arith.constant dense<0.000000e+00> : vector<1xf32>
    %36 = vector.multi_reduction <add>, %35, %cst_39 [1] : vector<1x32xf32> to vector<1xf32>
    %37 = vector.shape_cast %36 : vector<1xf32> to vector<1x1xf32>
    %cst_40 = arith.constant 3.200000e+01 : f32
    %38 = vector.broadcast %cst_40 : f32 to vector<1x1xf32>
    %39 = arith.divf %37, %38 : vector<1x1xf32>
    %40 = vector.broadcast %32 : vector<1x1xf32> to vector<1x32xf32>
    %41 = arith.subf %1, %40 : vector<1x32xf32>
    %cst_41 = arith.constant 9.99999974E-6 : f32
    %42 = vector.broadcast %cst_41 : f32 to vector<1x1xf32>
    %43 = arith.addf %39, %42 : vector<1x1xf32>
    %44 = math.rsqrt %43 : vector<1x1xf32>
    %45 = vector.broadcast %44 : vector<1x1xf32> to vector<1x32xf32>
    %46 = arith.mulf %41, %45 : vector<1x32xf32>
    %47 = arith.mulf %46, %6 : vector<1x32xf32>
    %48 = arith.addf %47, %8 : vector<1x32xf32>
    %cst_42 = arith.constant dense<0.000000e+00> : vector<1x96xf32>
    %49 = tpu.matmul %48, %10, %cst_42 {dimension_numbers = #tpu.dot_dimension_numbers<[1], [0], [0], [1], [0, 0, 1, 1], [], []>} : vector<1x32xf32>, vector<32x96xf32>, vector<1x96xf32> -> vector<1x96xf32>
    %50 = arith.addf %49, %12 : vector<1x96xf32>
    %51 = vector.extract_strided_slice %50 {offsets = [0, 32], sizes = [1, 32], strides = [1, 1]} : vector<1x96xf32> to vector<1x32xf32>
    %52 = vector.extract_strided_slice %50 {offsets = [0, 64], sizes = [1, 32], strides = [1, 1]} : vector<1x96xf32> to vector<1x32xf32>
    %cst_43 = arith.constant 0.000000e+00 : f32
    %53 = vector.broadcast %cst_43 : f32 to vector<1x32xf32>
    %54 = vector.extract_strided_slice %50 {offsets = [0, 0], sizes = [1, 16], strides = [1, 1]} : vector<1x96xf32> to vector<1x16xf32>
    %cst_44 = arith.constant 2.500000e-01 : f32
    %55 = vector.broadcast %cst_44 : f32 to vector<1x16xf32>
    %56 = arith.mulf %54, %55 : vector<1x16xf32>
    %57 = vector.extract_strided_slice %50 {offsets = [0, 32], sizes = [1, 16], strides = [1, 1]} : vector<1x96xf32> to vector<1x16xf32>
    %58 = vector.extract_strided_slice %50 {offsets = [0, 64], sizes = [1, 16], strides = [1, 1]} : vector<1x96xf32> to vector<1x16xf32>
    %cst_45 = arith.constant dense<0.000000e+00> : vector<1x1xf32>
    %59 = tpu.matmul %56, %57, %cst_45 {dimension_numbers = #tpu.dot_dimension_numbers<[1], [1], [0], [0], [0, 0, 1, 0], [], []>} : vector<1x16xf32>, vector<1x16xf32>, vector<1x1xf32> -> vector<1x1xf32>
    %cst_46 = arith.constant -1.000000e+30 : f32
    %60 = vector.broadcast %cst_46 : f32 to vector<1x1xf32>
    %61 = arith.select %4, %59, %60 : vector<1x1xi1>, vector<1x1xf32>
    %cst_47 = arith.constant dense<0xFF800000> : vector<1xf32>
    %62 = vector.multi_reduction <maximumf>, %61, %cst_47 [1] : vector<1x1xf32> to vector<1xf32>
    %63 = vector.shape_cast %62 : vector<1xf32> to vector<1x1xf32>
    %64 = arith.subf %61, %63 : vector<1x1xf32>
    %65 = math.exp %64 : vector<1x1xf32>
    %cst_48 = arith.constant dense<0.000000e+00> : vector<1xf32>
    %66 = vector.multi_reduction <add>, %65, %cst_48 [1] : vector<1x1xf32> to vector<1xf32>
    %67 = vector.shape_cast %66 : vector<1xf32> to vector<1x1xf32>
    %cst_49 = arith.constant dense<0.000000e+00> : vector<1x16xf32>
    %68 = tpu.matmul %65, %58, %cst_49 {dimension_numbers = #tpu.dot_dimension_numbers<[1], [0], [0], [1], [0, 0, 1, 1], [], []>} : vector<1x1xf32>, vector<1x16xf32>, vector<1x16xf32> -> vector<1x16xf32>
    %69 = tpu.reciprocal %67 {approx = true} : vector<1x1xf32> -> vector<1x1xf32>
    %70 = vector.broadcast %69 : vector<1x1xf32> to vector<1x16xf32>
    %71 = arith.mulf %68, %70 : vector<1x16xf32>
    %72 = vector.extract_strided_slice %14 {offsets = [0, 0], sizes = [16, 32], strides = [1, 1]} : vector<32x32xf32> to vector<16x32xf32>
    %cst_50 = arith.constant dense<0.000000e+00> : vector<1x32xf32>
    %73 = tpu.matmul %71, %72, %cst_50 {dimension_numbers = #tpu.dot_dimension_numbers<[1], [0], [0], [1], [0, 0, 1, 1], [], []>} : vector<1x16xf32>, vector<16x32xf32>, vector<1x32xf32> -> vector<1x32xf32>
    %74 = arith.addf %53, %73 : vector<1x32xf32>
    %75 = vector.extract_strided_slice %50 {offsets = [0, 16], sizes = [1, 16], strides = [1, 1]} : vector<1x96xf32> to vector<1x16xf32>
    %cst_51 = arith.constant 2.500000e-01 : f32
    %76 = vector.broadcast %cst_51 : f32 to vector<1x16xf32>
    %77 = arith.mulf %75, %76 : vector<1x16xf32>
    %78 = vector.extract_strided_slice %50 {offsets = [0, 48], sizes = [1, 16], strides = [1, 1]} : vector<1x96xf32> to vector<1x16xf32>
    %79 = vector.extract_strided_slice %50 {offsets = [0, 80], sizes = [1, 16], strides = [1, 1]} : vector<1x96xf32> to vector<1x16xf32>
    %cst_52 = arith.constant dense<0.000000e+00> : vector<1x1xf32>
    %80 = tpu.matmul %77, %78, %cst_52 {dimension_numbers = #tpu.dot_dimension_numbers<[1], [1], [0], [0], [0, 0, 1, 0], [], []>} : vector<1x16xf32>, vector<1x16xf32>, vector<1x1xf32> -> vector<1x1xf32>
    %cst_53 = arith.constant -1.000000e+30 : f32
    %81 = vector.broadcast %cst_53 : f32 to vector<1x1xf32>
    %82 = arith.select %4, %80, %81 : vector<1x1xi1>, vector<1x1xf32>
    %cst_54 = arith.constant dense<0xFF800000> : vector<1xf32>
    %83 = vector.multi_reduction <maximumf>, %82, %cst_54 [1] : vector<1x1xf32> to vector<1xf32>
    %84 = vector.shape_cast %83 : vector<1xf32> to vector<1x1xf32>
    %85 = arith.subf %82, %84 : vector<1x1xf32>
    %86 = math.exp %85 : vector<1x1xf32>
    %cst_55 = arith.constant dense<0.000000e+00> : vector<1xf32>
    %87 = vector.multi_reduction <add>, %86, %cst_55 [1] : vector<1x1xf32> to vector<1xf32>
    %88 = vector.shape_cast %87 : vector<1xf32> to vector<1x1xf32>
    %cst_56 = arith.constant dense<0.000000e+00> : vector<1x16xf32>
    %89 = tpu.matmul %86, %79, %cst_56 {dimension_numbers = #tpu.dot_dimension_numbers<[1], [0], [0], [1], [0, 0, 1, 1], [], []>} : vector<1x1xf32>, vector<1x16xf32>, vector<1x16xf32> -> vector<1x16xf32>
    %90 = tpu.reciprocal %88 {approx = true} : vector<1x1xf32> -> vector<1x1xf32>
    %91 = vector.broadcast %90 : vector<1x1xf32> to vector<1x16xf32>
    %92 = arith.mulf %89, %91 : vector<1x16xf32>
    %93 = vector.extract_strided_slice %14 {offsets = [16, 0], sizes = [16, 32], strides = [1, 1]} : vector<32x32xf32> to vector<16x32xf32>
    %cst_57 = arith.constant dense<0.000000e+00> : vector<1x32xf32>
    %94 = tpu.matmul %92, %93, %cst_57 {dimension_numbers = #tpu.dot_dimension_numbers<[1], [0], [0], [1], [0, 0, 1, 1], [], []>} : vector<1x16xf32>, vector<16x32xf32>, vector<1x32xf32> -> vector<1x32xf32>
    %95 = arith.addf %74, %94 : vector<1x32xf32>
    %96 = arith.addf %1, %95 : vector<1x32xf32>
    %97 = arith.addf %96, %16 : vector<1x32xf32>
    %cst_58 = arith.constant dense<0.000000e+00> : vector<1xf32>
    %98 = vector.multi_reduction <add>, %97, %cst_58 [1] : vector<1x32xf32> to vector<1xf32>
    %99 = vector.shape_cast %98 : vector<1xf32> to vector<1x1xf32>
    %cst_59 = arith.constant 3.200000e+01 : f32
    %100 = vector.broadcast %cst_59 : f32 to vector<1x1xf32>
    %101 = arith.divf %99, %100 : vector<1x1xf32>
    %102 = vector.broadcast %101 : vector<1x1xf32> to vector<1x32xf32>
    %103 = arith.subf %97, %102 : vector<1x32xf32>
    %104 = arith.mulf %103, %103 : vector<1x32xf32>
    %cst_60 = arith.constant dense<0.000000e+00> : vector<1xf32>
    %105 = vector.multi_reduction <add>, %104, %cst_60 [1] : vector<1x32xf32> to vector<1xf32>
    %106 = vector.shape_cast %105 : vector<1xf32> to vector<1x1xf32>
    %cst_61 = arith.constant 3.200000e+01 : f32
    %107 = vector.broadcast %cst_61 : f32 to vector<1x1xf32>
    %108 = arith.divf %106, %107 : vector<1x1xf32>
    %109 = vector.broadcast %101 : vector<1x1xf32> to vector<1x32xf32>
    %110 = arith.subf %97, %109 : vector<1x32xf32>
    %cst_62 = arith.constant 9.99999974E-6 : f32
    %111 = vector.broadcast %cst_62 : f32 to vector<1x1xf32>
    %112 = arith.addf %108, %111 : vector<1x1xf32>
    %113 = math.rsqrt %112 : vector<1x1xf32>
    %114 = vector.broadcast %113 : vector<1x1xf32> to vector<1x32xf32>
    %115 = arith.mulf %110, %114 : vector<1x32xf32>
    %116 = arith.mulf %115, %18 : vector<1x32xf32>
    %117 = arith.addf %116, %20 : vector<1x32xf32>
    %cst_63 = arith.constant dense<0.000000e+00> : vector<1x128xf32>
    %118 = tpu.matmul %117, %22, %cst_63 {dimension_numbers = #tpu.dot_dimension_numbers<[1], [0], [0], [1], [0, 0, 1, 1], [], []>} : vector<1x32xf32>, vector<32x128xf32>, vector<1x128xf32> -> vector<1x128xf32>
    %119 = arith.addf %118, %24 : vector<1x128xf32>
    %120 = arith.mulf %119, %119 : vector<1x128xf32>
    %121 = arith.mulf %119, %120 : vector<1x128xf32>
    %cst_64 = arith.constant 4.471500e-02 : f32
    %122 = vector.broadcast %cst_64 : f32 to vector<1x128xf32>
    %123 = arith.mulf %122, %121 : vector<1x128xf32>
    %124 = arith.addf %119, %123 : vector<1x128xf32>
    %cst_65 = arith.constant 0.797884583 : f32
    %125 = vector.broadcast %cst_65 : f32 to vector<1x128xf32>
    %126 = arith.mulf %125, %124 : vector<1x128xf32>
    %127 = math.tanh %126 : vector<1x128xf32>
    %cst_66 = arith.constant 1.000000e+00 : f32
    %128 = vector.broadcast %cst_66 : f32 to vector<1x128xf32>
    %129 = arith.addf %128, %127 : vector<1x128xf32>
    %cst_67 = arith.constant 5.000000e-01 : f32
    %130 = vector.broadcast %cst_67 : f32 to vector<1x128xf32>
    %131 = arith.mulf %130, %129 : vector<1x128xf32>
    %132 = arith.mulf %119, %131 : vector<1x128xf32>
    %cst_68 = arith.constant dense<0.000000e+00> : vector<1x32xf32>
    %133 = tpu.matmul %132, %26, %cst_68 {dimension_numbers = #tpu.dot_dimension_numbers<[1], [0], [0], [1], [0, 0, 1, 1], [], []>} : vector<1x128xf32>, vector<128x32xf32>, vector<1x32xf32> -> vector<1x32xf32>
    %134 = arith.addf %133, %28 : vector<1x32xf32>
    %135 = arith.addf %97, %134 : vector<1x32xf32>
    %c0_69 = arith.constant 0 : index
    %c0_70 = arith.constant 0 : index
    %c0_71 = arith.constant 0 : index
    %c0_72 = arith.constant 0 : index
    %136 = vector.load %arg14[%c0_69, %c0_70, %c0_71, %c0_72] : memref<2x1x1x32xf32, #tpu.memory_space<vmem>>, vector<1x1x1x32xf32>
    %137 = vector.shape_cast %136 : vector<1x1x1x32xf32> to vector<1x32xf32>
    %138 = vector.shape_cast %51 : vector<1x32xf32> to vector<1x1x1x32xf32>
    tpu.vector_store %arg14[%c0_69, %c0_70, %c0_71, %c0_72], %138 {strides = array<i32>} : memref<2x1x1x32xf32, #tpu.memory_space<vmem>>, vector<1x1x1x32xf32>,
    %c0_73 = arith.constant 0 : index
    %c0_74 = arith.constant 0 : index
    %c0_75 = arith.constant 0 : index
    %c0_76 = arith.constant 0 : index
    %139 = vector.load %arg15[%c0_73, %c0_74, %c0_75, %c0_76] : memref<2x1x1x32xf32, #tpu.memory_space<vmem>>, vector<1x1x1x32xf32>
    %140 = vector.shape_cast %139 : vector<1x1x1x32xf32> to vector<1x32xf32>
    %141 = vector.shape_cast %52 : vector<1x32xf32> to vector<1x1x1x32xf32>
    tpu.vector_store %arg15[%c0_73, %c0_74, %c0_75, %c0_76], %141 {strides = array<i32>} : memref<2x1x1x32xf32, #tpu.memory_space<vmem>>, vector<1x1x1x32xf32>,
    %c1 = arith.constant 1 : index
    %c0_77 = arith.constant 0 : index
    %c0_78 = arith.constant 0 : index
    %142 = vector.load %arg2[%c1, %c0_77, %c0_78] : memref<2x1x32xf32, #tpu.memory_space<vmem>>, vector<1x1x32xf32>
    %143 = vector.shape_cast %142 : vector<1x1x32xf32> to vector<1x32xf32>
    %c1_79 = arith.constant 1 : index
    %c0_80 = arith.constant 0 : index
    %c0_81 = arith.constant 0 : index
    %144 = vector.load %arg3[%c1_79, %c0_80, %c0_81] : memref<2x1x32xf32, #tpu.memory_space<vmem>>, vector<1x1x32xf32>
    %145 = vector.shape_cast %144 : vector<1x1x32xf32> to vector<1x32xf32>
    %c1_82 = arith.constant 1 : index
    %c0_83 = arith.constant 0 : index
    %c0_84 = arith.constant 0 : index
    %146 = vector.load %arg4[%c1_82, %c0_83, %c0_84] : memref<2x32x96xf32, #tpu.memory_space<vmem>>, vector<1x32x96xf32>
    %147 = vector.shape_cast %146 : vector<1x32x96xf32> to vector<32x96xf32>
    %c1_85 = arith.constant 1 : index
    %c0_86 = arith.constant 0 : index
    %c0_87 = arith.constant 0 : index
    %148 = vector.load %arg5[%c1_85, %c0_86, %c0_87] : memref<2x1x96xf32, #tpu.memory_space<vmem>>, vector<1x1x96xf32>
    %149 = vector.shape_cast %148 : vector<1x1x96xf32> to vector<1x96xf32>
    %cst_88 = arith.constant dense<0.000000e+00> : vector<1xf32>
    %150 = vector.multi_reduction <add>, %135, %cst_88 [1] : vector<1x32xf32> to vector<1xf32>
    %151 = vector.shape_cast %150 : vector<1xf32> to vector<1x1xf32>
    %cst_89 = arith.constant 3.200000e+01 : f32
    %152 = vector.broadcast %cst_89 : f32 to vector<1x1xf32>
    %153 = arith.divf %151, %152 : vector<1x1xf32>
    %154 = vector.broadcast %153 : vector<1x1xf32> to vector<1x32xf32>
    %155 = arith.subf %135, %154 : vector<1x32xf32>
    %156 = arith.mulf %155, %155 : vector<1x32xf32>
    %cst_90 = arith.constant dense<0.000000e+00> : vector<1xf32>
    %157 = vector.multi_reduction <add>, %156, %cst_90 [1] : vector<1x32xf32> to vector<1xf32>
    %158 = vector.shape_cast %157 : vector<1xf32> to vector<1x1xf32>
    %cst_91 = arith.constant 3.200000e+01 : f32
    %159 = vector.broadcast %cst_91 : f32 to vector<1x1xf32>
    %160 = arith.divf %158, %159 : vector<1x1xf32>
    %161 = vector.broadcast %153 : vector<1x1xf32> to vector<1x32xf32>
    %162 = arith.subf %135, %161 : vector<1x32xf32>
    %cst_92 = arith.constant 9.99999974E-6 : f32
    %163 = vector.broadcast %cst_92 : f32 to vector<1x1xf32>
    %164 = arith.addf %160, %163 : vector<1x1xf32>
    %165 = math.rsqrt %164 : vector<1x1xf32>
    %166 = vector.broadcast %165 : vector<1x1xf32> to vector<1x32xf32>
    %167 = arith.mulf %162, %166 : vector<1x32xf32>
    %168 = arith.mulf %167, %143 : vector<1x32xf32>
    %169 = arith.addf %168, %145 : vector<1x32xf32>
    %cst_93 = arith.constant dense<0.000000e+00> : vector<1x96xf32>
    %170 = tpu.matmul %169, %147, %cst_93 {dimension_numbers = #tpu.dot_dimension_numbers<[1], [0], [0], [1], [0, 0, 1, 1], [], []>} : vector<1x32xf32>, vector<32x96xf32>, vector<1x96xf32> -> vector<1x96xf32>
    %171 = arith.addf %170, %149 : vector<1x96xf32>
    %172 = vector.extract_strided_slice %171 {offsets = [0, 32], sizes = [1, 32], strides = [1, 1]} : vector<1x96xf32> to vector<1x32xf32>
    %173 = vector.extract_strided_slice %171 {offsets = [0, 64], sizes = [1, 32], strides = [1, 1]} : vector<1x96xf32> to vector<1x32xf32>
    %c1_94 = arith.constant 1 : index
    %c0_95 = arith.constant 0 : index
    %c0_96 = arith.constant 0 : index
    %c0_97 = arith.constant 0 : index
    %174 = vector.load %arg14[%c1_94, %c0_95, %c0_96, %c0_97] : memref<2x1x1x32xf32, #tpu.memory_space<vmem>>, vector<1x1x1x32xf32>
    %175 = vector.shape_cast %174 : vector<1x1x1x32xf32> to vector<1x32xf32>
    %176 = vector.shape_cast %172 : vector<1x32xf32> to vector<1x1x1x32xf32>
    tpu.vector_store %arg14[%c1_94, %c0_95, %c0_96, %c0_97], %176 {strides = array<i32>} : memref<2x1x1x32xf32, #tpu.memory_space<vmem>>, vector<1x1x1x32xf32>,
    %c1_98 = arith.constant 1 : index
    %c0_99 = arith.constant 0 : index
    %c0_100 = arith.constant 0 : index
    %c0_101 = arith.constant 0 : index
    %177 = vector.load %arg15[%c1_98, %c0_99, %c0_100, %c0_101] : memref<2x1x1x32xf32, #tpu.memory_space<vmem>>, vector<1x1x1x32xf32>
    %178 = vector.shape_cast %177 : vector<1x1x1x32xf32> to vector<1x32xf32>
    %179 = vector.shape_cast %173 : vector<1x32xf32> to vector<1x1x1x32xf32>
    tpu.vector_store %arg15[%c1_98, %c0_99, %c0_100, %c0_101], %179 {strides = array<i32>} : memref<2x1x1x32xf32, #tpu.memory_space<vmem>>, vector<1x1x1x32xf32>,
    return
  }
  func.func @transform_0(%arg0: i32) -> (i32, i32, i32) {
    %c0_i32 = arith.constant 0 : i32
    %c0_i32_0 = arith.constant 0 : i32
    %c0_i32_1 = arith.constant 0 : i32
    return %arg0, %c0_i32, %c0_i32_0 : i32, i32, i32
  }
  func.func @transform_1(%arg0: i32) -> (i32, i32, i32) {
    %c0_i32 = arith.constant 0 : i32
    %c0_i32_0 = arith.constant 0 : i32
    %c0_i32_1 = arith.constant 0 : i32
    %c0_i32_2 = arith.constant 0 : i32
    return %c0_i32, %c0_i32_0, %c0_i32_1 : i32, i32, i32
  }
  func.func @transform_2(%arg0: i32) -> (i32, i32, i32) {
    %c0_i32 = arith.constant 0 : i32
    %c0_i32_0 = arith.constant 0 : i32
    %c0_i32_1 = arith.constant 0 : i32
    %c0_i32_2 = arith.constant 0 : i32
    return %c0_i32, %c0_i32_0, %c0_i32_1 : i32, i32, i32
  }
  func.func @transform_3(%arg0: i32) -> (i32, i32, i32) {
    %c0_i32 = arith.constant 0 : i32
    %c0_i32_0 = arith.constant 0 : i32
    %c0_i32_1 = arith.constant 0 : i32
    %c0_i32_2 = arith.constant 0 : i32
    return %c0_i32, %c0_i32_0, %c0_i32_1 : i32, i32, i32
  }
  func.func @transform_4(%arg0: i32) -> (i32, i32, i32) {
    %c0_i32 = arith.constant 0 : i32
    %c0_i32_0 = arith.constant 0 : i32
    %c0_i32_1 = arith.constant 0 : i32
    %c0_i32_2 = arith.constant 0 : i32
    return %c0_i32, %c0_i32_0, %c0_i32_1 : i32, i32, i32
  }
  func.func @transform_5(%arg0: i32) -> (i32, i32, i32) {
    %c0_i32 = arith.constant 0 : i32
    %c0_i32_0 = arith.constant 0 : i32
    %c0_i32_1 = arith.constant 0 : i32
    %c0_i32_2 = arith.constant 0 : i32
    return %c0_i32, %c0_i32_0, %c0_i32_1 : i32, i32, i32
  }
  func.func @transform_6(%arg0: i32) -> (i32, i32, i32) {
    %c0_i32 = arith.constant 0 : i32
    %c0_i32_0 = arith.constant 0 : i32
    %c0_i32_1 = arith.constant 0 : i32
    %c0_i32_2 = arith.constant 0 : i32
    return %c0_i32, %c0_i32_0, %c0_i32_1 : i32, i32, i32
  }
  func.func @transform_7(%arg0: i32) -> (i32, i32, i32) {
    %c0_i32 = arith.constant 0 : i32
    %c0_i32_0 = arith.constant 0 : i32
    %c0_i32_1 = arith.constant 0 : i32
    %c0_i32_2 = arith.constant 0 : i32
    return %c0_i32, %c0_i32_0, %c0_i32_1 : i32, i32, i32
  }
  func.func @transform_8(%arg0: i32) -> (i32, i32, i32) {
    %c0_i32 = arith.constant 0 : i32
    %c0_i32_0 = arith.constant 0 : i32
    %c0_i32_1 = arith.constant 0 : i32
    %c0_i32_2 = arith.constant 0 : i32
    return %c0_i32, %c0_i32_0, %c0_i32_1 : i32, i32, i32
  }
  func.func @transform_9(%arg0: i32) -> (i32, i32, i32) {
    %c0_i32 = arith.constant 0 : i32
    %c0_i32_0 = arith.constant 0 : i32
    %c0_i32_1 = arith.constant 0 : i32
    %c0_i32_2 = arith.constant 0 : i32
    return %c0_i32, %c0_i32_0, %c0_i32_1 : i32, i32, i32
  }
  func.func @transform_10(%arg0: i32) -> (i32, i32, i32) {
    %c0_i32 = arith.constant 0 : i32
    %c0_i32_0 = arith.constant 0 : i32
    %c0_i32_1 = arith.constant 0 : i32
    %c0_i32_2 = arith.constant 0 : i32
    return %c0_i32, %c0_i32_0, %c0_i32_1 : i32, i32, i32
  }
  func.func @transform_11(%arg0: i32) -> (i32, i32, i32) {
    %c0_i32 = arith.constant 0 : i32
    %c0_i32_0 = arith.constant 0 : i32
    %c0_i32_1 = arith.constant 0 : i32
    %c0_i32_2 = arith.constant 0 : i32
    return %c0_i32, %c0_i32_0, %c0_i32_1 : i32, i32, i32
  }
  func.func @transform_12(%arg0: i32) -> (i32, i32, i32) {
    %c0_i32 = arith.constant 0 : i32
    %c0_i32_0 = arith.constant 0 : i32
    %c0_i32_1 = arith.constant 0 : i32
    %c0_i32_2 = arith.constant 0 : i32
    return %c0_i32, %c0_i32_0, %c0_i32_1 : i32, i32, i32
  }
  func.func @transform_13(%arg0: i32) -> (i32, i32, i32, i32) {
    %c0_i32 = arith.constant 0 : i32
    %c0_i32_0 = arith.constant 0 : i32
    %c0_i32_1 = arith.constant 0 : i32
    %c0_i32_2 = arith.constant 0 : i32
    return %c0_i32, %arg0, %c0_i32_0, %c0_i32_1 : i32, i32, i32, i32
  }
  func.func @transform_14(%arg0: i32) -> (i32, i32, i32, i32) {
    %c0_i32 = arith.constant 0 : i32
    %c0_i32_0 = arith.constant 0 : i32
    %c0_i32_1 = arith.constant 0 : i32
    %c0_i32_2 = arith.constant 0 : i32
    return %c0_i32, %arg0, %c0_i32_0, %c0_i32_1 : i32, i32, i32, i32
  }
}

module attributes {stable_mosaic.version = 11 : i64} {
  func.func @_transfer_mlp_kernel(%arg0: i32, %arg1: memref<1x8x32xf32, #tpu.memory_space<vmem>>, %arg2: memref<1x32x32xf32, #tpu.memory_space<vmem>>, %arg3: memref<1x1x32xf32, #tpu.memory_space<vmem>>, %arg4: memref<1x32x32xf32, #tpu.memory_space<vmem>>, %arg5: memref<1x1x32xf32, #tpu.memory_space<vmem>>, %arg6: memref<1x8x32xf32, #tpu.memory_space<vmem>>) attributes {dimension_semantics = [#tpu.dimension_semantics<parallel>], iteration_bounds = array<i64: 4>, scalar_prefetch = 0 : i64, scratch_operands = 0 : i64, tpu.core_type = #tpu.core_type<tc>, window_params = [{transform_indices = @transform_0, window_bounds = array<i64: 1, 8, 32>}, {transform_indices = @transform_1, window_bounds = array<i64: 1, 32, 32>}, {transform_indices = @transform_2, window_bounds = array<i64: 1, 1, 32>}, {transform_indices = @transform_3, window_bounds = array<i64: 1, 32, 32>}, {transform_indices = @transform_4, window_bounds = array<i64: 1, 1, 32>}, {transform_indices = @transform_5, window_bounds = array<i64: 1, 8, 32>}]} {
    %c0 = arith.constant 0 : index
    %c0_0 = arith.constant 0 : index
    %c0_1 = arith.constant 0 : index
    %0 = vector.load %arg1[%c0, %c0_0, %c0_1] : memref<1x8x32xf32, #tpu.memory_space<vmem>>, vector<1x8x32xf32>
    %1 = vector.shape_cast %0 : vector<1x8x32xf32> to vector<8x32xf32>
    %c0_2 = arith.constant 0 : index
    %c0_3 = arith.constant 0 : index
    %c0_4 = arith.constant 0 : index
    %2 = vector.load %arg2[%c0_2, %c0_3, %c0_4] : memref<1x32x32xf32, #tpu.memory_space<vmem>>, vector<1x32x32xf32>
    %3 = vector.shape_cast %2 : vector<1x32x32xf32> to vector<32x32xf32>
    %cst = arith.constant dense<0.000000e+00> : vector<8x32xf32>
    %4 = tpu.matmul %1, %3, %cst {dimension_numbers = #tpu.dot_dimension_numbers<[1], [0], [0], [1], [0, 0, 1, 1], [], []>} : vector<8x32xf32>, vector<32x32xf32>, vector<8x32xf32> -> vector<8x32xf32>
    %c0_5 = arith.constant 0 : index
    %c0_6 = arith.constant 0 : index
    %c0_7 = arith.constant 0 : index
    %5 = vector.load %arg3[%c0_5, %c0_6, %c0_7] : memref<1x1x32xf32, #tpu.memory_space<vmem>>, vector<1x1x32xf32>
    %6 = vector.shape_cast %5 : vector<1x1x32xf32> to vector<1x32xf32>
    %7 = vector.broadcast %6 : vector<1x32xf32> to vector<8x32xf32>
    %8 = arith.addf %4, %7 : vector<8x32xf32>
    %cst_8 = arith.constant 0.000000e+00 : f32
    %9 = vector.broadcast %cst_8 : f32 to vector<8x32xf32>
    %10 = arith.maximumf %8, %9 : vector<8x32xf32>
    %c0_9 = arith.constant 0 : index
    %c0_10 = arith.constant 0 : index
    %c0_11 = arith.constant 0 : index
    %11 = vector.load %arg4[%c0_9, %c0_10, %c0_11] : memref<1x32x32xf32, #tpu.memory_space<vmem>>, vector<1x32x32xf32>
    %12 = vector.shape_cast %11 : vector<1x32x32xf32> to vector<32x32xf32>
    %cst_12 = arith.constant dense<0.000000e+00> : vector<8x32xf32>
    %13 = tpu.matmul %10, %12, %cst_12 {dimension_numbers = #tpu.dot_dimension_numbers<[1], [0], [0], [1], [0, 0, 1, 1], [], []>} : vector<8x32xf32>, vector<32x32xf32>, vector<8x32xf32> -> vector<8x32xf32>
    %c0_13 = arith.constant 0 : index
    %c0_14 = arith.constant 0 : index
    %c0_15 = arith.constant 0 : index
    %14 = vector.load %arg5[%c0_13, %c0_14, %c0_15] : memref<1x1x32xf32, #tpu.memory_space<vmem>>, vector<1x1x32xf32>
    %15 = vector.shape_cast %14 : vector<1x1x32xf32> to vector<1x32xf32>
    %16 = vector.broadcast %15 : vector<1x32xf32> to vector<8x32xf32>
    %17 = arith.addf %13, %16 : vector<8x32xf32>
    %c0_16 = arith.constant 0 : index
    %c0_17 = arith.constant 0 : index
    %c0_18 = arith.constant 0 : index
    %18 = vector.load %arg6[%c0_16, %c0_17, %c0_18] : memref<1x8x32xf32, #tpu.memory_space<vmem>>, vector<1x8x32xf32>
    %19 = vector.shape_cast %18 : vector<1x8x32xf32> to vector<8x32xf32>
    %20 = vector.shape_cast %17 : vector<8x32xf32> to vector<1x8x32xf32>
    tpu.vector_store %arg6[%c0_16, %c0_17, %c0_18], %20 {strides = array<i32>} : memref<1x8x32xf32, #tpu.memory_space<vmem>>, vector<1x8x32xf32>,
    return
  }
  func.func @transform_0(%arg0: i32) -> (i32, i32, i32) {
    %c0_i32 = arith.constant 0 : i32
    %c0_i32_0 = arith.constant 0 : i32
    %c0_i32_1 = arith.constant 0 : i32
    return %arg0, %c0_i32, %c0_i32_0 : i32, i32, i32
  }
  func.func @transform_1(%arg0: i32) -> (i32, i32, i32) {
    %c0_i32 = arith.constant 0 : i32
    %c0_i32_0 = arith.constant 0 : i32
    %c0_i32_1 = arith.constant 0 : i32
    return %arg0, %c0_i32, %c0_i32_0 : i32, i32, i32
  }
  func.func @transform_2(%arg0: i32) -> (i32, i32, i32) {
    %c0_i32 = arith.constant 0 : i32
    %c0_i32_0 = arith.constant 0 : i32
    %c0_i32_1 = arith.constant 0 : i32
    return %arg0, %c0_i32, %c0_i32_0 : i32, i32, i32
  }
  func.func @transform_3(%arg0: i32) -> (i32, i32, i32) {
    %c0_i32 = arith.constant 0 : i32
    %c0_i32_0 = arith.constant 0 : i32
    %c0_i32_1 = arith.constant 0 : i32
    return %arg0, %c0_i32, %c0_i32_0 : i32, i32, i32
  }
  func.func @transform_4(%arg0: i32) -> (i32, i32, i32) {
    %c0_i32 = arith.constant 0 : i32
    %c0_i32_0 = arith.constant 0 : i32
    %c0_i32_1 = arith.constant 0 : i32
    return %arg0, %c0_i32, %c0_i32_0 : i32, i32, i32
  }
  func.func @transform_5(%arg0: i32) -> (i32, i32, i32) {
    %c0_i32 = arith.constant 0 : i32
    %c0_i32_0 = arith.constant 0 : i32
    %c0_i32_1 = arith.constant 0 : i32
    return %arg0, %c0_i32, %c0_i32_0 : i32, i32, i32
  }
}

module attributes {stable_mosaic.version = 11 : i64} {
  func.func @_gpt2_loss_kernel(%arg0: i32, %arg1: memref<1x7x32xf32, #tpu.memory_space<vmem>>, %arg2: memref<2x1x2x3x16xf32, #tpu.memory_space<vmem>>, %arg3: memref<2x1x2x3x16xf32, #tpu.memory_space<vmem>>, %arg4: memref<1x7x1xi32, #tpu.memory_space<vmem>>, %arg5: memref<1x7x1xi32, #tpu.memory_space<vmem>>, %arg6: memref<2x1x32xf32, #tpu.memory_space<vmem>>, %arg7: memref<2x1x32xf32, #tpu.memory_space<vmem>>, %arg8: memref<2x32x96xf32, #tpu.memory_space<vmem>>, %arg9: memref<2x1x96xf32, #tpu.memory_space<vmem>>, %arg10: memref<2x32x32xf32, #tpu.memory_space<vmem>>, %arg11: memref<2x1x32xf32, #tpu.memory_space<vmem>>, %arg12: memref<2x1x32xf32, #tpu.memory_space<vmem>>, %arg13: memref<2x1x32xf32, #tpu.memory_space<vmem>>, %arg14: memref<2x32x128xf32, #tpu.memory_space<vmem>>, %arg15: memref<2x1x128xf32, #tpu.memory_space<vmem>>, %arg16: memref<2x128x32xf32, #tpu.memory_space<vmem>>, %arg17: memref<2x1x32xf32, #tpu.memory_space<vmem>>, %arg18: memref<1x32xf32, #tpu.memory_space<vmem>>, %arg19: memref<1x32xf32, #tpu.memory_space<vmem>>, %arg20: memref<64x32xf32, #tpu.memory_space<vmem>>, %arg21: memref<1x1x1xf32, #tpu.memory_space<vmem>>, %arg22: memref<1x1x1xf32, #tpu.memory_space<vmem>>) attributes {dimension_semantics = [#tpu.dimension_semantics<parallel>], iteration_bounds = array<i64: 2>, scalar_prefetch = 0 : i64, scratch_operands = 0 : i64, tpu.core_type = #tpu.core_type<tc>, window_params = [{transform_indices = @transform_0, window_bounds = array<i64: 1, 7, 32>}, {transform_indices = @transform_1, window_bounds = array<i64: 2, 1, 2, 3, 16>}, {transform_indices = @transform_2, window_bounds = array<i64: 2, 1, 2, 3, 16>}, {transform_indices = @transform_3, window_bounds = array<i64: 1, 7, 1>}, {transform_indices = @transform_4, window_bounds = array<i64: 1, 7, 1>}, {pipeline_mode = #tpu.pipeline_mode<synchronous>, transform_indices = @transform_5, window_bounds = array<i64: 2, 1, 32>}, {pipeline_mode = #tpu.pipeline_mode<synchronous>, transform_indices = @transform_6, window_bounds = array<i64: 2, 1, 32>}, {pipeline_mode = #tpu.pipeline_mode<synchronous>, transform_indices = @transform_7, window_bounds = array<i64: 2, 32, 96>}, {pipeline_mode = #tpu.pipeline_mode<synchronous>, transform_indices = @transform_8, window_bounds = array<i64: 2, 1, 96>}, {pipeline_mode = #tpu.pipeline_mode<synchronous>, transform_indices = @transform_9, window_bounds = array<i64: 2, 32, 32>}, {pipeline_mode = #tpu.pipeline_mode<synchronous>, transform_indices = @transform_10, window_bounds = array<i64: 2, 1, 32>}, {pipeline_mode = #tpu.pipeline_mode<synchronous>, transform_indices = @transform_11, window_bounds = array<i64: 2, 1, 32>}, {pipeline_mode = #tpu.pipeline_mode<synchronous>, transform_indices = @transform_12, window_bounds = array<i64: 2, 1, 32>}, {pipeline_mode = #tpu.pipeline_mode<synchronous>, transform_indices = @transform_13, window_bounds = array<i64: 2, 32, 128>}, {pipeline_mode = #tpu.pipeline_mode<synchronous>, transform_indices = @transform_14, window_bounds = array<i64: 2, 1, 128>}, {pipeline_mode = #tpu.pipeline_mode<synchronous>, transform_indices = @transform_15, window_bounds = array<i64: 2, 128, 32>}, {pipeline_mode = #tpu.pipeline_mode<synchronous>, transform_indices = @transform_16, window_bounds = array<i64: 2, 1, 32>}, {pipeline_mode = #tpu.pipeline_mode<synchronous>, transform_indices = @transform_17, window_bounds = array<i64: 1, 32>}, {pipeline_mode = #tpu.pipeline_mode<synchronous>, transform_indices = @transform_18, window_bounds = array<i64: 1, 32>}, {pipeline_mode = #tpu.pipeline_mode<synchronous>, transform_indices = @transform_19, window_bounds = array<i64: 64, 32>}, {transform_indices = @transform_20, window_bounds = array<i64: 1, 1, 1>}, {transform_indices = @transform_21, window_bounds = array<i64: 1, 1, 1>}]} {
    %c0 = arith.constant 0 : index
    %c0_0 = arith.constant 0 : index
    %c0_1 = arith.constant 0 : index
    %0 = vector.load %arg1[%c0, %c0_0, %c0_1] : memref<1x7x32xf32, #tpu.memory_space<vmem>>, vector<1x7x32xf32>
    %1 = vector.shape_cast %0 : vector<1x7x32xf32> to vector<7x32xf32>
    %2 = tpu.iota {dimensions = array<i32: 0>} : vector<7x7xi32>
    %3 = tpu.iota {dimensions = array<i32: 1>} : vector<7x7xi32>
    %4 = arith.cmpi sle, %3, %2 : vector<7x7xi32>
    %c0_2 = arith.constant 0 : index
    %c0_3 = arith.constant 0 : index
    %c0_4 = arith.constant 0 : index
    %5 = vector.load %arg6[%c0_2, %c0_3, %c0_4] : memref<2x1x32xf32, #tpu.memory_space<vmem>>, vector<1x1x32xf32>
    %6 = vector.shape_cast %5 : vector<1x1x32xf32> to vector<1x32xf32>
    %c0_5 = arith.constant 0 : index
    %c0_6 = arith.constant 0 : index
    %c0_7 = arith.constant 0 : index
    %7 = vector.load %arg7[%c0_5, %c0_6, %c0_7] : memref<2x1x32xf32, #tpu.memory_space<vmem>>, vector<1x1x32xf32>
    %8 = vector.shape_cast %7 : vector<1x1x32xf32> to vector<1x32xf32>
    %c0_8 = arith.constant 0 : index
    %c0_9 = arith.constant 0 : index
    %c0_10 = arith.constant 0 : index
    %9 = vector.load %arg8[%c0_8, %c0_9, %c0_10] : memref<2x32x96xf32, #tpu.memory_space<vmem>>, vector<1x32x96xf32>
    %10 = vector.shape_cast %9 : vector<1x32x96xf32> to vector<32x96xf32>
    %c0_11 = arith.constant 0 : index
    %c0_12 = arith.constant 0 : index
    %c0_13 = arith.constant 0 : index
    %11 = vector.load %arg9[%c0_11, %c0_12, %c0_13] : memref<2x1x96xf32, #tpu.memory_space<vmem>>, vector<1x1x96xf32>
    %12 = vector.shape_cast %11 : vector<1x1x96xf32> to vector<1x96xf32>
    %c0_14 = arith.constant 0 : index
    %c0_15 = arith.constant 0 : index
    %c0_16 = arith.constant 0 : index
    %13 = vector.load %arg10[%c0_14, %c0_15, %c0_16] : memref<2x32x32xf32, #tpu.memory_space<vmem>>, vector<1x32x32xf32>
    %14 = vector.shape_cast %13 : vector<1x32x32xf32> to vector<32x32xf32>
    %c0_17 = arith.constant 0 : index
    %c0_18 = arith.constant 0 : index
    %c0_19 = arith.constant 0 : index
    %15 = vector.load %arg11[%c0_17, %c0_18, %c0_19] : memref<2x1x32xf32, #tpu.memory_space<vmem>>, vector<1x1x32xf32>
    %16 = vector.shape_cast %15 : vector<1x1x32xf32> to vector<1x32xf32>
    %c0_20 = arith.constant 0 : index
    %c0_21 = arith.constant 0 : index
    %c0_22 = arith.constant 0 : index
    %17 = vector.load %arg12[%c0_20, %c0_21, %c0_22] : memref<2x1x32xf32, #tpu.memory_space<vmem>>, vector<1x1x32xf32>
    %18 = vector.shape_cast %17 : vector<1x1x32xf32> to vector<1x32xf32>
    %c0_23 = arith.constant 0 : index
    %c0_24 = arith.constant 0 : index
    %c0_25 = arith.constant 0 : index
    %19 = vector.load %arg13[%c0_23, %c0_24, %c0_25] : memref<2x1x32xf32, #tpu.memory_space<vmem>>, vector<1x1x32xf32>
    %20 = vector.shape_cast %19 : vector<1x1x32xf32> to vector<1x32xf32>
    %c0_26 = arith.constant 0 : index
    %c0_27 = arith.constant 0 : index
    %c0_28 = arith.constant 0 : index
    %21 = vector.load %arg14[%c0_26, %c0_27, %c0_28] : memref<2x32x128xf32, #tpu.memory_space<vmem>>, vector<1x32x128xf32>
    %22 = vector.shape_cast %21 : vector<1x32x128xf32> to vector<32x128xf32>
    %c0_29 = arith.constant 0 : index
    %c0_30 = arith.constant 0 : index
    %c0_31 = arith.constant 0 : index
    %23 = vector.load %arg15[%c0_29, %c0_30, %c0_31] : memref<2x1x128xf32, #tpu.memory_space<vmem>>, vector<1x1x128xf32>
    %24 = vector.shape_cast %23 : vector<1x1x128xf32> to vector<1x128xf32>
    %c0_32 = arith.constant 0 : index
    %c0_33 = arith.constant 0 : index
    %c0_34 = arith.constant 0 : index
    %25 = vector.load %arg16[%c0_32, %c0_33, %c0_34] : memref<2x128x32xf32, #tpu.memory_space<vmem>>, vector<1x128x32xf32>
    %26 = vector.shape_cast %25 : vector<1x128x32xf32> to vector<128x32xf32>
    %c0_35 = arith.constant 0 : index
    %c0_36 = arith.constant 0 : index
    %c0_37 = arith.constant 0 : index
    %27 = vector.load %arg17[%c0_35, %c0_36, %c0_37] : memref<2x1x32xf32, #tpu.memory_space<vmem>>, vector<1x1x32xf32>
    %28 = vector.shape_cast %27 : vector<1x1x32xf32> to vector<1x32xf32>
    %c0_38 = arith.constant 0 : index
    %c0_39 = arith.constant 0 : index
    %c0_40 = arith.constant 0 : index
    %c0_41 = arith.constant 0 : index
    %c0_42 = arith.constant 0 : index
    %29 = vector.load %arg2[%c0_38, %c0_39, %c0_40, %c0_41, %c0_42] : memref<2x1x2x3x16xf32, #tpu.memory_space<vmem>>, vector<1x1x2x3x16xf32>
    %30 = vector.shape_cast %29 : vector<1x1x2x3x16xf32> to vector<2x3x16xf32>
    %c0_43 = arith.constant 0 : index
    %c0_44 = arith.constant 0 : index
    %c0_45 = arith.constant 0 : index
    %c0_46 = arith.constant 0 : index
    %c0_47 = arith.constant 0 : index
    %31 = vector.load %arg3[%c0_43, %c0_44, %c0_45, %c0_46, %c0_47] : memref<2x1x2x3x16xf32, #tpu.memory_space<vmem>>, vector<1x1x2x3x16xf32>
    %32 = vector.shape_cast %31 : vector<1x1x2x3x16xf32> to vector<2x3x16xf32>
    %cst = arith.constant dense<0.000000e+00> : vector<7xf32>
    %33 = vector.multi_reduction <add>, %1, %cst [1] : vector<7x32xf32> to vector<7xf32>
    %34 = vector.shape_cast %33 : vector<7xf32> to vector<7x1xf32>
    %cst_48 = arith.constant 3.200000e+01 : f32
    %35 = vector.broadcast %cst_48 : f32 to vector<7x1xf32>
    %36 = arith.divf %34, %35 : vector<7x1xf32>
    %37 = vector.broadcast %36 : vector<7x1xf32> to vector<7x32xf32>
    %38 = arith.subf %1, %37 : vector<7x32xf32>
    %39 = arith.mulf %38, %38 : vector<7x32xf32>
    %cst_49 = arith.constant dense<0.000000e+00> : vector<7xf32>
    %40 = vector.multi_reduction <add>, %39, %cst_49 [1] : vector<7x32xf32> to vector<7xf32>
    %41 = vector.shape_cast %40 : vector<7xf32> to vector<7x1xf32>
    %cst_50 = arith.constant 3.200000e+01 : f32
    %42 = vector.broadcast %cst_50 : f32 to vector<7x1xf32>
    %43 = arith.divf %41, %42 : vector<7x1xf32>
    %44 = vector.broadcast %36 : vector<7x1xf32> to vector<7x32xf32>
    %45 = arith.subf %1, %44 : vector<7x32xf32>
    %cst_51 = arith.constant 9.99999974E-6 : f32
    %46 = vector.broadcast %cst_51 : f32 to vector<7x1xf32>
    %47 = arith.addf %43, %46 : vector<7x1xf32>
    %48 = math.rsqrt %47 : vector<7x1xf32>
    %49 = vector.broadcast %48 : vector<7x1xf32> to vector<7x32xf32>
    %50 = arith.mulf %45, %49 : vector<7x32xf32>
    %51 = vector.broadcast %6 : vector<1x32xf32> to vector<7x32xf32>
    %52 = arith.mulf %50, %51 : vector<7x32xf32>
    %53 = vector.broadcast %8 : vector<1x32xf32> to vector<7x32xf32>
    %54 = arith.addf %52, %53 : vector<7x32xf32>
    %cst_52 = arith.constant dense<0.000000e+00> : vector<7x96xf32>
    %55 = tpu.matmul %54, %10, %cst_52 {dimension_numbers = #tpu.dot_dimension_numbers<[1], [0], [0], [1], [0, 0, 1, 1], [], []>} : vector<7x32xf32>, vector<32x96xf32>, vector<7x96xf32> -> vector<7x96xf32>
    %56 = vector.broadcast %12 : vector<1x96xf32> to vector<7x96xf32>
    %57 = arith.addf %55, %56 : vector<7x96xf32>
    %cst_53 = arith.constant 0.000000e+00 : f32
    %58 = vector.broadcast %cst_53 : f32 to vector<7x32xf32>
    %59 = vector.extract_strided_slice %57 {offsets = [0, 0], sizes = [7, 16], strides = [1, 1]} : vector<7x96xf32> to vector<7x16xf32>
    %cst_54 = arith.constant 2.500000e-01 : f32
    %60 = vector.broadcast %cst_54 : f32 to vector<7x16xf32>
    %61 = arith.mulf %59, %60 : vector<7x16xf32>
    %62 = vector.extract_strided_slice %57 {offsets = [0, 32], sizes = [7, 16], strides = [1, 1]} : vector<7x96xf32> to vector<7x16xf32>
    %63 = vector.extract_strided_slice %57 {offsets = [0, 64], sizes = [7, 16], strides = [1, 1]} : vector<7x96xf32> to vector<7x16xf32>
    %cst_55 = arith.constant dense<0.000000e+00> : vector<7x7xf32>
    %64 = tpu.matmul %61, %62, %cst_55 {dimension_numbers = #tpu.dot_dimension_numbers<[1], [1], [0], [0], [0, 0, 1, 0], [], []>} : vector<7x16xf32>, vector<7x16xf32>, vector<7x7xf32> -> vector<7x7xf32>
    %cst_56 = arith.constant -1.000000e+30 : f32
    %65 = vector.broadcast %cst_56 : f32 to vector<7x7xf32>
    %66 = arith.select %4, %64, %65 : vector<7x7xi1>, vector<7x7xf32>
    %67 = vector.extract_strided_slice %30 {offsets = [0, 0, 0], sizes = [1, 3, 16], strides = [1, 1, 1]} : vector<2x3x16xf32> to vector<1x3x16xf32>
    %68 = vector.shape_cast %67 : vector<1x3x16xf32> to vector<3x16xf32>
    %cst_57 = arith.constant dense<0.000000e+00> : vector<7x3xf32>
    %69 = tpu.matmul %61, %68, %cst_57 {dimension_numbers = #tpu.dot_dimension_numbers<[1], [1], [0], [0], [0, 0, 1, 0], [], []>} : vector<7x16xf32>, vector<3x16xf32>, vector<7x3xf32> -> vector<7x3xf32>
    %cst_58 = arith.constant dense<0xFF800000> : vector<7xf32>
    %70 = vector.multi_reduction <maximumf>, %66, %cst_58 [1] : vector<7x7xf32> to vector<7xf32>
    %71 = vector.shape_cast %70 : vector<7xf32> to vector<7x1xf32>
    %cst_59 = arith.constant dense<0xFF800000> : vector<7xf32>
    %72 = vector.multi_reduction <maximumf>, %69, %cst_59 [1] : vector<7x3xf32> to vector<7xf32>
    %73 = vector.shape_cast %72 : vector<7xf32> to vector<7x1xf32>
    %74 = arith.maximumf %71, %73 : vector<7x1xf32>
    %75 = vector.broadcast %74 : vector<7x1xf32> to vector<7x7xf32>
    %76 = arith.subf %66, %75 : vector<7x7xf32>
    %77 = math.exp %76 : vector<7x7xf32>
    %78 = vector.broadcast %74 : vector<7x1xf32> to vector<7x3xf32>
    %79 = arith.subf %69, %78 : vector<7x3xf32>
    %80 = math.exp %79 : vector<7x3xf32>
    %cst_60 = arith.constant dense<0.000000e+00> : vector<7xf32>
    %81 = vector.multi_reduction <add>, %77, %cst_60 [1] : vector<7x7xf32> to vector<7xf32>
    %82 = vector.shape_cast %81 : vector<7xf32> to vector<7x1xf32>
    %cst_61 = arith.constant dense<0.000000e+00> : vector<7xf32>
    %83 = vector.multi_reduction <add>, %80, %cst_61 [1] : vector<7x3xf32> to vector<7xf32>
    %84 = vector.shape_cast %83 : vector<7xf32> to vector<7x1xf32>
    %85 = arith.addf %82, %84 : vector<7x1xf32>
    %cst_62 = arith.constant dense<0.000000e+00> : vector<7x16xf32>
    %86 = tpu.matmul %77, %63, %cst_62 {dimension_numbers = #tpu.dot_dimension_numbers<[1], [0], [0], [1], [0, 0, 1, 1], [], []>} : vector<7x7xf32>, vector<7x16xf32>, vector<7x16xf32> -> vector<7x16xf32>
    %87 = vector.extract_strided_slice %32 {offsets = [0, 0, 0], sizes = [1, 3, 16], strides = [1, 1, 1]} : vector<2x3x16xf32> to vector<1x3x16xf32>
    %88 = vector.shape_cast %87 : vector<1x3x16xf32> to vector<3x16xf32>
    %cst_63 = arith.constant dense<0.000000e+00> : vector<7x16xf32>
    %89 = tpu.matmul %80, %88, %cst_63 {dimension_numbers = #tpu.dot_dimension_numbers<[1], [0], [0], [1], [0, 0, 1, 1], [], []>} : vector<7x3xf32>, vector<3x16xf32>, vector<7x16xf32> -> vector<7x16xf32>
    %90 = arith.addf %86, %89 : vector<7x16xf32>
    %91 = tpu.reciprocal %85 {approx = true} : vector<7x1xf32> -> vector<7x1xf32>
    %92 = vector.broadcast %91 : vector<7x1xf32> to vector<7x16xf32>
    %93 = arith.mulf %90, %92 : vector<7x16xf32>
    %94 = vector.extract_strided_slice %14 {offsets = [0, 0], sizes = [16, 32], strides = [1, 1]} : vector<32x32xf32> to vector<16x32xf32>
    %cst_64 = arith.constant dense<0.000000e+00> : vector<7x32xf32>
    %95 = tpu.matmul %93, %94, %cst_64 {dimension_numbers = #tpu.dot_dimension_numbers<[1], [0], [0], [1], [0, 0, 1, 1], [], []>} : vector<7x16xf32>, vector<16x32xf32>, vector<7x32xf32> -> vector<7x32xf32>
    %96 = arith.addf %58, %95 : vector<7x32xf32>
    %97 = vector.extract_strided_slice %57 {offsets = [0, 16], sizes = [7, 16], strides = [1, 1]} : vector<7x96xf32> to vector<7x16xf32>
    %cst_65 = arith.constant 2.500000e-01 : f32
    %98 = vector.broadcast %cst_65 : f32 to vector<7x16xf32>
    %99 = arith.mulf %97, %98 : vector<7x16xf32>
    %100 = vector.extract_strided_slice %57 {offsets = [0, 48], sizes = [7, 16], strides = [1, 1]} : vector<7x96xf32> to vector<7x16xf32>
    %101 = vector.extract_strided_slice %57 {offsets = [0, 80], sizes = [7, 16], strides = [1, 1]} : vector<7x96xf32> to vector<7x16xf32>
    %cst_66 = arith.constant dense<0.000000e+00> : vector<7x7xf32>
    %102 = tpu.matmul %99, %100, %cst_66 {dimension_numbers = #tpu.dot_dimension_numbers<[1], [1], [0], [0], [0, 0, 1, 0], [], []>} : vector<7x16xf32>, vector<7x16xf32>, vector<7x7xf32> -> vector<7x7xf32>
    %cst_67 = arith.constant -1.000000e+30 : f32
    %103 = vector.broadcast %cst_67 : f32 to vector<7x7xf32>
    %104 = arith.select %4, %102, %103 : vector<7x7xi1>, vector<7x7xf32>
    %105 = vector.extract_strided_slice %30 {offsets = [1, 0, 0], sizes = [1, 3, 16], strides = [1, 1, 1]} : vector<2x3x16xf32> to vector<1x3x16xf32>
    %106 = vector.shape_cast %105 : vector<1x3x16xf32> to vector<3x16xf32>
    %cst_68 = arith.constant dense<0.000000e+00> : vector<7x3xf32>
    %107 = tpu.matmul %99, %106, %cst_68 {dimension_numbers = #tpu.dot_dimension_numbers<[1], [1], [0], [0], [0, 0, 1, 0], [], []>} : vector<7x16xf32>, vector<3x16xf32>, vector<7x3xf32> -> vector<7x3xf32>
    %cst_69 = arith.constant dense<0xFF800000> : vector<7xf32>
    %108 = vector.multi_reduction <maximumf>, %104, %cst_69 [1] : vector<7x7xf32> to vector<7xf32>
    %109 = vector.shape_cast %108 : vector<7xf32> to vector<7x1xf32>
    %cst_70 = arith.constant dense<0xFF800000> : vector<7xf32>
    %110 = vector.multi_reduction <maximumf>, %107, %cst_70 [1] : vector<7x3xf32> to vector<7xf32>
    %111 = vector.shape_cast %110 : vector<7xf32> to vector<7x1xf32>
    %112 = arith.maximumf %109, %111 : vector<7x1xf32>
    %113 = vector.broadcast %112 : vector<7x1xf32> to vector<7x7xf32>
    %114 = arith.subf %104, %113 : vector<7x7xf32>
    %115 = math.exp %114 : vector<7x7xf32>
    %116 = vector.broadcast %112 : vector<7x1xf32> to vector<7x3xf32>
    %117 = arith.subf %107, %116 : vector<7x3xf32>
    %118 = math.exp %117 : vector<7x3xf32>
    %cst_71 = arith.constant dense<0.000000e+00> : vector<7xf32>
    %119 = vector.multi_reduction <add>, %115, %cst_71 [1] : vector<7x7xf32> to vector<7xf32>
    %120 = vector.shape_cast %119 : vector<7xf32> to vector<7x1xf32>
    %cst_72 = arith.constant dense<0.000000e+00> : vector<7xf32>
    %121 = vector.multi_reduction <add>, %118, %cst_72 [1] : vector<7x3xf32> to vector<7xf32>
    %122 = vector.shape_cast %121 : vector<7xf32> to vector<7x1xf32>
    %123 = arith.addf %120, %122 : vector<7x1xf32>
    %cst_73 = arith.constant dense<0.000000e+00> : vector<7x16xf32>
    %124 = tpu.matmul %115, %101, %cst_73 {dimension_numbers = #tpu.dot_dimension_numbers<[1], [0], [0], [1], [0, 0, 1, 1], [], []>} : vector<7x7xf32>, vector<7x16xf32>, vector<7x16xf32> -> vector<7x16xf32>
    %125 = vector.extract_strided_slice %32 {offsets = [1, 0, 0], sizes = [1, 3, 16], strides = [1, 1, 1]} : vector<2x3x16xf32> to vector<1x3x16xf32>
    %126 = vector.shape_cast %125 : vector<1x3x16xf32> to vector<3x16xf32>
    %cst_74 = arith.constant dense<0.000000e+00> : vector<7x16xf32>
    %127 = tpu.matmul %118, %126, %cst_74 {dimension_numbers = #tpu.dot_dimension_numbers<[1], [0], [0], [1], [0, 0, 1, 1], [], []>} : vector<7x3xf32>, vector<3x16xf32>, vector<7x16xf32> -> vector<7x16xf32>
    %128 = arith.addf %124, %127 : vector<7x16xf32>
    %129 = tpu.reciprocal %123 {approx = true} : vector<7x1xf32> -> vector<7x1xf32>
    %130 = vector.broadcast %129 : vector<7x1xf32> to vector<7x16xf32>
    %131 = arith.mulf %128, %130 : vector<7x16xf32>
    %132 = vector.extract_strided_slice %14 {offsets = [16, 0], sizes = [16, 32], strides = [1, 1]} : vector<32x32xf32> to vector<16x32xf32>
    %cst_75 = arith.constant dense<0.000000e+00> : vector<7x32xf32>
    %133 = tpu.matmul %131, %132, %cst_75 {dimension_numbers = #tpu.dot_dimension_numbers<[1], [0], [0], [1], [0, 0, 1, 1], [], []>} : vector<7x16xf32>, vector<16x32xf32>, vector<7x32xf32> -> vector<7x32xf32>
    %134 = arith.addf %96, %133 : vector<7x32xf32>
    %135 = arith.addf %1, %134 : vector<7x32xf32>
    %136 = vector.broadcast %16 : vector<1x32xf32> to vector<7x32xf32>
    %137 = arith.addf %135, %136 : vector<7x32xf32>
    %cst_76 = arith.constant dense<0.000000e+00> : vector<7xf32>
    %138 = vector.multi_reduction <add>, %137, %cst_76 [1] : vector<7x32xf32> to vector<7xf32>
    %139 = vector.shape_cast %138 : vector<7xf32> to vector<7x1xf32>
    %cst_77 = arith.constant 3.200000e+01 : f32
    %140 = vector.broadcast %cst_77 : f32 to vector<7x1xf32>
    %141 = arith.divf %139, %140 : vector<7x1xf32>
    %142 = vector.broadcast %141 : vector<7x1xf32> to vector<7x32xf32>
    %143 = arith.subf %137, %142 : vector<7x32xf32>
    %144 = arith.mulf %143, %143 : vector<7x32xf32>
    %cst_78 = arith.constant dense<0.000000e+00> : vector<7xf32>
    %145 = vector.multi_reduction <add>, %144, %cst_78 [1] : vector<7x32xf32> to vector<7xf32>
    %146 = vector.shape_cast %145 : vector<7xf32> to vector<7x1xf32>
    %cst_79 = arith.constant 3.200000e+01 : f32
    %147 = vector.broadcast %cst_79 : f32 to vector<7x1xf32>
    %148 = arith.divf %146, %147 : vector<7x1xf32>
    %149 = vector.broadcast %141 : vector<7x1xf32> to vector<7x32xf32>
    %150 = arith.subf %137, %149 : vector<7x32xf32>
    %cst_80 = arith.constant 9.99999974E-6 : f32
    %151 = vector.broadcast %cst_80 : f32 to vector<7x1xf32>
    %152 = arith.addf %148, %151 : vector<7x1xf32>
    %153 = math.rsqrt %152 : vector<7x1xf32>
    %154 = vector.broadcast %153 : vector<7x1xf32> to vector<7x32xf32>
    %155 = arith.mulf %150, %154 : vector<7x32xf32>
    %156 = vector.broadcast %18 : vector<1x32xf32> to vector<7x32xf32>
    %157 = arith.mulf %155, %156 : vector<7x32xf32>
    %158 = vector.broadcast %20 : vector<1x32xf32> to vector<7x32xf32>
    %159 = arith.addf %157, %158 : vector<7x32xf32>
    %cst_81 = arith.constant dense<0.000000e+00> : vector<7x128xf32>
    %160 = tpu.matmul %159, %22, %cst_81 {dimension_numbers = #tpu.dot_dimension_numbers<[1], [0], [0], [1], [0, 0, 1, 1], [], []>} : vector<7x32xf32>, vector<32x128xf32>, vector<7x128xf32> -> vector<7x128xf32>
    %161 = vector.broadcast %24 : vector<1x128xf32> to vector<7x128xf32>
    %162 = arith.addf %160, %161 : vector<7x128xf32>
    %163 = arith.mulf %162, %162 : vector<7x128xf32>
    %164 = arith.mulf %162, %163 : vector<7x128xf32>
    %cst_82 = arith.constant 4.471500e-02 : f32
    %165 = vector.broadcast %cst_82 : f32 to vector<7x128xf32>
    %166 = arith.mulf %165, %164 : vector<7x128xf32>
    %167 = arith.addf %162, %166 : vector<7x128xf32>
    %cst_83 = arith.constant 0.797884583 : f32
    %168 = vector.broadcast %cst_83 : f32 to vector<7x128xf32>
    %169 = arith.mulf %168, %167 : vector<7x128xf32>
    %170 = math.tanh %169 : vector<7x128xf32>
    %cst_84 = arith.constant 1.000000e+00 : f32
    %171 = vector.broadcast %cst_84 : f32 to vector<7x128xf32>
    %172 = arith.addf %171, %170 : vector<7x128xf32>
    %cst_85 = arith.constant 5.000000e-01 : f32
    %173 = vector.broadcast %cst_85 : f32 to vector<7x128xf32>
    %174 = arith.mulf %173, %172 : vector<7x128xf32>
    %175 = arith.mulf %162, %174 : vector<7x128xf32>
    %cst_86 = arith.constant dense<0.000000e+00> : vector<7x32xf32>
    %176 = tpu.matmul %175, %26, %cst_86 {dimension_numbers = #tpu.dot_dimension_numbers<[1], [0], [0], [1], [0, 0, 1, 1], [], []>} : vector<7x128xf32>, vector<128x32xf32>, vector<7x32xf32> -> vector<7x32xf32>
    %177 = vector.broadcast %28 : vector<1x32xf32> to vector<7x32xf32>
    %178 = arith.addf %176, %177 : vector<7x32xf32>
    %179 = arith.addf %137, %178 : vector<7x32xf32>
    %c1 = arith.constant 1 : index
    %c0_87 = arith.constant 0 : index
    %c0_88 = arith.constant 0 : index
    %180 = vector.load %arg6[%c1, %c0_87, %c0_88] : memref<2x1x32xf32, #tpu.memory_space<vmem>>, vector<1x1x32xf32>
    %181 = vector.shape_cast %180 : vector<1x1x32xf32> to vector<1x32xf32>
    %c1_89 = arith.constant 1 : index
    %c0_90 = arith.constant 0 : index
    %c0_91 = arith.constant 0 : index
    %182 = vector.load %arg7[%c1_89, %c0_90, %c0_91] : memref<2x1x32xf32, #tpu.memory_space<vmem>>, vector<1x1x32xf32>
    %183 = vector.shape_cast %182 : vector<1x1x32xf32> to vector<1x32xf32>
    %c1_92 = arith.constant 1 : index
    %c0_93 = arith.constant 0 : index
    %c0_94 = arith.constant 0 : index
    %184 = vector.load %arg8[%c1_92, %c0_93, %c0_94] : memref<2x32x96xf32, #tpu.memory_space<vmem>>, vector<1x32x96xf32>
    %185 = vector.shape_cast %184 : vector<1x32x96xf32> to vector<32x96xf32>
    %c1_95 = arith.constant 1 : index
    %c0_96 = arith.constant 0 : index
    %c0_97 = arith.constant 0 : index
    %186 = vector.load %arg9[%c1_95, %c0_96, %c0_97] : memref<2x1x96xf32, #tpu.memory_space<vmem>>, vector<1x1x96xf32>
    %187 = vector.shape_cast %186 : vector<1x1x96xf32> to vector<1x96xf32>
    %c1_98 = arith.constant 1 : index
    %c0_99 = arith.constant 0 : index
    %c0_100 = arith.constant 0 : index
    %188 = vector.load %arg10[%c1_98, %c0_99, %c0_100] : memref<2x32x32xf32, #tpu.memory_space<vmem>>, vector<1x32x32xf32>
    %189 = vector.shape_cast %188 : vector<1x32x32xf32> to vector<32x32xf32>
    %c1_101 = arith.constant 1 : index
    %c0_102 = arith.constant 0 : index
    %c0_103 = arith.constant 0 : index
    %190 = vector.load %arg11[%c1_101, %c0_102, %c0_103] : memref<2x1x32xf32, #tpu.memory_space<vmem>>, vector<1x1x32xf32>
    %191 = vector.shape_cast %190 : vector<1x1x32xf32> to vector<1x32xf32>
    %c1_104 = arith.constant 1 : index
    %c0_105 = arith.constant 0 : index
    %c0_106 = arith.constant 0 : index
    %192 = vector.load %arg12[%c1_104, %c0_105, %c0_106] : memref<2x1x32xf32, #tpu.memory_space<vmem>>, vector<1x1x32xf32>
    %193 = vector.shape_cast %192 : vector<1x1x32xf32> to vector<1x32xf32>
    %c1_107 = arith.constant 1 : index
    %c0_108 = arith.constant 0 : index
    %c0_109 = arith.constant 0 : index
    %194 = vector.load %arg13[%c1_107, %c0_108, %c0_109] : memref<2x1x32xf32, #tpu.memory_space<vmem>>, vector<1x1x32xf32>
    %195 = vector.shape_cast %194 : vector<1x1x32xf32> to vector<1x32xf32>
    %c1_110 = arith.constant 1 : index
    %c0_111 = arith.constant 0 : index
    %c0_112 = arith.constant 0 : index
    %196 = vector.load %arg14[%c1_110, %c0_111, %c0_112] : memref<2x32x128xf32, #tpu.memory_space<vmem>>, vector<1x32x128xf32>
    %197 = vector.shape_cast %196 : vector<1x32x128xf32> to vector<32x128xf32>
    %c1_113 = arith.constant 1 : index
    %c0_114 = arith.constant 0 : index
    %c0_115 = arith.constant 0 : index
    %198 = vector.load %arg15[%c1_113, %c0_114, %c0_115] : memref<2x1x128xf32, #tpu.memory_space<vmem>>, vector<1x1x128xf32>
    %199 = vector.shape_cast %198 : vector<1x1x128xf32> to vector<1x128xf32>
    %c1_116 = arith.constant 1 : index
    %c0_117 = arith.constant 0 : index
    %c0_118 = arith.constant 0 : index
    %200 = vector.load %arg16[%c1_116, %c0_117, %c0_118] : memref<2x128x32xf32, #tpu.memory_space<vmem>>, vector<1x128x32xf32>
    %201 = vector.shape_cast %200 : vector<1x128x32xf32> to vector<128x32xf32>
    %c1_119 = arith.constant 1 : index
    %c0_120 = arith.constant 0 : index
    %c0_121 = arith.constant 0 : index
    %202 = vector.load %arg17[%c1_119, %c0_120, %c0_121] : memref<2x1x32xf32, #tpu.memory_space<vmem>>, vector<1x1x32xf32>
    %203 = vector.shape_cast %202 : vector<1x1x32xf32> to vector<1x32xf32>
    %c1_122 = arith.constant 1 : index
    %c0_123 = arith.constant 0 : index
    %c0_124 = arith.constant 0 : index
    %c0_125 = arith.constant 0 : index
    %c0_126 = arith.constant 0 : index
    %204 = vector.load %arg2[%c1_122, %c0_123, %c0_124, %c0_125, %c0_126] : memref<2x1x2x3x16xf32, #tpu.memory_space<vmem>>, vector<1x1x2x3x16xf32>
    %205 = vector.shape_cast %204 : vector<1x1x2x3x16xf32> to vector<2x3x16xf32>
    %c1_127 = arith.constant 1 : index
    %c0_128 = arith.constant 0 : index
    %c0_129 = arith.constant 0 : index
    %c0_130 = arith.constant 0 : index
    %c0_131 = arith.constant 0 : index
    %206 = vector.load %arg3[%c1_127, %c0_128, %c0_129, %c0_130, %c0_131] : memref<2x1x2x3x16xf32, #tpu.memory_space<vmem>>, vector<1x1x2x3x16xf32>
    %207 = vector.shape_cast %206 : vector<1x1x2x3x16xf32> to vector<2x3x16xf32>
    %cst_132 = arith.constant dense<0.000000e+00> : vector<7xf32>
    %208 = vector.multi_reduction <add>, %179, %cst_132 [1] : vector<7x32xf32> to vector<7xf32>
    %209 = vector.shape_cast %208 : vector<7xf32> to vector<7x1xf32>
    %cst_133 = arith.constant 3.200000e+01 : f32
    %210 = vector.broadcast %cst_133 : f32 to vector<7x1xf32>
    %211 = arith.divf %209, %210 : vector<7x1xf32>
    %212 = vector.broadcast %211 : vector<7x1xf32> to vector<7x32xf32>
    %213 = arith.subf %179, %212 : vector<7x32xf32>
    %214 = arith.mulf %213, %213 : vector<7x32xf32>
    %cst_134 = arith.constant dense<0.000000e+00> : vector<7xf32>
    %215 = vector.multi_reduction <add>, %214, %cst_134 [1] : vector<7x32xf32> to vector<7xf32>
    %216 = vector.shape_cast %215 : vector<7xf32> to vector<7x1xf32>
    %cst_135 = arith.constant 3.200000e+01 : f32
    %217 = vector.broadcast %cst_135 : f32 to vector<7x1xf32>
    %218 = arith.divf %216, %217 : vector<7x1xf32>
    %219 = vector.broadcast %211 : vector<7x1xf32> to vector<7x32xf32>
    %220 = arith.subf %179, %219 : vector<7x32xf32>
    %cst_136 = arith.constant 9.99999974E-6 : f32
    %221 = vector.broadcast %cst_136 : f32 to vector<7x1xf32>
    %222 = arith.addf %218, %221 : vector<7x1xf32>
    %223 = math.rsqrt %222 : vector<7x1xf32>
    %224 = vector.broadcast %223 : vector<7x1xf32> to vector<7x32xf32>
    %225 = arith.mulf %220, %224 : vector<7x32xf32>
    %226 = vector.broadcast %181 : vector<1x32xf32> to vector<7x32xf32>
    %227 = arith.mulf %225, %226 : vector<7x32xf32>
    %228 = vector.broadcast %183 : vector<1x32xf32> to vector<7x32xf32>
    %229 = arith.addf %227, %228 : vector<7x32xf32>
    %cst_137 = arith.constant dense<0.000000e+00> : vector<7x96xf32>
    %230 = tpu.matmul %229, %185, %cst_137 {dimension_numbers = #tpu.dot_dimension_numbers<[1], [0], [0], [1], [0, 0, 1, 1], [], []>} : vector<7x32xf32>, vector<32x96xf32>, vector<7x96xf32> -> vector<7x96xf32>
    %231 = vector.broadcast %187 : vector<1x96xf32> to vector<7x96xf32>
    %232 = arith.addf %230, %231 : vector<7x96xf32>
    %cst_138 = arith.constant 0.000000e+00 : f32
    %233 = vector.broadcast %cst_138 : f32 to vector<7x32xf32>
    %234 = vector.extract_strided_slice %232 {offsets = [0, 0], sizes = [7, 16], strides = [1, 1]} : vector<7x96xf32> to vector<7x16xf32>
    %cst_139 = arith.constant 2.500000e-01 : f32
    %235 = vector.broadcast %cst_139 : f32 to vector<7x16xf32>
    %236 = arith.mulf %234, %235 : vector<7x16xf32>
    %237 = vector.extract_strided_slice %232 {offsets = [0, 32], sizes = [7, 16], strides = [1, 1]} : vector<7x96xf32> to vector<7x16xf32>
    %238 = vector.extract_strided_slice %232 {offsets = [0, 64], sizes = [7, 16], strides = [1, 1]} : vector<7x96xf32> to vector<7x16xf32>
    %cst_140 = arith.constant dense<0.000000e+00> : vector<7x7xf32>
    %239 = tpu.matmul %236, %237, %cst_140 {dimension_numbers = #tpu.dot_dimension_numbers<[1], [1], [0], [0], [0, 0, 1, 0], [], []>} : vector<7x16xf32>, vector<7x16xf32>, vector<7x7xf32> -> vector<7x7xf32>
    %cst_141 = arith.constant -1.000000e+30 : f32
    %240 = vector.broadcast %cst_141 : f32 to vector<7x7xf32>
    %241 = arith.select %4, %239, %240 : vector<7x7xi1>, vector<7x7xf32>
    %242 = vector.extract_strided_slice %205 {offsets = [0, 0, 0], sizes = [1, 3, 16], strides = [1, 1, 1]} : vector<2x3x16xf32> to vector<1x3x16xf32>
    %243 = vector.shape_cast %242 : vector<1x3x16xf32> to vector<3x16xf32>
    %cst_142 = arith.constant dense<0.000000e+00> : vector<7x3xf32>
    %244 = tpu.matmul %236, %243, %cst_142 {dimension_numbers = #tpu.dot_dimension_numbers<[1], [1], [0], [0], [0, 0, 1, 0], [], []>} : vector<7x16xf32>, vector<3x16xf32>, vector<7x3xf32> -> vector<7x3xf32>
    %cst_143 = arith.constant dense<0xFF800000> : vector<7xf32>
    %245 = vector.multi_reduction <maximumf>, %241, %cst_143 [1] : vector<7x7xf32> to vector<7xf32>
    %246 = vector.shape_cast %245 : vector<7xf32> to vector<7x1xf32>
    %cst_144 = arith.constant dense<0xFF800000> : vector<7xf32>
    %247 = vector.multi_reduction <maximumf>, %244, %cst_144 [1] : vector<7x3xf32> to vector<7xf32>
    %248 = vector.shape_cast %247 : vector<7xf32> to vector<7x1xf32>
    %249 = arith.maximumf %246, %248 : vector<7x1xf32>
    %250 = vector.broadcast %249 : vector<7x1xf32> to vector<7x7xf32>
    %251 = arith.subf %241, %250 : vector<7x7xf32>
    %252 = math.exp %251 : vector<7x7xf32>
    %253 = vector.broadcast %249 : vector<7x1xf32> to vector<7x3xf32>
    %254 = arith.subf %244, %253 : vector<7x3xf32>
    %255 = math.exp %254 : vector<7x3xf32>
    %cst_145 = arith.constant dense<0.000000e+00> : vector<7xf32>
    %256 = vector.multi_reduction <add>, %252, %cst_145 [1] : vector<7x7xf32> to vector<7xf32>
    %257 = vector.shape_cast %256 : vector<7xf32> to vector<7x1xf32>
    %cst_146 = arith.constant dense<0.000000e+00> : vector<7xf32>
    %258 = vector.multi_reduction <add>, %255, %cst_146 [1] : vector<7x3xf32> to vector<7xf32>
    %259 = vector.shape_cast %258 : vector<7xf32> to vector<7x1xf32>
    %260 = arith.addf %257, %259 : vector<7x1xf32>
    %cst_147 = arith.constant dense<0.000000e+00> : vector<7x16xf32>
    %261 = tpu.matmul %252, %238, %cst_147 {dimension_numbers = #tpu.dot_dimension_numbers<[1], [0], [0], [1], [0, 0, 1, 1], [], []>} : vector<7x7xf32>, vector<7x16xf32>, vector<7x16xf32> -> vector<7x16xf32>
    %262 = vector.extract_strided_slice %207 {offsets = [0, 0, 0], sizes = [1, 3, 16], strides = [1, 1, 1]} : vector<2x3x16xf32> to vector<1x3x16xf32>
    %263 = vector.shape_cast %262 : vector<1x3x16xf32> to vector<3x16xf32>
    %cst_148 = arith.constant dense<0.000000e+00> : vector<7x16xf32>
    %264 = tpu.matmul %255, %263, %cst_148 {dimension_numbers = #tpu.dot_dimension_numbers<[1], [0], [0], [1], [0, 0, 1, 1], [], []>} : vector<7x3xf32>, vector<3x16xf32>, vector<7x16xf32> -> vector<7x16xf32>
    %265 = arith.addf %261, %264 : vector<7x16xf32>
    %266 = tpu.reciprocal %260 {approx = true} : vector<7x1xf32> -> vector<7x1xf32>
    %267 = vector.broadcast %266 : vector<7x1xf32> to vector<7x16xf32>
    %268 = arith.mulf %265, %267 : vector<7x16xf32>
    %269 = vector.extract_strided_slice %189 {offsets = [0, 0], sizes = [16, 32], strides = [1, 1]} : vector<32x32xf32> to vector<16x32xf32>
    %cst_149 = arith.constant dense<0.000000e+00> : vector<7x32xf32>
    %270 = tpu.matmul %268, %269, %cst_149 {dimension_numbers = #tpu.dot_dimension_numbers<[1], [0], [0], [1], [0, 0, 1, 1], [], []>} : vector<7x16xf32>, vector<16x32xf32>, vector<7x32xf32> -> vector<7x32xf32>
    %271 = arith.addf %233, %270 : vector<7x32xf32>
    %272 = vector.extract_strided_slice %232 {offsets = [0, 16], sizes = [7, 16], strides = [1, 1]} : vector<7x96xf32> to vector<7x16xf32>
    %cst_150 = arith.constant 2.500000e-01 : f32
    %273 = vector.broadcast %cst_150 : f32 to vector<7x16xf32>
    %274 = arith.mulf %272, %273 : vector<7x16xf32>
    %275 = vector.extract_strided_slice %232 {offsets = [0, 48], sizes = [7, 16], strides = [1, 1]} : vector<7x96xf32> to vector<7x16xf32>
    %276 = vector.extract_strided_slice %232 {offsets = [0, 80], sizes = [7, 16], strides = [1, 1]} : vector<7x96xf32> to vector<7x16xf32>
    %cst_151 = arith.constant dense<0.000000e+00> : vector<7x7xf32>
    %277 = tpu.matmul %274, %275, %cst_151 {dimension_numbers = #tpu.dot_dimension_numbers<[1], [1], [0], [0], [0, 0, 1, 0], [], []>} : vector<7x16xf32>, vector<7x16xf32>, vector<7x7xf32> -> vector<7x7xf32>
    %cst_152 = arith.constant -1.000000e+30 : f32
    %278 = vector.broadcast %cst_152 : f32 to vector<7x7xf32>
    %279 = arith.select %4, %277, %278 : vector<7x7xi1>, vector<7x7xf32>
    %280 = vector.extract_strided_slice %205 {offsets = [1, 0, 0], sizes = [1, 3, 16], strides = [1, 1, 1]} : vector<2x3x16xf32> to vector<1x3x16xf32>
    %281 = vector.shape_cast %280 : vector<1x3x16xf32> to vector<3x16xf32>
    %cst_153 = arith.constant dense<0.000000e+00> : vector<7x3xf32>
    %282 = tpu.matmul %274, %281, %cst_153 {dimension_numbers = #tpu.dot_dimension_numbers<[1], [1], [0], [0], [0, 0, 1, 0], [], []>} : vector<7x16xf32>, vector<3x16xf32>, vector<7x3xf32> -> vector<7x3xf32>
    %cst_154 = arith.constant dense<0xFF800000> : vector<7xf32>
    %283 = vector.multi_reduction <maximumf>, %279, %cst_154 [1] : vector<7x7xf32> to vector<7xf32>
    %284 = vector.shape_cast %283 : vector<7xf32> to vector<7x1xf32>
    %cst_155 = arith.constant dense<0xFF800000> : vector<7xf32>
    %285 = vector.multi_reduction <maximumf>, %282, %cst_155 [1] : vector<7x3xf32> to vector<7xf32>
    %286 = vector.shape_cast %285 : vector<7xf32> to vector<7x1xf32>
    %287 = arith.maximumf %284, %286 : vector<7x1xf32>
    %288 = vector.broadcast %287 : vector<7x1xf32> to vector<7x7xf32>
    %289 = arith.subf %279, %288 : vector<7x7xf32>
    %290 = math.exp %289 : vector<7x7xf32>
    %291 = vector.broadcast %287 : vector<7x1xf32> to vector<7x3xf32>
    %292 = arith.subf %282, %291 : vector<7x3xf32>
    %293 = math.exp %292 : vector<7x3xf32>
    %cst_156 = arith.constant dense<0.000000e+00> : vector<7xf32>
    %294 = vector.multi_reduction <add>, %290, %cst_156 [1] : vector<7x7xf32> to vector<7xf32>
    %295 = vector.shape_cast %294 : vector<7xf32> to vector<7x1xf32>
    %cst_157 = arith.constant dense<0.000000e+00> : vector<7xf32>
    %296 = vector.multi_reduction <add>, %293, %cst_157 [1] : vector<7x3xf32> to vector<7xf32>
    %297 = vector.shape_cast %296 : vector<7xf32> to vector<7x1xf32>
    %298 = arith.addf %295, %297 : vector<7x1xf32>
    %cst_158 = arith.constant dense<0.000000e+00> : vector<7x16xf32>
    %299 = tpu.matmul %290, %276, %cst_158 {dimension_numbers = #tpu.dot_dimension_numbers<[1], [0], [0], [1], [0, 0, 1, 1], [], []>} : vector<7x7xf32>, vector<7x16xf32>, vector<7x16xf32> -> vector<7x16xf32>
    %300 = vector.extract_strided_slice %207 {offsets = [1, 0, 0], sizes = [1, 3, 16], strides = [1, 1, 1]} : vector<2x3x16xf32> to vector<1x3x16xf32>
    %301 = vector.shape_cast %300 : vector<1x3x16xf32> to vector<3x16xf32>
    %cst_159 = arith.constant dense<0.000000e+00> : vector<7x16xf32>
    %302 = tpu.matmul %293, %301, %cst_159 {dimension_numbers = #tpu.dot_dimension_numbers<[1], [0], [0], [1], [0, 0, 1, 1], [], []>} : vector<7x3xf32>, vector<3x16xf32>, vector<7x16xf32> -> vector<7x16xf32>
    %303 = arith.addf %299, %302 : vector<7x16xf32>
    %304 = tpu.reciprocal %298 {approx = true} : vector<7x1xf32> -> vector<7x1xf32>
    %305 = vector.broadcast %304 : vector<7x1xf32> to vector<7x16xf32>
    %306 = arith.mulf %303, %305 : vector<7x16xf32>
    %307 = vector.extract_strided_slice %189 {offsets = [16, 0], sizes = [16, 32], strides = [1, 1]} : vector<32x32xf32> to vector<16x32xf32>
    %cst_160 = arith.constant dense<0.000000e+00> : vector<7x32xf32>
    %308 = tpu.matmul %306, %307, %cst_160 {dimension_numbers = #tpu.dot_dimension_numbers<[1], [0], [0], [1], [0, 0, 1, 1], [], []>} : vector<7x16xf32>, vector<16x32xf32>, vector<7x32xf32> -> vector<7x32xf32>
    %309 = arith.addf %271, %308 : vector<7x32xf32>
    %310 = arith.addf %179, %309 : vector<7x32xf32>
    %311 = vector.broadcast %191 : vector<1x32xf32> to vector<7x32xf32>
    %312 = arith.addf %310, %311 : vector<7x32xf32>
    %cst_161 = arith.constant dense<0.000000e+00> : vector<7xf32>
    %313 = vector.multi_reduction <add>, %312, %cst_161 [1] : vector<7x32xf32> to vector<7xf32>
    %314 = vector.shape_cast %313 : vector<7xf32> to vector<7x1xf32>
    %cst_162 = arith.constant 3.200000e+01 : f32
    %315 = vector.broadcast %cst_162 : f32 to vector<7x1xf32>
    %316 = arith.divf %314, %315 : vector<7x1xf32>
    %317 = vector.broadcast %316 : vector<7x1xf32> to vector<7x32xf32>
    %318 = arith.subf %312, %317 : vector<7x32xf32>
    %319 = arith.mulf %318, %318 : vector<7x32xf32>
    %cst_163 = arith.constant dense<0.000000e+00> : vector<7xf32>
    %320 = vector.multi_reduction <add>, %319, %cst_163 [1] : vector<7x32xf32> to vector<7xf32>
    %321 = vector.shape_cast %320 : vector<7xf32> to vector<7x1xf32>
    %cst_164 = arith.constant 3.200000e+01 : f32
    %322 = vector.broadcast %cst_164 : f32 to vector<7x1xf32>
    %323 = arith.divf %321, %322 : vector<7x1xf32>
    %324 = vector.broadcast %316 : vector<7x1xf32> to vector<7x32xf32>
    %325 = arith.subf %312, %324 : vector<7x32xf32>
    %cst_165 = arith.constant 9.99999974E-6 : f32
    %326 = vector.broadcast %cst_165 : f32 to vector<7x1xf32>
    %327 = arith.addf %323, %326 : vector<7x1xf32>
    %328 = math.rsqrt %327 : vector<7x1xf32>
    %329 = vector.broadcast %328 : vector<7x1xf32> to vector<7x32xf32>
    %330 = arith.mulf %325, %329 : vector<7x32xf32>
    %331 = vector.broadcast %193 : vector<1x32xf32> to vector<7x32xf32>
    %332 = arith.mulf %330, %331 : vector<7x32xf32>
    %333 = vector.broadcast %195 : vector<1x32xf32> to vector<7x32xf32>
    %334 = arith.addf %332, %333 : vector<7x32xf32>
    %cst_166 = arith.constant dense<0.000000e+00> : vector<7x128xf32>
    %335 = tpu.matmul %334, %197, %cst_166 {dimension_numbers = #tpu.dot_dimension_numbers<[1], [0], [0], [1], [0, 0, 1, 1], [], []>} : vector<7x32xf32>, vector<32x128xf32>, vector<7x128xf32> -> vector<7x128xf32>
    %336 = vector.broadcast %199 : vector<1x128xf32> to vector<7x128xf32>
    %337 = arith.addf %335, %336 : vector<7x128xf32>
    %338 = arith.mulf %337, %337 : vector<7x128xf32>
    %339 = arith.mulf %337, %338 : vector<7x128xf32>
    %cst_167 = arith.constant 4.471500e-02 : f32
    %340 = vector.broadcast %cst_167 : f32 to vector<7x128xf32>
    %341 = arith.mulf %340, %339 : vector<7x128xf32>
    %342 = arith.addf %337, %341 : vector<7x128xf32>
    %cst_168 = arith.constant 0.797884583 : f32
    %343 = vector.broadcast %cst_168 : f32 to vector<7x128xf32>
    %344 = arith.mulf %343, %342 : vector<7x128xf32>
    %345 = math.tanh %344 : vector<7x128xf32>
    %cst_169 = arith.constant 1.000000e+00 : f32
    %346 = vector.broadcast %cst_169 : f32 to vector<7x128xf32>
    %347 = arith.addf %346, %345 : vector<7x128xf32>
    %cst_170 = arith.constant 5.000000e-01 : f32
    %348 = vector.broadcast %cst_170 : f32 to vector<7x128xf32>
    %349 = arith.mulf %348, %347 : vector<7x128xf32>
    %350 = arith.mulf %337, %349 : vector<7x128xf32>
    %cst_171 = arith.constant dense<0.000000e+00> : vector<7x32xf32>
    %351 = tpu.matmul %350, %201, %cst_171 {dimension_numbers = #tpu.dot_dimension_numbers<[1], [0], [0], [1], [0, 0, 1, 1], [], []>} : vector<7x128xf32>, vector<128x32xf32>, vector<7x32xf32> -> vector<7x32xf32>
    %352 = vector.broadcast %203 : vector<1x32xf32> to vector<7x32xf32>
    %353 = arith.addf %351, %352 : vector<7x32xf32>
    %354 = arith.addf %312, %353 : vector<7x32xf32>
    %c0_172 = arith.constant 0 : index
    %c0_173 = arith.constant 0 : index
    %355 = vector.load %arg18[%c0_172, %c0_173] : memref<1x32xf32, #tpu.memory_space<vmem>>, vector<1x32xf32>
    %c0_174 = arith.constant 0 : index
    %c0_175 = arith.constant 0 : index
    %356 = vector.load %arg19[%c0_174, %c0_175] : memref<1x32xf32, #tpu.memory_space<vmem>>, vector<1x32xf32>
    %cst_176 = arith.constant dense<0.000000e+00> : vector<7xf32>
    %357 = vector.multi_reduction <add>, %354, %cst_176 [1] : vector<7x32xf32> to vector<7xf32>
    %358 = vector.shape_cast %357 : vector<7xf32> to vector<7x1xf32>
    %cst_177 = arith.constant 3.200000e+01 : f32
    %359 = vector.broadcast %cst_177 : f32 to vector<7x1xf32>
    %360 = arith.divf %358, %359 : vector<7x1xf32>
    %361 = vector.broadcast %360 : vector<7x1xf32> to vector<7x32xf32>
    %362 = arith.subf %354, %361 : vector<7x32xf32>
    %363 = arith.mulf %362, %362 : vector<7x32xf32>
    %cst_178 = arith.constant dense<0.000000e+00> : vector<7xf32>
    %364 = vector.multi_reduction <add>, %363, %cst_178 [1] : vector<7x32xf32> to vector<7xf32>
    %365 = vector.shape_cast %364 : vector<7xf32> to vector<7x1xf32>
    %cst_179 = arith.constant 3.200000e+01 : f32
    %366 = vector.broadcast %cst_179 : f32 to vector<7x1xf32>
    %367 = arith.divf %365, %366 : vector<7x1xf32>
    %368 = vector.broadcast %360 : vector<7x1xf32> to vector<7x32xf32>
    %369 = arith.subf %354, %368 : vector<7x32xf32>
    %cst_180 = arith.constant 9.99999974E-6 : f32
    %370 = vector.broadcast %cst_180 : f32 to vector<7x1xf32>
    %371 = arith.addf %367, %370 : vector<7x1xf32>
    %372 = math.rsqrt %371 : vector<7x1xf32>
    %373 = vector.broadcast %372 : vector<7x1xf32> to vector<7x32xf32>
    %374 = arith.mulf %369, %373 : vector<7x32xf32>
    %375 = vector.broadcast %355 : vector<1x32xf32> to vector<7x32xf32>
    %376 = arith.mulf %374, %375 : vector<7x32xf32>
    %377 = vector.broadcast %356 : vector<1x32xf32> to vector<7x32xf32>
    %378 = arith.addf %376, %377 : vector<7x32xf32>
    %c0_181 = arith.constant 0 : index
    %c0_182 = arith.constant 0 : index
    %379 = vector.load %arg20[%c0_181, %c0_182] : memref<64x32xf32, #tpu.memory_space<vmem>>, vector<64x32xf32>
    %cst_183 = arith.constant dense<0.000000e+00> : vector<7x64xf32>
    %380 = tpu.matmul %378, %379, %cst_183 {dimension_numbers = #tpu.dot_dimension_numbers<[1], [1], [0], [0], [0, 0, 1, 0], [], []>} : vector<7x32xf32>, vector<64x32xf32>, vector<7x64xf32> -> vector<7x64xf32>
    %cst_184 = arith.constant dense<0xFF800000> : vector<7xf32>
    %381 = vector.multi_reduction <maximumf>, %380, %cst_184 [1] : vector<7x64xf32> to vector<7xf32>
    %382 = vector.shape_cast %381 : vector<7xf32> to vector<7x1xf32>
    %383 = vector.broadcast %382 : vector<7x1xf32> to vector<7x64xf32>
    %384 = arith.subf %380, %383 : vector<7x64xf32>
    %385 = math.exp %384 : vector<7x64xf32>
    %cst_185 = arith.constant dense<0.000000e+00> : vector<7xf32>
    %386 = vector.multi_reduction <add>, %385, %cst_185 [1] : vector<7x64xf32> to vector<7xf32>
    %387 = vector.shape_cast %386 : vector<7xf32> to vector<7x1xf32>
    %388 = math.log %387 : vector<7x1xf32>
    %389 = arith.addf %388, %382 : vector<7x1xf32>
    %c0_186 = arith.constant 0 : index
    %c0_187 = arith.constant 0 : index
    %c0_188 = arith.constant 0 : index
    %390 = vector.load %arg4[%c0_186, %c0_187, %c0_188] : memref<1x7x1xi32, #tpu.memory_space<vmem>>, vector<1x7x1xi32>
    %391 = vector.shape_cast %390 : vector<1x7x1xi32> to vector<7x1xi32>
    %392 = tpu.iota {dimensions = array<i32: 1>} : vector<7x64xi32>
    %393 = vector.broadcast %391 : vector<7x1xi32> to vector<7x64xi32>
    %394 = arith.cmpi eq, %392, %393 : vector<7x64xi32>
    %cst_189 = arith.constant 0.000000e+00 : f32
    %395 = vector.broadcast %cst_189 : f32 to vector<7x64xf32>
    %396 = arith.select %394, %380, %395 : vector<7x64xi1>, vector<7x64xf32>
    %cst_190 = arith.constant dense<0.000000e+00> : vector<7xf32>
    %397 = vector.multi_reduction <add>, %396, %cst_190 [1] : vector<7x64xf32> to vector<7xf32>
    %398 = vector.shape_cast %397 : vector<7xf32> to vector<7x1xf32>
    %399 = arith.subf %398, %389 : vector<7x1xf32>
    %c0_191 = arith.constant 0 : index
    %c0_192 = arith.constant 0 : index
    %c0_193 = arith.constant 0 : index
    %400 = vector.load %arg5[%c0_191, %c0_192, %c0_193] : memref<1x7x1xi32, #tpu.memory_space<vmem>>, vector<1x7x1xi32>
    %401 = vector.shape_cast %400 : vector<1x7x1xi32> to vector<7x1xi32>
    %402 = arith.sitofp %401 : vector<7x1xi32> to vector<7x1xf32>
    %403 = arith.mulf %399, %402 : vector<7x1xf32>
    %cst_194 = arith.constant dense<0.000000e+00> : vector<1xf32>
    %404 = vector.multi_reduction <add>, %403, %cst_194 [0] : vector<7x1xf32> to vector<1xf32>
    %405 = vector.shape_cast %404 : vector<1xf32> to vector<1x1xf32>
    %c0_195 = arith.constant 0 : index
    %c0_196 = arith.constant 0 : index
    %c0_197 = arith.constant 0 : index
    %406 = vector.load %arg21[%c0_195, %c0_196, %c0_197] : memref<1x1x1xf32, #tpu.memory_space<vmem>>, vector<1x1x1xf32>
    %407 = vector.shape_cast %406 : vector<1x1x1xf32> to vector<1x1xf32>
    %408 = vector.shape_cast %405 : vector<1x1xf32> to vector<1x1x1xf32>
    tpu.vector_store %arg21[%c0_195, %c0_196, %c0_197], %408 {strides = array<i32>} : memref<1x1x1xf32, #tpu.memory_space<vmem>>, vector<1x1x1xf32>,
    %cst_198 = arith.constant dense<0.000000e+00> : vector<1xf32>
    %409 = vector.multi_reduction <add>, %402, %cst_198 [0] : vector<7x1xf32> to vector<1xf32>
    %410 = vector.shape_cast %409 : vector<1xf32> to vector<1x1xf32>
    %c0_199 = arith.constant 0 : index
    %c0_200 = arith.constant 0 : index
    %c0_201 = arith.constant 0 : index
    %411 = vector.load %arg22[%c0_199, %c0_200, %c0_201] : memref<1x1x1xf32, #tpu.memory_space<vmem>>, vector<1x1x1xf32>
    %412 = vector.shape_cast %411 : vector<1x1x1xf32> to vector<1x1xf32>
    %413 = vector.shape_cast %410 : vector<1x1xf32> to vector<1x1x1xf32>
    tpu.vector_store %arg22[%c0_199, %c0_200, %c0_201], %413 {strides = array<i32>} : memref<1x1x1xf32, #tpu.memory_space<vmem>>, vector<1x1x1xf32>,
    return
  }
  func.func @transform_0(%arg0: i32) -> (i32, i32, i32) {
    %c0_i32 = arith.constant 0 : i32
    %c0_i32_0 = arith.constant 0 : i32
    %c0_i32_1 = arith.constant 0 : i32
    return %arg0, %c0_i32, %c0_i32_0 : i32, i32, i32
  }
  func.func @transform_1(%arg0: i32) -> (i32, i32, i32, i32, i32) {
    %c0_i32 = arith.constant 0 : i32
    %c0_i32_0 = arith.constant 0 : i32
    %c0_i32_1 = arith.constant 0 : i32
    %c0_i32_2 = arith.constant 0 : i32
    %c0_i32_3 = arith.constant 0 : i32
    return %c0_i32, %arg0, %c0_i32_0, %c0_i32_1, %c0_i32_2 : i32, i32, i32, i32, i32
  }
  func.func @transform_2(%arg0: i32) -> (i32, i32, i32, i32, i32) {
    %c0_i32 = arith.constant 0 : i32
    %c0_i32_0 = arith.constant 0 : i32
    %c0_i32_1 = arith.constant 0 : i32
    %c0_i32_2 = arith.constant 0 : i32
    %c0_i32_3 = arith.constant 0 : i32
    return %c0_i32, %arg0, %c0_i32_0, %c0_i32_1, %c0_i32_2 : i32, i32, i32, i32, i32
  }
  func.func @transform_3(%arg0: i32) -> (i32, i32, i32) {
    %c0_i32 = arith.constant 0 : i32
    %c0_i32_0 = arith.constant 0 : i32
    %c0_i32_1 = arith.constant 0 : i32
    return %arg0, %c0_i32, %c0_i32_0 : i32, i32, i32
  }
  func.func @transform_4(%arg0: i32) -> (i32, i32, i32) {
    %c0_i32 = arith.constant 0 : i32
    %c0_i32_0 = arith.constant 0 : i32
    %c0_i32_1 = arith.constant 0 : i32
    return %arg0, %c0_i32, %c0_i32_0 : i32, i32, i32
  }
  func.func @transform_5(%arg0: i32) -> (i32, i32, i32) {
    %c0_i32 = arith.constant 0 : i32
    %c0_i32_0 = arith.constant 0 : i32
    %c0_i32_1 = arith.constant 0 : i32
    %c0_i32_2 = arith.constant 0 : i32
    return %c0_i32, %c0_i32_0, %c0_i32_1 : i32, i32, i32
  }
  func.func @transform_6(%arg0: i32) -> (i32, i32, i32) {
    %c0_i32 = arith.constant 0 : i32
    %c0_i32_0 = arith.constant 0 : i32
    %c0_i32_1 = arith.constant 0 : i32
    %c0_i32_2 = arith.constant 0 : i32
    return %c0_i32, %c0_i32_0, %c0_i32_1 : i32, i32, i32
  }
  func.func @transform_7(%arg0: i32) -> (i32, i32, i32) {
    %c0_i32 = arith.constant 0 : i32
    %c0_i32_0 = arith.constant 0 : i32
    %c0_i32_1 = arith.constant 0 : i32
    %c0_i32_2 = arith.constant 0 : i32
    return %c0_i32, %c0_i32_0, %c0_i32_1 : i32, i32, i32
  }
  func.func @transform_8(%arg0: i32) -> (i32, i32, i32) {
    %c0_i32 = arith.constant 0 : i32
    %c0_i32_0 = arith.constant 0 : i32
    %c0_i32_1 = arith.constant 0 : i32
    %c0_i32_2 = arith.constant 0 : i32
    return %c0_i32, %c0_i32_0, %c0_i32_1 : i32, i32, i32
  }
  func.func @transform_9(%arg0: i32) -> (i32, i32, i32) {
    %c0_i32 = arith.constant 0 : i32
    %c0_i32_0 = arith.constant 0 : i32
    %c0_i32_1 = arith.constant 0 : i32
    %c0_i32_2 = arith.constant 0 : i32
    return %c0_i32, %c0_i32_0, %c0_i32_1 : i32, i32, i32
  }
  func.func @transform_10(%arg0: i32) -> (i32, i32, i32) {
    %c0_i32 = arith.constant 0 : i32
    %c0_i32_0 = arith.constant 0 : i32
    %c0_i32_1 = arith.constant 0 : i32
    %c0_i32_2 = arith.constant 0 : i32
    return %c0_i32, %c0_i32_0, %c0_i32_1 : i32, i32, i32
  }
  func.func @transform_11(%arg0: i32) -> (i32, i32, i32) {
    %c0_i32 = arith.constant 0 : i32
    %c0_i32_0 = arith.constant 0 : i32
    %c0_i32_1 = arith.constant 0 : i32
    %c0_i32_2 = arith.constant 0 : i32
    return %c0_i32, %c0_i32_0, %c0_i32_1 : i32, i32, i32
  }
  func.func @transform_12(%arg0: i32) -> (i32, i32, i32) {
    %c0_i32 = arith.constant 0 : i32
    %c0_i32_0 = arith.constant 0 : i32
    %c0_i32_1 = arith.constant 0 : i32
    %c0_i32_2 = arith.constant 0 : i32
    return %c0_i32, %c0_i32_0, %c0_i32_1 : i32, i32, i32
  }
  func.func @transform_13(%arg0: i32) -> (i32, i32, i32) {
    %c0_i32 = arith.constant 0 : i32
    %c0_i32_0 = arith.constant 0 : i32
    %c0_i32_1 = arith.constant 0 : i32
    %c0_i32_2 = arith.constant 0 : i32
    return %c0_i32, %c0_i32_0, %c0_i32_1 : i32, i32, i32
  }
  func.func @transform_14(%arg0: i32) -> (i32, i32, i32) {
    %c0_i32 = arith.constant 0 : i32
    %c0_i32_0 = arith.constant 0 : i32
    %c0_i32_1 = arith.constant 0 : i32
    %c0_i32_2 = arith.constant 0 : i32
    return %c0_i32, %c0_i32_0, %c0_i32_1 : i32, i32, i32
  }
  func.func @transform_15(%arg0: i32) -> (i32, i32, i32) {
    %c0_i32 = arith.constant 0 : i32
    %c0_i32_0 = arith.constant 0 : i32
    %c0_i32_1 = arith.constant 0 : i32
    %c0_i32_2 = arith.constant 0 : i32
    return %c0_i32, %c0_i32_0, %c0_i32_1 : i32, i32, i32
  }
  func.func @transform_16(%arg0: i32) -> (i32, i32, i32) {
    %c0_i32 = arith.constant 0 : i32
    %c0_i32_0 = arith.constant 0 : i32
    %c0_i32_1 = arith.constant 0 : i32
    %c0_i32_2 = arith.constant 0 : i32
    return %c0_i32, %c0_i32_0, %c0_i32_1 : i32, i32, i32
  }
  func.func @transform_17(%arg0: i32) -> (i32, i32) {
    %c0_i32 = arith.constant 0 : i32
    %c0_i32_0 = arith.constant 0 : i32
    %c0_i32_1 = arith.constant 0 : i32
    return %c0_i32, %c0_i32_0 : i32, i32
  }
  func.func @transform_18(%arg0: i32) -> (i32, i32) {
    %c0_i32 = arith.constant 0 : i32
    %c0_i32_0 = arith.constant 0 : i32
    %c0_i32_1 = arith.constant 0 : i32
    return %c0_i32, %c0_i32_0 : i32, i32
  }
  func.func @transform_19(%arg0: i32) -> (i32, i32) {
    %c0_i32 = arith.constant 0 : i32
    %c0_i32_0 = arith.constant 0 : i32
    %c0_i32_1 = arith.constant 0 : i32
    return %c0_i32, %c0_i32_0 : i32, i32
  }
  func.func @transform_20(%arg0: i32) -> (i32, i32, i32) {
    %c0_i32 = arith.constant 0 : i32
    %c0_i32_0 = arith.constant 0 : i32
    %c0_i32_1 = arith.constant 0 : i32
    return %arg0, %c0_i32, %c0_i32_0 : i32, i32, i32
  }
  func.func @transform_21(%arg0: i32) -> (i32, i32, i32) {
    %c0_i32 = arith.constant 0 : i32
    %c0_i32_0 = arith.constant 0 : i32
    %c0_i32_1 = arith.constant 0 : i32
    return %arg0, %c0_i32, %c0_i32_0 : i32, i32, i32
  }
}

</mosaic_0001>

<bundles_post_ra>
// kernel: squeeze.17
= control target key start
LH: loop header
LB: loop body
LE: loop exit
PB: predicated region body
PF: predicated region fallthrough
CT: control target
= control target key end

     0   :  { %vm12_vm0 = vcmask 130048   ;;  %s89_s0 = inlined_call_operand.vmem [shape: f32[1,2,2,32], index: 0, kind: input, shape index: {}]   ;;  %s90_s1 = inlined_call_operand.vmem [shape: f32[2,2,2,16], index: 1, kind: output, shape index: {}]  }
   0x1   :  { %v55_v0 = vld [vmem:[%s89_s0 + $0x2] sm:$0x3]  ;;  %v9_v1 = vld [vmem:[%s89_s0] sm:$0x3]  ;;  %s60_s0 = smov 112  }
   0x2   :  { %8 = vst [vmem:[#allocation1 + $0x8] sm:$0x3] %v55_v0  ;;  %10 = vst [vmem:[#allocation1] sm:$0x3] %v9_v1 }
   0x9   :  { %v19_v2 = vld.sshfl [vmem:[#allocation1] sm:$0xff pattern:$0x99999810]  }
   0xa   :  { %v11_v3 = vld [vmem:[#allocation1] sm:$0x3]   ;;  %20 = vrot.lane.b32.xlu0 %v19_v2, %s60_s0  ;;  %v15_v4 = vld [vmem:[#allocation1 + $0x8] sm:$0x3]  }
   0xb   :  { %13 = vst.msk [vmem:[#allocation0] ss:$8 sm:$0x3] %vm12_vm0, %v11_v3   ;;  %18 = vst.msk [vmem:[#allocation0 + $0x10] ss:$8 sm:$0x3] %vm12_vm0, %v15_v4  }
  0x7c   :  { %v21_v5 = vpop.permute.xlu0 %20  }
  0x7d   :  { %24 = vst.msk [vmem:[#allocation0 + $0x1] ss:$8 sm:$0xf] %vm12_vm0, %v21_v5  }
  0x84   :  { %v29_v6 = vld [vmem:[#allocation0] sm:$0x3]  ;;  %v34_v7 = vld [vmem:[#allocation0 + $0x8] sm:$0x3]  ;;  %v40_v8 = vld [vmem:[#allocation0 + $0x10] sm:$0x3] }
  0x85   :  { %32 = vst [vmem:[%s90_s1] sm:$0x3] %v29_v6  ;;  %56 = vst [vmem:[%s90_s1 + $0x2] sm:$0x3] %v34_v7  ;;  %v47_v9 = vld [vmem:[#allocation0 + $0x18] sm:$0x3] }
  0x86   :  { %57 = vst [vmem:[%s90_s1 + $0x4] sm:$0x3] %v40_v8  ;;  %58 = vst [vmem:[%s90_s1 + $0x6] sm:$0x3] %v47_v9 }

// kernel: squeeze.12
= control target key start
LH: loop header
LB: loop body
LE: loop exit
PB: predicated region body
PF: predicated region fallthrough
CT: control target
= control target key end

     0   :  { %vm8_vm0 = vcmask 130048   ;;  %s52_s0 = inlined_call_operand.vmem [shape: f32[2,32], index: 0, kind: input, shape index: {}]   ;;  %s53_s1 = inlined_call_operand.vmem [shape: f32[1,2,2,1,16], index: 1, kind: output, shape index: {}]  }
   0x1   :  { %v5_v0 = vld [vmem:[%s52_s0] sm:$0x3]  ;;  %s32_s0 = smov 112  }
   0x2   :  { %6 = vst [vmem:[#allocation1] sm:$0x3] %v5_v0 }
   0x9   :  { %v10_v1 = vld [vmem:[#allocation1] sm:$0x3]  }
   0xa   :  { %v7_v2 = vld [vmem:[#allocation1] sm:$0x3]   ;;  %11 = vrot.lane.b32.xlu0 %v10_v1, %s32_s0 }
   0xb   :  { %9 = vst.msk [vmem:[#allocation0] ss:$8 sm:$0x3] %vm8_vm0, %v7_v2  }
  0x7c   :  { %v12_v3 = vpop.permute.xlu0 %11  }
  0x7d   :  { %15 = vst.msk [vmem:[#allocation0 + $0x1] ss:$8 sm:$0x3] %vm8_vm0, %v12_v3  }
  0x84   :  { %v20_v4 = vld [vmem:[#allocation0] sm:$0x3]  ;;  %v25_v5 = vld [vmem:[#allocation0 + $0x8] sm:$0x3] }
  0x85   :  { %23 = vst [vmem:[%s53_s1] sm:$0x3] %v20_v4  ;;  %30 = vst [vmem:[%s53_s1 + $0x2] sm:$0x3] %v25_v5 }

// kernel: squeeze.20
= control target key start
LH: loop header
LB: loop body
LE: loop exit
PB: predicated region body
PF: predicated region fallthrough
CT: control target
= control target key end

     0   :  { %vm3_vm0 = vcmask 130048   ;;  %s122_s0 = inlined_call_operand.vmem [shape: f32[1,8,32], index: 0, kind: input, shape index: {}]   ;;  %s123_s1 = inlined_call_operand.vmem [shape: f32[2,2,2,2,16], index: 1, kind: output, shape index: {}]  }
   0x1   :  { %v6_v0 = vld [vmem:[%s122_s0] sm:$0xff]   ;;  %s84_s0 = smov 112  }
   0x2   :  { %7 = vrot.lane.b32.xlu0 %v6_v0, %s84_s0  ;;  %4 = vst.msk [vmem:[#allocation0] ss:$8 sm:$0xf] %vm3_vm0, %v6_v0   ;;  %5 = vst.msk [vmem:[#allocation0] ss:$8 sm:$0xf0] %vm3_vm0, %v6_v0  }
  0x74   :  { %v8_v1 = vpop.permute.xlu0 %7  }
  0x75   :  { %11 = vst.msk [vmem:[#allocation0 + $0x1] ss:$8 sm:$0xf] %vm3_vm0, %v8_v1   ;;  %13 = vst.msk [vmem:[#allocation0 + $0x1] ss:$8 sm:$0xf0] %vm3_vm0, %v8_v1  }
  0x7c   :  { %v18_v2 = vld [vmem:[#allocation0] sm:$0x3]  ;;  %v23_v3 = vld [vmem:[#allocation0 + $0x8] sm:$0x3]  ;;  %v29_v4 = vld [vmem:[#allocation0 + $0x10] sm:$0x3] }
  0x7d   :  { %21 = vst [vmem:[%s123_s1] sm:$0x3] %v18_v2  ;;  %76 = vst [vmem:[%s123_s1 + $0x2] sm:$0x3] %v23_v3  ;;  %v36_v5 = vld [vmem:[#allocation0 + $0x18] sm:$0x3] }
  0x7e   :  { %77 = vst [vmem:[%s123_s1 + $0x4] sm:$0x3] %v29_v4  ;;  %v43_v6 = vld [vmem:[#allocation0 + $0x20] sm:$0x3]  ;;  %v50_v7 = vld [vmem:[#allocation0 + $0x28] sm:$0x3] }
  0x7f   :  { %78 = vst [vmem:[%s123_s1 + $0x6] sm:$0x3] %v36_v5  ;;  %79 = vst [vmem:[%s123_s1 + $0x8] sm:$0x3] %v43_v6  ;;  %v57_v8 = vld [vmem:[#allocation0 + $0x30] sm:$0x3] }
  0x80   :  { %80 = vst [vmem:[%s123_s1 + $0xa] sm:$0x3] %v50_v7  ;;  %v64_v9 = vld [vmem:[#allocation0 + $0x38] sm:$0x3]  ;;  %81 = vst [vmem:[%s123_s1 + $0xc] sm:$0x3] %v57_v8 }
  0x81   :  { %82 = vst [vmem:[%s123_s1 + $0xe] sm:$0x3] %v64_v9 }

// kernel: squeeze.22
= control target key start
LH: loop header
LB: loop body
LE: loop exit
PB: predicated region body
PF: predicated region fallthrough
CT: control target
= control target key end

     0   :  { %vm8_vm0 = vcmask 130048   ;;  %s76_s0 = inlined_call_operand.vmem [shape: f32[1,4,32], index: 0, kind: input, shape index: {}]   ;;  %s77_s1 = inlined_call_operand.vmem [shape: f32[2,2,2,1,16], index: 1, kind: output, shape index: {}]  }
   0x1   :  { %v5_v0 = vld [vmem:[%s76_s0] sm:$0xf]  ;;  %s50_s0 = smov 112  }
   0x2   :  { %6 = vst [vmem:[#allocation1] sm:$0xf] %v5_v0 }
   0x9   :  { %v10_v1 = vld [vmem:[#allocation1] sm:$0xf]  }
   0xa   :  { %v7_v2 = vld [vmem:[#allocation1] sm:$0xf]   ;;  %11 = vrot.lane.b32.xlu0 %v10_v1, %s50_s0 }
   0xb   :  { %9 = vst.msk [vmem:[#allocation0] ss:$8 sm:$0xf] %vm8_vm0, %v7_v2  }
  0x7c   :  { %v12_v3 = vpop.permute.xlu0 %11  }
  0x7d   :  { %15 = vst.msk [vmem:[#allocation0 + $0x1] ss:$8 sm:$0xf] %vm8_vm0, %v12_v3  }
  0x84   :  { %v20_v4 = vld [vmem:[#allocation0] sm:$0x3]  ;;  %v25_v5 = vld [vmem:[#allocation0 + $0x8] sm:$0x3]  ;;  %v31_v6 = vld [vmem:[#allocation0 + $0x10] sm:$0x3] }
  0x85   :  { %23 = vst [vmem:[%s77_s1] sm:$0x3] %v20_v4  ;;  %46 = vst [vmem:[%s77_s1 + $0x2] sm:$0x3] %v25_v5  ;;  %v38_v7 = vld [vmem:[#allocation0 + $0x18] sm:$0x3] }
  0x86   :  { %47 = vst [vmem:[%s77_s1 + $0x4] sm:$0x3] %v31_v6  ;;  %48 = vst [vmem:[%s77_s1 + $0x6] sm:$0x3] %v38_v7 }

// kernel: topic_model_forward.6
= control target key start
LH: loop header
LB: loop body
LE: loop exit
PB: predicated region body
PF: predicated region fallthrough
CT: control target
= control target key end

     0   :  { %s656_s18 = smov 0   ;;  %s698_s0 = inlined_call_operand.vmem [shape: f32[4,8,32], index: 0, kind: input, shape index: {}]   ;;  %s699_s1 = inlined_call_operand.vmem [shape: f32[4,32,32], index: 1, kind: input, shape index: {}]   ;;  %s700_s2 = inlined_call_operand.vmem [shape: f32[4,1,32], index: 2, kind: input, shape index: {}]   ;;  %s701_s3 = inlined_call_operand.vmem [shape: f32[4,32,32], index: 3, kind: input, shape index: {}]   ;;  %s702_s4 = inlined_call_operand.vmem [shape: f32[4,1,32], index: 4, kind: input, shape index: {}]   ;;  %s703_s5 = inlined_call_operand.vmem [shape: f32[4,8,32], index: 5, kind: output, shape index: {}]  }
   0x1 LB: > { %s555_s19 = sadd.s32 4294967295, %s622_s18   ;;  %p559_p0 = scmp.ge.s32.totalorder %s622_s18, 1  ;;  %s622_s18 = sphi %s656_s18, %s15_s18  }
   0x2   : > { %p222_p1 = scmp.lt.s32.totalorder %s622_s18, 5 }
   0x4   : > { %p223_p2 = pnand %p559_p0, %p222_p1 }
   0x5   : > { %p264_p3 = scmp.lt.s32.totalorder (!%p223_p2), %s555_s19, 3 }
   0x6   : > { %226 = sbr.rel (%p223_p2) target bundleno = 415 (0x19f), region = 40 }
   0xb   : > { %v624_v0 = vmov 0.0   ;;  %vm625_vm0 = vmmov 0   ;;  %s705_s19 = smov (!%p264_p3, %s555_s19), 3  ;;  %vm300_vm1 = vcmask 261120  }
   0xc   : > { %584 = vmatprep.subr.mxu0 %v624_v0  ;;  %592 = vmatprep.mubr.msk.f32.mxu0 %vm625_vm0, %v624_v0  ;;  %s572_s20 = sshll.u32 %s705_s19, 5  ;;  %s560_s24 = sshll.u32 %s705_s19, 3 }
   0xd   : > { %595 = vmatprep.subr.mxu1 %v624_v0  ;;  %603 = vmatprep.mubr.msk.f32.mxu1 %vm625_vm0, %v624_v0  ;;  %s272_s23 = scalar_lea.vmem %s699_s1, %s572_s20  ;;  %s280_s27 = scalar_lea.vmem %s701_s3, %s572_s20 }
   0xe   : > { %v292_v1 = vld [vmem:[%s272_s23 + $0x18] sm:$0xff]  ;;  %v291_v2 = vld [vmem:[%s272_s23 + $0x10] sm:$0xff]  ;;  %v290_v4 = vld [vmem:[%s272_s23 + $0x8] sm:$0xff]  ;;  %s267_s30 = scalar_lea.vmem %s698_s0, %s560_s24  ;;  %s275_s8 = scalar_lea.vmem %s700_s2, %s705_s19 }
   0xf   : > { %585 = vmatpush3.msra.mxu0 %v292_v1  ;;  %v378_v3 = vld [vmem:[%s280_s27 + $0x18] sm:$0xff]  ;;  %v289_v5 = vld [vmem:[%s272_s23] sm:$0xff]  ;;  %v377_v7 = vld [vmem:[%s280_s27 + $0x10] sm:$0xff]  ;;  %s283_s11 = scalar_lea.vmem %s702_s4, %s705_s19  ;;  %s287_s14 = scalar_lea.vmem %s703_s5, %s560_s24 }
  0x10   : > { %586 = vmatprep.subr.mxu0 %v624_v0  ;;  %596 = vmatpush3.msra.mxu1 %v378_v3  ;;  %v288_v6 = vld [vmem:[%s267_s30] sm:$0xff]  ;;  %v376_v8 = vld [vmem:[%s280_s27 + $0x8] sm:$0xff] }
  0x11   : > { %587 = vmatpush3.msra.mxu0 %v291_v2  ;;  %597 = vmatprep.subr.mxu1 %v624_v0  ;;  %v375_v9 = vld [vmem:[%s280_s27] sm:$0xff] }
  0x12   : > { %588 = vmatprep.subr.mxu0 %v624_v0  ;;  %598 = vmatpush3.msra.mxu1 %v377_v7  ;;  %v566_v10 = vld [vmem:[%s275_s8] ss:$0 sm:$0xff] }
  0x13   : > { %589 = vmatpush3.msra.mxu0 %v290_v4  ;;  %599 = vmatprep.subr.mxu1 %v624_v0  ;;  %v568_v15 = vld [vmem:[%s283_s11] ss:$0 sm:$0xff] }
  0x14   : > { %590 = vmatprep.subr.mxu0 %v624_v0  ;;  %600 = vmatpush3.msra.mxu1 %v376_v8 }
  0x15   : > { %591 = vmatpush3.msra.mxu0 %v289_v5  ;;  %601 = vmatprep.subr.mxu1 %v624_v0 }
  0x16   : > { %593 = vmatmul.mubr.msk.f32.vlgmr.msra.gmra.mxu0 %vm300_vm1, %v288_v6  ;;  %602 = vmatpush3.msra.mxu1 %v375_v9 }
  0xd6   : > { %v370_v11 = vpop.f32.mrf.mxu0 }
  0xd7   : > { %v371_v12 = vadd.f32 %v566_v10, %v370_v11 }
  0xd8   : > { %v594_v13 = vpop.f32.mrf.mxu0 }
  0xd9   : > { %v374_v14 = vmax.f32 %v371_v12, 0.0 }
  0xdb   : > { %604 = vmatmul.mubr.msk.f32.vlgmr.msra.gmra.mxu1 %vm300_vm1, %v374_v14 }
 0x19b   : > { %v455_v16 = vpop.f32.mrf.mxu1 }
 0x19c   : > { %v456_v17 = vadd.f32 %v568_v15, %v455_v16 }
 0x19d   : > { %v605_v18 = vpop.f32.mrf.mxu1 }
 0x19e   : > { %459 = vst.msk [vmem:[%s287_s14] sm:$0xff] %vm300_vm1, %v456_v17 }
 0x19f PF: > { %s15_s18 = sadd.s32 1, %s622_s18  }
 0x1a0   : > { %p12_p4 = scmp.ge.s32.totalorder %s15_s18, 6  }
 0x1a2   :  { %14 = sbr.rel (!%p12_p4) target bundleno = 1 (0x1), region = 82 }

// kernel: topic_model_forward.4
= control target key start
LH: loop header
LB: loop body
LE: loop exit
PB: predicated region body
PF: predicated region fallthrough
CT: control target
= control target key end

     0   :  { %s1704_s29 = smov 0   ;;  %s1706_s30 = smov 0   ;;  %s1989_s0 = inlined_call_operand.vmem [shape: f32[2,1,32], index: 0, kind: input, shape index: {}]   ;;  %s1990_s1 = inlined_call_operand.vmem [shape: f32[2,1,32], index: 1, kind: input, shape index: {}]   ;;  %s1991_s2 = inlined_call_operand.vmem [shape: f32[2,1,32], index: 2, kind: input, shape index: {}]   ;;  %s1992_s3 = inlined_call_operand.vmem [shape: f32[2,32,96], index: 3, kind: input, shape index: {}]   ;;  %s1993_s4 = inlined_call_operand.vmem [shape: f32[2,1,96], index: 4, kind: input, shape index: {}]   ;;  %s1994_s5 = inlined_call_operand.vmem [shape: f32[2,32,32], index: 5, kind: input, shape index: {}]   ;;  %s1995_s6 = inlined_call_operand.vmem [shape: f32[2,1,32], index: 6, kind: input, shape index: {}]   ;;  %s1996_s7 = inlined_call_operand.vmem [shape: f32[2,1,32], index: 7, kind: input, shape index: {}]   ;;  %s1997_s8 = inlined_call_operand.vmem [shape: f32[2,1,32], index: 8, kind: input, shape index: {}]   ;;  %s1998_s9 = inlined_call_operand.vmem [shape: f32[2,32,128], index: 9, kind: input, shape index: {}]   ;;  %s1999_s10 = inlined_call_operand.vmem [shape: f32[2,1,128], index: 10, kind: input, shape index: {}]   ;;  %s2000_s11 = inlined_call_operand.vmem [shape: f32[2,128,32], index: 11, kind: input, shape index: {}]   ;;  %s2001_s12 = inlined_call_operand.vmem [shape: f32[2,1,32], index: 12, kind: input, shape index: {}]   ;;  %s2002_s13 = inlined_call_operand.vmem [shape: f32[2,2,1,32], index: 13, kind: output, shape index: {0}]   ;;  %s2003_s14 = inlined_call_operand.vmem [shape: f32[2,2,1,32], index: 14, kind: output, shape index: {1}]  }
   0x1   :  { %s1708_s15 = smov 0  }
   0x2 LB: > { %s1717_s16 = sadd.s32 4294967295, %s1620_s15   ;;  %s1719_s17 = sadd.s32 1, %s1620_s15   ;;  %s1620_s15 = sphi %s1708_s15, %s2009_s15   ;;  %s1616_s30 = sphi %s1706_s30, %s2008_s30   ;;  %s1612_s29 = sphi %s1704_s29, %s2007_s29  }
   0x3   : > { %s307_s18 = ssub.s32 %s1620_s15, %s1719_s17  ;;  %s310_s19 = sadd.s32 1, %s1616_s30 }
   0x4   : > { %p308_p0 = scmp.eq.s32.totalorder %s307_s18, 0  ;;  %p320_p1 = scmp.ne.s32.totalorder %s1616_s30, %s1612_s29 }
   0x5   : > { %p321_p2 = scmp.eq.s32.totalorder %s1717_s16, 1  ;;  %p1390_p3 = scmp.ge.s32.totalorder %s1620_s15, 1 }
   0x6   : > { %s1727_s20 = scalar_select %p308_p0, %s1616_s30, %s310_s19  }
   0x7   : > { %p1729_p4 = por %p321_p2, %p320_p1  ;;  %p413_p5 = scmp.lt.s32.totalorder %s1620_s15, 3 }
   0x9   : > { %p414_p6 = pnand %p1390_p3, %p413_p5 }
   0xa   : > { %p460_p7 = scmp.lt.s32.totalorder (!%p414_p6), %s1717_s16, 1  ;;  %s2004_s18 = smov (!%p414_p6), 96  }
   0xb   : > { %417 = sbr.rel (%p414_p6) target bundleno = 2672 (0xa70), region = 72  ;;  %s451_s19 = sand.u32 (!%p414_p6), 1, %s1612_s29  }
   0xc   : > { %s1625_s24 = smov (!%p414_p6), 112   ;;  %s1627_s29 = smov (!%p414_p6), 48  }
   0xd   : > { %s2006_s28 = smov (!%p414_p6), 96  }
  0x10   : > { %s461_s22 = scalar_select %p460_p7, %s1717_s16, 1  ;;  %vm505_vm0 = vcmask 253952   ;;  %v474_v7 = vld [vmem:[%s1992_s3 + $0x18] sm:$0xff]  ;;  %v1622_v8 = vmov 0.0   ;;  %v473_v9 = vld [vmem:[%s1992_s3 + $0x10] sm:$0xff]  ;;  %vm1623_vm1 = vmmov 0   ;;  %v464_v32 = vlaneseq }
  0x11   : > { %1457 = vmatprep.subr.mxu1 %v1622_v8  ;;  %1465 = vmatprep.mubr.msk.f32.mxu1 %vm1623_vm1, %v1622_v8  ;;  %v472_v10 = vld [vmem:[%s1992_s3 + $0x8] sm:$0xff]  ;;  %v471_v11 = vld [vmem:[%s1992_s3] sm:$0xff]  ;;  %vm522_vm2 = vcmask 261120   ;;  %vm602_vm3 = vcmask 122880   ;;  %v1628_v29 = vmov 0   ;;  %vm617_vm5 = vcmask 1040384  }
  0x12   : > { %s462_s25 = scalar_lea.vmem %s1989_s0, %s461_s22  ;;  %1458 = vmatpush3.msra.mxu1 %v474_v7  ;;  %1485 = vmatprep.subr.mxu0 %v1622_v8  ;;  %v469_v16 = vld [vmem:[%s1990_s1] sm:$0x1]  ;;  %s1780_s22 = sshll.u32 %s451_s19, 1  ;;  %v465_v33 = vshrl.u32 %v464_v32, 7  ;;  %v467_v34 = vand.u32 127, %v464_v32  ;;  %vm613_vm6 = vcmask 7168  }
  0x13   : > { %v1738_v0 = vld [vmem:[%s462_s25] sm:$0x1]  ;;  %1459 = vmatprep.subr.mxu1 %v1622_v8  ;;  %1489 = vmatprep.mubr.msk.f32.mxu0 %vm1623_vm1, %v1622_v8  ;;  %s1783_s23 = scalar_lea.vmem [#allocation2], %s1780_s22  ;;  %s1626_s25 = smov 64   ;;  %v477_v43 = vld [vmem:[%s1994_s5 + $0x8] sm:$0xff]  ;;  %v479_v50 = vld [vmem:[%s1994_s5 + $0x18] sm:$0xff] }
  0x14   : > { %v506_v1 = vsel %vm505_vm0, %v1738_v0, 0.0  ;;  %1460 = vmatpush3.msra.mxu1 %v473_v9  ;;  %v470_v18 = vld [vmem:[%s1991_s2] sm:$0x1]  ;;  %1580 = vset.pattern.permute.xlu0 %v1628_v29  ;;  %vm468_vm4 = vcmp.le.s32.totalorder %v467_v34, %v465_v33  ;;  %s1792_s26 = scalar_lea.vmem [#allocation3], %s1780_s22  ;;  %v478_v52 = vld [vmem:[%s1994_s5 + $0x10] sm:$0xff]  ;;  %vm793_vm7 = vcmask 130048   ;;  %s1234_s22 = scalar_lea.vmem (%p1729_p4), %s2002_s13, %s1717_s16 }
  0x15   : > { %507 = vadd.xlane.f32.xlu0 %v506_v1  ;;  %1461 = vmatprep.subr.mxu1 %v1622_v8  ;;  %v475_v21 = vld [vmem:[%s1993_s4] sm:$0x1]  ;;  %v495_v33 = vld [vmem:[%s2000_s11 + $0x38] sm:$0xff]  ;;  %v494_v34 = vld [vmem:[%s2000_s11 + $0x30] sm:$0xff] }
  0x16   : > { %1462 = vmatpush3.msra.mxu1 %v472_v10  ;;  %1581 = vset.pattern.permute.xlu1 %v1628_v29  ;;  %v476_v44 = vld [vmem:[%s1994_s5] sm:$0xff]  ;;  %v499_v29 = vld [vmem:[%s2000_s11 + $0x58] sm:$0xff] }
  0x17   : > { %1463 = vmatprep.subr.mxu1 %v1622_v8  ;;  %1486 = vmatpush3.msra.mxu0 %v477_v43  ;;  %v496_v32 = vld [vmem:[%s2000_s11 + $0x40] sm:$0xff] }
  0x18   : > { %1464 = vmatpush3.msra.mxu1 %v471_v11  ;;  %1487 = vmatprep.subr.mxu0 %v1622_v8 }
  0x19   : > { %1468 = vmatprep.subr.mxu1 %v1622_v8  ;;  %1488 = vmatpush3.msra.mxu0 %v476_v44 }
  0x1a   : > { %1503 = vmatprep.subr.mxu0 %v1622_v8 }
  0x9e   : > { %v508_v2 = vpop.xlane.xlu0 %507 }
  0x9f   : > { %v510_v3 = vmul.f32 0.03125, %v508_v2  ;;  %v480_v2 = vld [vmem:[%s1995_s6] sm:$0x1] }
  0xa1   : > { %v511_v4 = vsub.f32 %v1738_v0, %v510_v3 }
  0xa3   : > { %v512_v5 = vmul.f32 %v511_v4, %v511_v4 }
  0xa5   : > { %v513_v6 = vsel %vm505_vm0, %v512_v5, 0.0 }
  0xa6   : > { %514 = vadd.xlane.f32.xlu0 %v513_v6 }
 0x12f   : > { %v515_v12 = vpop.xlane.xlu0 %514 }
 0x130   : > { %v516_v13 = vmul.f32 0.03125, %v515_v12 }
 0x132   : > { %v517_v14 = vadd.f32 1e-05, %v516_v13  ;;  %v486_v13 = vld [vmem:[%s1998_s9 + $0x18] sm:$0xff] }
 0x134   : > { %1582 = vrsqrt.f32 %v517_v14  ;;  %v484_v14 = vld [vmem:[%s1998_s9 + $0x8] sm:$0xff] }
 0x141   : > { %v1583_v15 = vpop.eup %1582 }
 0x142   : > { %v519_v17 = vmul.f32 %v1583_v15, %v511_v4  ;;  %v483_v15 = vld [vmem:[%s1998_s9] sm:$0xff] }
 0x144   : > { %v520_v19 = vmul.f32 %v519_v17, %v469_v16 }
 0x146   : > { %v521_v20 = vadd.f32 %v520_v19, %v470_v18 }
 0x148   : > { %1466 = vmatmul.mubr.msk.f32.vlgmr.msra.gmra.mxu1 %vm522_vm2, %v521_v20  ;;  %v481_v20 = vld [vmem:[%s1996_s7] sm:$0x1] }
 0x149   : > { %1470 = vmatprep.mubr.msk.f32.mxu1 %vm1623_vm1, %v1622_v8 }
 0x208   : > { %v592_v22 = vpop.f32.mrf.mxu1 }
 0x209   : > { %v593_v23 = vadd.f32 %v592_v22, %v475_v21  ;;  %v482_v22 = vld [vmem:[%s1997_s8] sm:$0x1] }
 0x20a   : > { %v1467_v24 = vpop.f32.mrf.mxu1 }
 0x20b   : > { %598 = vrot.lane.b32.xlu1 %v593_v23, %s2004_s18  ;;  %v596_v25 = vmul.f32 0.25, %v593_v23 }
 0x27d   : > { %v599_v26 = vpop.permute.xlu1 %598 }
 0x27e   : > { %v601_v27 = vmul.f32 %v599_v26, %v596_v25  ;;  %1110 = vst.msk [vmem:[%s1783_s23] sm:$0x1] %vm505_vm0, %v599_v26  ;;  %v503_v25 = vld [vmem:[%s2000_s11 + $0x78] sm:$0xff]  ;;  %v502_v26 = vld [vmem:[%s2000_s11 + $0x70] sm:$0xff] }
 0x280   : > { %698 = vrot.lane.b32.xlu1 %v601_v27, %s1625_s24  ;;  %v603_v28 = vsel %vm602_vm3, %v601_v27, 0.0  ;;  %v501_v27 = vld [vmem:[%s2000_s11 + $0x68] sm:$0xff] }
 0x281   : > { %604 = vadd.xlane.f32.xlu0 %v603_v28  ;;  %v500_v28 = vld [vmem:[%s2000_s11 + $0x60] sm:$0xff] }
 0x297   : > { %611 = vrot.lane.b32.xlu0 %v593_v23, %s1626_s25 }
 0x29b   : > { %709 = vrot.lane.b32.xlu0 %v593_v23, %s1627_s29 }
 0x2f2   : > { %v699_v30 = vpop.permute.xlu1 %698 }
 0x2f3   : > { %v701_v31 = vsel %vm602_vm3, %v699_v30, 0.0  ;;  %v498_v30 = vld [vmem:[%s2000_s11 + $0x50] sm:$0xff] }
 0x2f4   : > { %702 = vadd.xlane.f32.xlu1 %v701_v31  ;;  %v497_v31 = vld [vmem:[%s2000_s11 + $0x48] sm:$0xff] }
 0x30a   : > { %v605_v35 = vpop.xlane.xlu0 %604 }
 0x30b   : > { %v606_v36 = vsel %vm468_vm4, %v605_v35, -1e+30  ;;  %v493_v35 = vld [vmem:[%s2000_s11 + $0x28] sm:$0xff] }
 0x30c   : > { %v607_v37 = vsub.f32 %v606_v36, %v606_v36  ;;  %v492_v36 = vld [vmem:[%s2000_s11 + $0x20] sm:$0xff] }
 0x30e   : > { %v608_v38 = vmul.f32 1.442695, %v607_v37  ;;  %v612_v39 = vpop.permute.xlu0 %611  ;;  %v491_v37 = vld [vmem:[%s2000_s11 + $0x18] sm:$0xff] }
 0x30f   : > { %1112 = vst.msk [vmem:[%s1792_s26] sm:$0x1] %vm505_vm0, %v612_v39  ;;  %1469 = vmatpush3.msk.msra.mxu1 %vm617_vm5, %v612_v39  ;;  %v489_v39 = vld [vmem:[%s2000_s11 + $0x8] sm:$0xff] }
 0x310   : > { %1584 = vpow2.f32 %v608_v38  ;;  %1473 = vmatprep.subr.mxu1 %v1622_v8  ;;  %v490_v38 = vld [vmem:[%s2000_s11 + $0x10] sm:$0xff] }
 0x312   : > { %v710_v41 = vpop.permute.xlu0 %709 }
 0x31d   : > { %v1585_v40 = vpop.eup %1584 }
 0x31e   : > { %1586 = vrcp.f32 %v1585_v40  ;;  %1471 = vmatmul.mubr.msk.f32.vlgmr.msra.gmra.mxu1 %vm613_vm6, %v1585_v40  ;;  %v488_v40 = vld [vmem:[%s2000_s11] sm:$0xff] }
 0x31f   : > { %1474 = vmatpush3.msk.msra.mxu1 %vm617_vm5, %v710_v41  ;;  %1475 = vmatprep.mubr.msk.f32.mxu1 %vm1623_vm1, %v1622_v8  ;;  %v487_v41 = vld [vmem:[%s1999_s10] sm:$0x1] }
 0x320   : > { %1478 = vmatprep.subr.mxu1 %v1622_v8 }
 0x32b   : > { %v1587_v42 = vpop.eup %1586 }
 0x32c   : > { %693 = vperm.xlu0 %1580, %v1587_v42  }
 0x37d   : > { %v703_v45 = vpop.xlane.xlu1 %702 }
 0x37e   : > { %v704_v46 = vsel %vm468_vm4, %v703_v45, -1e+30 }
 0x37f   : > { %v705_v47 = vsub.f32 %v704_v46, %v704_v46 }
 0x381   : > { %v706_v48 = vmul.f32 1.442695, %v705_v47 }
 0x383   : > { %1588 = vpow2.f32 %v706_v48 }
 0x390   : > { %v1589_v49 = vpop.eup %1588 }
 0x391   : > { %1590 = vrcp.f32 %v1589_v49  ;;  %1476 = vmatmul.mubr.msk.f32.vlgmr.msra.gmra.mxu1 %vm613_vm6, %v1589_v49 }
 0x392   : > { %1482 = vmatprep.mubr.msk.f32.mxu1 %vm1623_vm1, %v1622_v8  ;;  %1479 = vmatpush3.msra.mxu1 %v479_v50 }
 0x393   : > { %1480 = vmatprep.subr.mxu1 %v1622_v8 }
 0x394   : > { %1481 = vmatpush3.msra.mxu1 %v478_v52 }
 0x395   : > { %1492 = vmatprep.subr.mxu1 %v1622_v8 }
 0x39e   : > { %v1591_v51 = vpop.eup %1590 }
 0x39f   : > { %789 = vperm.xlu1 %1581, %v1591_v51  }
 0x3a7   : > { %v694_v53 = vpop.permute.xlu0 %693 }
 0x3de   : > { %v686_v54 = vpop.f32.mrf.mxu1 }
 0x3df   : > { %v696_v55 = vmul.f32 %v694_v53, %v686_v54  ;;  %v504_v54 = vld [vmem:[%s2001_s12] sm:$0x1] }
 0x3e0   : > { %v1472_v56 = vpop.f32.mrf.mxu1 }
 0x3e1   : > { %1490 = vmatmul.mubr.msk.f32.vlgmr.msra.gmra.mxu0 %vm793_vm7, %v696_v55 }
 0x3e2   : > { %1535 = vmatprep.mubr.msk.f32.mxu0 %vm1623_vm1, %v1622_v8  ;;  %1504 = vmatpush3.msra.mxu0 %v503_v25 }
 0x3e3   : > { %1505 = vmatprep.subr.mxu0 %v1622_v8 }
 0x3e4   : > { %1506 = vmatpush3.msra.mxu0 %v502_v26 }
 0x3e5   : > { %1507 = vmatprep.subr.mxu0 %v1622_v8 }
 0x3e6   : > { %1508 = vmatpush3.msra.mxu0 %v501_v27 }
 0x3e7   : > { %1509 = vmatprep.subr.mxu0 %v1622_v8 }
 0x3e8   : > { %1510 = vmatpush3.msra.mxu0 %v500_v28 }
 0x3e9   : > { %1511 = vmatprep.subr.mxu0 %v1622_v8 }
 0x3ea   : > { %1512 = vmatpush3.msra.mxu0 %v499_v29 }
 0x3eb   : > { %1513 = vmatprep.subr.mxu0 %v1622_v8 }
 0x3ec   : > { %1514 = vmatpush3.msra.mxu0 %v498_v30 }
 0x3ed   : > { %1515 = vmatprep.subr.mxu0 %v1622_v8 }
 0x3ee   : > { %1516 = vmatpush3.msra.mxu0 %v497_v31 }
 0x3ef   : > { %1517 = vmatprep.subr.mxu0 %v1622_v8 }
 0x3f0   : > { %1518 = vmatpush3.msra.mxu0 %v496_v32 }
 0x3f1   : > { %1519 = vmatprep.subr.mxu0 %v1622_v8 }
 0x3f2   : > { %1520 = vmatpush3.msra.mxu0 %v495_v33 }
 0x3f3   : > { %1521 = vmatprep.subr.mxu0 %v1622_v8 }
 0x3f4   : > { %1522 = vmatpush3.msra.mxu0 %v494_v34 }
 0x3f5   : > { %1523 = vmatprep.subr.mxu0 %v1622_v8 }
 0x3f6   : > { %1524 = vmatpush3.msra.mxu0 %v493_v35 }
 0x3f7   : > { %1525 = vmatprep.subr.mxu0 %v1622_v8 }
 0x3f8   : > { %1526 = vmatpush3.msra.mxu0 %v492_v36 }
 0x3f9   : > { %1527 = vmatprep.subr.mxu0 %v1622_v8 }
 0x3fa   : > { %1528 = vmatpush3.msra.mxu0 %v491_v37 }
 0x3fb   : > { %1529 = vmatprep.subr.mxu0 %v1622_v8 }
 0x3fc   : > { %1530 = vmatpush3.msra.mxu0 %v490_v38 }
 0x3fd   : > { %1531 = vmatprep.subr.mxu0 %v1622_v8 }
 0x3fe   : > { %1532 = vmatpush3.msra.mxu0 %v489_v39 }
 0x3ff   : > { %1533 = vmatprep.subr.mxu0 %v1622_v8 }
 0x400   : > { %1534 = vmatpush3.msra.mxu0 %v488_v40 }
 0x41a   : > { %v790_v57 = vpop.permute.xlu1 %789 }
 0x451   : > { %v782_v58 = vpop.f32.mrf.mxu1 }
 0x452   : > { %v792_v59 = vmul.f32 %v790_v57, %v782_v58 }
 0x453   : > { %v1477_v60 = vpop.f32.mrf.mxu1 }
 0x454   : > { %1483 = vmatmul.mubr.msk.f32.vlgmr.msra.gmra.mxu1 %vm793_vm7, %v792_v59 }
 0x455   : > { %1500 = vmatprep.mubr.msk.f32.mxu1 %vm1623_vm1, %v1622_v8  ;;  %1493 = vmatpush3.msra.mxu1 %v486_v13  ;;  %v1402_v13 = vld [vmem:[%s1991_s2 + $0x1] sm:$0x1] }
 0x456   : > { %1494 = vmatprep.subr.mxu1 %v1622_v8 }
 0x4a1   : > { %v936_v61 = vpop.f32.mrf.mxu0 }
 0x4a3   : > { %v1491_v62 = vpop.f32.mrf.mxu0 }
 0x514   : > { %v863_v63 = vpop.f32.mrf.mxu1 }
 0x515   : > { %v937_v1 = vadd.f32 %v936_v61, %v863_v63 }
 0x516   : > { %v1484_v3 = vpop.f32.mrf.mxu1 }
 0x517   : > { %v940_v4 = vadd.f32 %v937_v1, %v1738_v0  ;;  %v485_v0 = vld [vmem:[%s1998_s9 + $0x10] sm:$0xff] }
 0x518   : > { %1495 = vmatpush3.msra.mxu1 %v485_v0  ;;  %v1405_v3 = vld [vmem:[%s1992_s3 + $0x30] sm:$0xff] }
 0x519   : > { %v1829_v5 = vadd.f32 %v940_v4, %v480_v2  ;;  %1496 = vmatprep.subr.mxu1 %v1622_v8  ;;  %v1406_v2 = vld [vmem:[%s1992_s3 + $0x38] sm:$0xff]  ;;  %v1404_v4 = vld [vmem:[%s1992_s3 + $0x28] sm:$0xff] }
 0x51a   : > { %1497 = vmatpush3.msra.mxu1 %v484_v14 }
 0x51b   : > { %v942_v6 = vsel %vm505_vm0, %v1829_v5, 0.0  ;;  %1498 = vmatprep.subr.mxu1 %v1622_v8 }
 0x51c   : > { %943 = vadd.xlane.f32.xlu0 %v942_v6  ;;  %1499 = vmatpush3.msra.mxu1 %v483_v15 }
 0x51d   : > { %1538 = vmatprep.subr.mxu1 %v1622_v8 }
 0x5a5   : > { %v944_v7 = vpop.xlane.xlu0 %943 }
 0x5a6   : > { %v945_v9 = vmul.f32 0.03125, %v944_v7 }
 0x5a8   : > { %v946_v10 = vsub.f32 %v1829_v5, %v945_v9 }
 0x5aa   : > { %v947_v11 = vmul.f32 %v946_v10, %v946_v10 }
 0x5ac   : > { %v948_v12 = vsel %vm505_vm0, %v947_v11, 0.0  ;;  %v1401_v11 = vld [vmem:[%s1990_s1 + $0x1] sm:$0x1] }
 0x5ad   : > { %949 = vadd.xlane.f32.xlu1 %v948_v12 }
 0x636   : > { %v950_v16 = vpop.xlane.xlu1 %949 }
 0x637   : > { %v951_v17 = vmul.f32 0.03125, %v950_v16 }
 0x639   : > { %v952_v18 = vadd.f32 1e-05, %v951_v17 }
 0x63b   : > { %1592 = vrsqrt.f32 %v952_v18 }
 0x648   : > { %v1593_v19 = vpop.eup %1592 }
 0x649   : > { %v954_v21 = vmul.f32 %v1593_v19, %v946_v10 }
 0x64b   : > { %v955_v23 = vmul.f32 %v954_v21, %v481_v20  ;;  %v1251_v20 = vld [vmem:[%s1783_s23] sm:$0x1] (%p1729_p4) }
 0x64c   : > { %1252 = vst [vmem:[%s1234_s22] sm:$0x1] (%p1729_p4), %v1251_v20 }
 0x64d   : > { %v956_v24 = vadd.f32 %v955_v23, %v482_v22 }
 0x64f   : > { %1501 = vmatmul.mubr.msk.f32.vlgmr.msra.gmra.mxu1 %vm522_vm2, %v956_v24 }
 0x650   : > { %1546 = vmatprep.mubr.msk.f32.mxu1 %vm1623_vm1, %v1622_v8  ;;  %1539 = vmatpush3.msra.mxu1 %v1406_v2 }
 0x651   : > { %1540 = vmatprep.subr.mxu1 %v1622_v8 }
 0x652   : > { %1541 = vmatpush3.msra.mxu1 %v1405_v3 }
 0x653   : > { %1542 = vmatprep.subr.mxu1 %v1622_v8 }
 0x654   : > { %1543 = vmatpush3.msra.mxu1 %v1404_v4 }
 0x655   : > { %1544 = vmatprep.subr.mxu1 %v1622_v8  ;;  %v1407_v8 = vld [vmem:[%s1993_s4 + $0x1] sm:$0x1] }
 0x70f   : > { %v1026_v42 = vpop.f32.mrf.mxu1 }
 0x710   : > { %v1027_v43 = vadd.f32 %v1026_v42, %v487_v41 }
 0x711   : > { %v1502_v44 = vpop.f32.mrf.mxu1 }
 0x712   : > { %v1030_v45 = vmul.f32 %v1027_v43, %v1027_v43 }
 0x714   : > { %v1031_v46 = vmul.f32 %v1030_v45, %v1027_v43 }
 0x716   : > { %v1032_v47 = vmul.f32 0.044715, %v1031_v46 }
 0x718   : > { %v1033_v48 = vadd.f32 %v1032_v47, %v1027_v43 }
 0x71a   : > { %v1034_v49 = vmul.f32 0.7978846, %v1033_v48 }
 0x71c   : > { %1594 = vtanh.f32 %v1034_v49 }
 0x729   : > { %v1595_v50 = vpop.eup %1594 }
 0x72a   : > { %v1036_v51 = vadd.f32 1.0, %v1595_v50 }
 0x72c   : > { %v1037_v52 = vmul.f32 0.5, %v1036_v51 }
 0x72e   : > { %v1038_v53 = vmul.f32 %v1037_v52, %v1027_v43 }
 0x730   : > { %1536 = vmatmul.mubr.f32.vlgmr.msra.gmra.mxu0 %v1038_v53 }
 0x7f0   : > { %v1105_v55 = vpop.f32.mrf.mxu0 }
 0x7f1   : > { %v1106_v56 = vadd.f32 %v1105_v55, %v504_v54 }
 0x7f2   : > { %v1537_v57 = vpop.f32.mrf.mxu0 }
 0x7f3   : > { %v1109_v58 = vadd.f32 %v1106_v56, %v1829_v5  ;;  %v1403_v5 = vld [vmem:[%s1992_s3 + $0x20] sm:$0xff] }
 0x7f4   : > { %1545 = vmatpush3.msra.mxu1 %v1403_v5 }
 0x7f5   : > { %v1124_v59 = vsel %vm505_vm0, %v1109_v58, 0.0 }
 0x7f6   : > { %1125 = vadd.xlane.f32.xlu0 %v1124_v59 }
 0x87f   : > { %v1126_v60 = vpop.xlane.xlu0 %1125 }
 0x880   : > { %v1127_v61 = vmul.f32 0.03125, %v1126_v60 }
 0x882   : > { %v1128_v62 = vsub.f32 %v1109_v58, %v1127_v61 }
 0x884   : > { %v1129_v63 = vmul.f32 %v1128_v62, %v1128_v62 }
 0x886   : > { %v1130_v1 = vsel %vm505_vm0, %v1129_v63, 0.0 }
 0x887   : > { %1131 = vadd.xlane.f32.xlu0 %v1130_v1 }
 0x910   : > { %v1132_v6 = vpop.xlane.xlu0 %1131 }
 0x911   : > { %v1133_v7 = vmul.f32 0.03125, %v1132_v6 }
 0x913   : > { %v1134_v9 = vadd.f32 1e-05, %v1133_v7 }
 0x915   : > { %1596 = vrsqrt.f32 %v1134_v9 }
 0x922   : > { %v1597_v10 = vpop.eup %1596 }
 0x923   : > { %v1136_v12 = vmul.f32 %v1597_v10, %v1128_v62 }
 0x925   : > { %v1137_v0 = vmul.f32 %v1401_v11, %v1136_v12 }
 0x927   : > { %v1138_v14 = vadd.f32 %v1402_v13, %v1137_v0 }
 0x929   : > { %1547 = vmatmul.mubr.msk.f32.vlgmr.msra.gmra.mxu1 %vm522_vm2, %v1138_v14 }
 0x9e9   : > { %v1208_v15 = vpop.f32.mrf.mxu1 }
 0x9ea   : > { %v1209_v16 = vadd.f32 %v1407_v8, %v1208_v15 }
 0x9eb   : > { %v1548_v17 = vpop.f32.mrf.mxu1 }
 0x9ec   : > { %1218 = vrot.lane.b32.xlu1 %v1209_v16, %s1626_s25  ;;  %1213 = vrot.lane.b32.xlu0 %v1209_v16, %s2006_s28 }
 0xa5b   : > { %1233 = sbr.rel (!%p1729_p4) target bundleno = 2664 (0xa68), region = 76 }
 0xa5e   : > { %v1219_v18 = vpop.permute.xlu1 %1218  ;;  %v1214_v19 = vpop.permute.xlu0 %1213 }
 0xa5f   : > { %1410 = vst.msk [vmem:[%s1792_s26 + $0x1] sm:$0x1] %vm505_vm0, %v1219_v18  ;;  %1409 = vst.msk [vmem:[%s1783_s23 + $0x1] sm:$0x1] %vm505_vm0, %v1214_v19 }
 0xa66   : > { %v1253_v21 = vld [vmem:[%s1783_s23 + $0x1] sm:$0x1] }
 0xa67   : > { %1254 = vst [vmem:[%s1234_s22 + $0x2] sm:$0x1] %v1253_v21 }
 0xa68 PF: > { %1274 = sbr.rel (!%p1729_p4) target bundleno = 2672 (0xa70), region = 110  ;;  %s1275_s29 = scalar_lea.vmem (%p1729_p4), %s2003_s14, %s1717_s16  ;;  %v1292_v22 = vld [vmem:[%s1792_s26] sm:$0x1] (%p1729_p4) }
 0xa69   : > { %1293 = vst [vmem:[%s1275_s29] sm:$0x1] (%p1729_p4), %v1292_v22 }
 0xa6e   : > { %v1294_v23 = vld [vmem:[%s1792_s26 + $0x1] sm:$0x1] }
 0xa6f   : > { %1295 = vst [vmem:[%s1275_s29 + $0x2] sm:$0x1] %v1294_v23 }
 0xa70 PF: > { %p22_p8 = scmp.ge.s32.totalorder %s1719_s17, 4   ;;  %s2007_s29 = smov %s1616_s30 }
 0xa71   : > { %s2008_s30 = smov %s1727_s20  ;;  %s2009_s15 = smov %s1719_s17 }
 0xa72   :  { %24 = sbr.rel (!%p22_p8) target bundleno = 2 (0x2), region = 188 }

// kernel: topic_model_forward.5
= control target key start
LH: loop header
LB: loop body
LE: loop exit
PB: predicated region body
PF: predicated region fallthrough
CT: control target
= control target key end

     0   :  { %s1952_s29 = smov 0   ;;  %s1954_s30 = smov 0   ;;  %s2249_s0 = inlined_call_operand.vmem [shape: f32[2,2,32], index: 0, kind: input, shape index: {}]   ;;  %s2250_s1 = inlined_call_operand.vmem [shape: f32[2,1,32], index: 1, kind: input, shape index: {}]   ;;  %s2251_s2 = inlined_call_operand.vmem [shape: f32[2,1,32], index: 2, kind: input, shape index: {}]   ;;  %s2252_s3 = inlined_call_operand.vmem [shape: f32[2,32,96], index: 3, kind: input, shape index: {}]   ;;  %s2253_s4 = inlined_call_operand.vmem [shape: f32[2,1,96], index: 4, kind: input, shape index: {}]   ;;  %s2254_s5 = inlined_call_operand.vmem [shape: f32[2,32,32], index: 5, kind: input, shape index: {}]   ;;  %s2255_s6 = inlined_call_operand.vmem [shape: f32[2,1,32], index: 6, kind: input, shape index: {}]   ;;  %s2256_s7 = inlined_call_operand.vmem [shape: f32[2,1,32], index: 7, kind: input, shape index: {}]   ;;  %s2257_s8 = inlined_call_operand.vmem [shape: f32[2,1,32], index: 8, kind: input, shape index: {}]   ;;  %s2258_s9 = inlined_call_operand.vmem [shape: f32[2,32,128], index: 9, kind: input, shape index: {}]   ;;  %s2259_s10 = inlined_call_operand.vmem [shape: f32[2,1,128], index: 10, kind: input, shape index: {}]   ;;  %s2260_s11 = inlined_call_operand.vmem [shape: f32[2,128,32], index: 11, kind: input, shape index: {}]   ;;  %s2261_s12 = inlined_call_operand.vmem [shape: f32[2,1,32], index: 12, kind: input, shape index: {}]   ;;  %s2262_s13 = inlined_call_operand.vmem [shape: f32[2,2,2,32], index: 13, kind: output, shape index: {0}]   ;;  %s2263_s14 = inlined_call_operand.vmem [shape: f32[2,2,2,32], index: 14, kind: output, shape index: {1}]  }
   0x1   :  { %s1956_s15 = smov 0  }
   0x2 LB: > { %s1965_s16 = sadd.s32 4294967295, %s1868_s15   ;;  %s1967_s17 = sadd.s32 1, %s1868_s15   ;;  %s1868_s15 = sphi %s1956_s15, %s2269_s15   ;;  %s1864_s30 = sphi %s1954_s30, %s2268_s30   ;;  %s1860_s29 = sphi %s1952_s29, %s2267_s29  }
   0x3   : > { %s307_s18 = ssub.s32 %s1868_s15, %s1967_s17  ;;  %s310_s19 = sadd.s32 1, %s1864_s30 }
   0x4   : > { %p308_p0 = scmp.eq.s32.totalorder %s307_s18, 0  ;;  %p320_p1 = scmp.ne.s32.totalorder %s1864_s30, %s1860_s29 }
   0x5   : > { %p321_p2 = scmp.eq.s32.totalorder %s1965_s16, 1  ;;  %p1608_p3 = scmp.ge.s32.totalorder %s1868_s15, 1 }
   0x6   : > { %s1975_s20 = scalar_select %p308_p0, %s1864_s30, %s310_s19  }
   0x7   : > { %p1977_p4 = por %p321_p2, %p320_p1  ;;  %p414_p5 = scmp.lt.s32.totalorder %s1868_s15, 3 }
   0x9   : > { %p415_p6 = pnand %p1608_p3, %p414_p5 }
   0xa   : > { %p462_p7 = scmp.lt.s32.totalorder (!%p415_p6), %s1965_s16, 1  ;;  %s1872_s19 = smov (!%p415_p6), 64  }
   0xb   : > { %418 = sbr.rel (%p415_p6) target bundleno = 3107 (0xc23), region = 72  ;;  %s1875_s24 = smov (!%p415_p6), 112  }
   0xc   : > { %s453_s25 = sand.u32 (!%p415_p6), 1, %s1860_s29   ;;  %s1876_s29 = smov (!%p415_p6), 48  }
   0xd   : > { %s2266_s18 = smov (!%p415_p6), 96  }
  0x10   : > { %s463_s22 = scalar_select %p462_p7, %s1965_s16, 1  ;;  %vm508_vm0 = vcmask 254976   ;;  %v477_v7 = vld [vmem:[%s2252_s3 + $0x18] sm:$0xff]  ;;  %v1870_v8 = vmov 0.0   ;;  %v476_v9 = vld [vmem:[%s2252_s3 + $0x10] sm:$0xff]  ;;  %vm1871_vm1 = vmmov 0   ;;  %v467_v28 = vlaneseq }
  0x11   : > { %1697 = vmatprep.subr.mxu0 %v1870_v8  ;;  %1705 = vmatprep.mubr.msk.f32.mxu0 %vm1871_vm1, %v1870_v8  ;;  %v475_v10 = vld [vmem:[%s2252_s3 + $0x8] sm:$0xff]  ;;  %v474_v11 = vld [vmem:[%s2252_s3] sm:$0xff]  ;;  %vm543_vm2 = vcmask 261120   ;;  %vm621_vm3 = vcmask 130048   ;;  %vm714_vm4 = vcmask 1041408   ;;  %vm698_vm6 = vcmask 9216  }
  0x12   : > { %s1611_s23 = sshll.u32 %s463_s22, 1  ;;  %1698 = vmatpush3.msra.mxu0 %v477_v7  ;;  %1723 = vmatprep.subr.mxu1 %v1870_v8  ;;  %v1612_v16 = vld [vmem:[%s2250_s1] ss:$0 sm:$0xff]  ;;  %s2264_s22 = smov 96   ;;  %v468_v29 = vshrl.u32 %v467_v28, 7  ;;  %v470_v30 = vand.u32 127, %v467_v28 }
  0x13   : > { %s465_s26 = scalar_lea.vmem %s2249_s0, %s1611_s23  ;;  %1699 = vmatprep.subr.mxu0 %v1870_v8  ;;  %1725 = vmatprep.mubr.msk.f32.mxu1 %vm1871_vm1, %v1870_v8  ;;  %v1613_v18 = vld [vmem:[%s2251_s2] ss:$0 sm:$0xff]  ;;  %s1874_s23 = smov 80   ;;  %vm710_vm7 = vcmask 15360   ;;  %v480_v53 = vld [vmem:[%s2254_s5 + $0x8] sm:$0xff]  ;;  %v482_v59 = vld [vmem:[%s2254_s5 + $0x18] sm:$0xff] }
  0x14   : > { %v1986_v0 = vld [vmem:[%s465_s26] sm:$0x3]  ;;  %1700 = vmatpush3.msra.mxu0 %v476_v9  ;;  %s1609_s26 = sshll.u32 %s453_s25, 2  ;;  %vm471_vm5 = vcmp.le.s32.totalorder %v470_v30, %v468_v29  ;;  %v481_v60 = vld [vmem:[%s2254_s5 + $0x10] sm:$0xff]  ;;  %v506_v30 = vld [vmem:[%s2260_s11 + $0x78] sm:$0xff] }
  0x15   : > { %v509_v1 = vsel %vm508_vm0, %v1986_v0, 0.0  ;;  %1701 = vmatprep.subr.mxu0 %v1870_v8  ;;  %v1614_v21 = vld [vmem:[%s2253_s4] ss:$0 sm:$0xff]  ;;  %s2029_s27 = scalar_lea.vmem [#allocation3], %s1609_s26  ;;  %s2033_s28 = scalar_lea.vmem [#allocation2], %s1609_s26 }
  0x16   : > { %510 = vadd.xlane.f32.xlu0 %v509_v1  ;;  %1702 = vmatpush3.msra.mxu0 %v475_v10  ;;  %v479_v56 = vld [vmem:[%s2254_s5] sm:$0xff] }
  0x17   : > { %1703 = vmatprep.subr.mxu0 %v1870_v8  ;;  %v1626_v7 = vld [vmem:[%s2255_s6] ss:$0 sm:$0xff] }
  0x18   : > { %1704 = vmatpush3.msra.mxu0 %v474_v11 }
  0x19   : > { %1708 = vmatprep.subr.mxu0 %v1870_v8 }
  0x9f   : > { %v511_v2 = vpop.xlane.xlu0 %510 }
  0xa0   : > { %v513_v3 = vmul.f32 0.03125, %v511_v2 }
  0xa2   : > { %v514_v4 = vsub.f32 %v1986_v0, %v513_v3 }
  0xa4   : > { %v515_v5 = vmul.f32 %v514_v4, %v514_v4 }
  0xa6   : > { %v516_v6 = vsel %vm508_vm0, %v515_v5, 0.0 }
  0xa7   : > { %517 = vadd.xlane.f32.xlu0 %v516_v6 }
 0x130   : > { %v518_v12 = vpop.xlane.xlu0 %517 }
 0x131   : > { %v519_v13 = vmul.f32 0.03125, %v518_v12 }
 0x133   : > { %v520_v14 = vadd.f32 1e-05, %v519_v13 }
 0x135   : > { %1830 = vrsqrt.f32 %v520_v14 }
 0x142   : > { %v1831_v15 = vpop.eup %1830 }
 0x143   : > { %v522_v17 = vmul.f32 %v1831_v15, %v514_v4 }
 0x145   : > { %v529_v19 = vmul.f32 %v1612_v16, %v522_v17 }
 0x147   : > { %v536_v20 = vadd.f32 %v1613_v18, %v529_v19  ;;  %v489_v18 = vld [vmem:[%s2258_s9 + $0x18] sm:$0xff]  ;;  %v487_v19 = vld [vmem:[%s2258_s9 + $0x8] sm:$0xff] }
 0x149   : > { %1706 = vmatmul.mubr.msk.f32.vlgmr.msra.gmra.mxu0 %vm543_vm2, %v536_v20  ;;  %v486_v20 = vld [vmem:[%s2258_s9] sm:$0xff] }
 0x14a   : > { %1710 = vmatprep.mubr.msk.f32.mxu0 %vm1871_vm1, %v1870_v8 }
 0x209   : > { %v613_v22 = vpop.f32.mrf.mxu0 }
 0x20a   : > { %v614_v23 = vadd.f32 %v1614_v21, %v613_v22 }
 0x20b   : > { %v1707_v24 = vpop.f32.mrf.mxu0 }
 0x20c   : > { %708 = vrot.lane.b32.xlu0 %v614_v23, %s1872_s19  ;;  %619 = vrot.lane.b32.xlu1 %v614_v23, %s2264_s22  ;;  %v617_v25 = vmul.f32 0.25, %v614_v23 }
 0x210   : > { %791 = vrot.lane.b32.xlu0 %v614_v23, %s1874_s23  ;;  %s1647_s23 = sshll.u32 (%p1977_p4), %s1965_s16, 1 }
 0x214   : > { %789 = vrot.lane.b32.xlu0 %v617_v25, %s1875_s24 }
 0x27e   : > { %v709_v26 = vpop.permute.xlu0 %708  ;;  %v620_v27 = vpop.permute.xlu1 %619 }
 0x27f   : > { %1305 = vst.msk [vmem:[%s2029_s27] sm:$0x3] %vm508_vm0, %v709_v26  ;;  %1303 = vst.msk [vmem:[%s2033_s28] sm:$0x3] %vm508_vm0, %v620_v27  ;;  %1709 = vmatpush3.xpose.msk.msra.mxu0 %vm621_vm3, %v620_v27  ;;  %v1628_v27 = vld [vmem:[%s2257_s8] ss:$0 sm:$0xff] }
 0x280   : > { %1713 = vmatprep.subr.mxu0 %v1870_v8 }
 0x282   : > { %1711 = vmatmul.mubr.msk.f32.vlgmr.msra.gmra.mxu0 %vm621_vm3, %v617_v25  ;;  %v792_v39 = vpop.permute.xlu0 %791  ;;  %v1627_v25 = vld [vmem:[%s2256_s7] ss:$0 sm:$0xff] }
 0x283   : > { %1714 = vmatpush3.msk.msra.mxu0 %vm714_vm4, %v709_v26  ;;  %1715 = vmatprep.mubr.msk.f32.mxu0 %vm1871_vm1, %v1870_v8 }
 0x284   : > { %1718 = vmatprep.subr.mxu0 %v1870_v8 }
 0x286   : > { %v790_v42 = vpop.permute.xlu0 %789 }
 0x342   : > { %v693_v31 = vpop.f32.mrf.mxu0 }
 0x343   : > { %v697_v32 = vsel %vm471_vm5, %v693_v31, -1e+30  ;;  %v505_v31 = vld [vmem:[%s2260_s11 + $0x70] sm:$0xff] }
 0x344   : > { %v1712_v33 = vpop.f32.mrf.mxu0  ;;  %v699_v34 = vsel %vm698_vm6, %v697_v32, -inf }
 0x345   : > { %700 = vmax.xlane.f32.xlu1 %v699_v34  ;;  %v503_v33 = vld [vmem:[%s2260_s11 + $0x60] sm:$0xff]  ;;  %v502_v34 = vld [vmem:[%s2260_s11 + $0x58] sm:$0xff] }
 0x356   : > { %877 = vrot.lane.b32.xlu1 %v614_v23, %s1876_s29 }
 0x3ce   : > { %v701_v35 = vpop.xlane.xlu1 %700 }
 0x3cf   : > { %v702_v36 = vsub.f32 %v697_v32, %v701_v35  ;;  %v504_v32 = vld [vmem:[%s2260_s11 + $0x68] sm:$0xff]  ;;  %v501_v35 = vld [vmem:[%s2260_s11 + $0x50] sm:$0xff] }
 0x3d1   : > { %v703_v37 = vmul.f32 1.442695, %v702_v36  ;;  %v500_v36 = vld [vmem:[%s2260_s11 + $0x48] sm:$0xff] }
 0x3d2   : > { %v878_v38 = vpop.permute.xlu1 %877 }
 0x3d3   : > { %1832 = vpow2.f32 %v703_v37  ;;  %1724 = vmatpush3.msk.msra.mxu1 %vm714_vm4, %v878_v38  ;;  %v499_v37 = vld [vmem:[%s2260_s11 + $0x40] sm:$0xff]  ;;  %v498_v38 = vld [vmem:[%s2260_s11 + $0x38] sm:$0xff] }
 0x3d4   : > { %1735 = vmatprep.subr.mxu1 %v1870_v8 }
 0x3e0   : > { %v1833_v40 = vpop.eup %1832 }
 0x3e1   : > { %1716 = vmatmul.mubr.msk.f32.vlgmr.msra.gmra.mxu0 %vm710_vm7, %v1833_v40  ;;  %v705_v41 = vsel %vm698_vm6, %v1833_v40, 0.0  ;;  %v496_v40 = vld [vmem:[%s2260_s11 + $0x28] sm:$0xff] }
 0x3e2   : > { %1719 = vmatpush3.xpose.msk.msra.mxu0 %vm621_vm3, %v792_v39  ;;  %706 = vadd.xlane.f32.xlu1 %v705_v41  ;;  %v497_v39 = vld [vmem:[%s2260_s11 + $0x30] sm:$0xff]  ;;  %v495_v41 = vld [vmem:[%s2260_s11 + $0x20] sm:$0xff] }
 0x3e3   : > { %1720 = vmatprep.mubr.msk.f32.mxu0 %vm1871_vm1, %v1870_v8  ;;  %1728 = vmatprep.subr.mxu0 %v1870_v8 }
 0x3e5   : > { %1721 = vmatmul.mubr.msk.f32.vlgmr.msra.gmra.mxu0 %vm621_vm3, %v790_v42  ;;  %v494_v42 = vld [vmem:[%s2260_s11 + $0x18] sm:$0xff] }
 0x3e6   : > { %1732 = vmatprep.mubr.msk.f32.mxu0 %vm1871_vm1, %v1870_v8  ;;  %1729 = vmatpush3.msra.mxu0 %v482_v59  ;;  %v1631_v59 = vld [vmem:[%s2261_s12] ss:$0 sm:$0xff] }
 0x3e7   : > { %1730 = vmatprep.subr.mxu0 %v1870_v8 }
 0x3e8   : > { %1731 = vmatpush3.msra.mxu0 %v481_v60 }
 0x3e9   : > { %1742 = vmatprep.subr.mxu0 %v1870_v8 }
 0x46b   : > { %v707_v52 = vpop.xlane.xlu1 %706 }
 0x4a1   : > { %v783_v43 = vpop.f32.mrf.mxu0 }
 0x4a3   : > { %v1717_v44 = vpop.f32.mrf.mxu0 }
 0x4a4   : > { %v492_v44 = vld [vmem:[%s2260_s11 + $0x8] sm:$0xff] }
 0x4a5   : > { %v863_v45 = vpop.f32.mrf.mxu0 }
 0x4a6   : > { %v867_v46 = vsel %vm471_vm5, %v863_v45, -1e+30  ;;  %v491_v45 = vld [vmem:[%s2260_s11] sm:$0xff] }
 0x4a7   : > { %v1722_v47 = vpop.f32.mrf.mxu0  ;;  %v868_v48 = vsel %vm698_vm6, %v867_v46, -inf }
 0x4a8   : > { %869 = vmax.xlane.f32.xlu0 %v868_v48 }
 0x531   : > { %v870_v49 = vpop.xlane.xlu0 %869 }
 0x532   : > { %v871_v50 = vsub.f32 %v867_v46, %v870_v49  ;;  %v1629_v46 = vld [vmem:[%s2259_s10] ss:$0 sm:$0xff] }
 0x534   : > { %v872_v51 = vmul.f32 1.442695, %v871_v50 }
 0x536   : > { %1834 = vpow2.f32 %v872_v51 }
 0x537   : > { %1836 = vrcp.f32 %v707_v52 }
 0x543   : > { %v1835_v54 = vpop.eup %1834 }
 0x544   : > { %1726 = vmatmul.mubr.msk.f32.vlgmr.msra.gmra.mxu1 %vm710_vm7, %v1835_v54  ;;  %v874_v55 = vsel %vm698_vm6, %v1835_v54, 0.0  ;;  %v1837_v57 = vpop.eup %1836 }
 0x545   : > { %1736 = vmatpush3.msra.mxu1 %v480_v53  ;;  %875 = vadd.xlane.f32.xlu0 %v874_v55  ;;  %v788_v58 = vmul.f32 %v1837_v57, %v783_v43  ;;  %v493_v43 = vld [vmem:[%s2260_s11 + $0x10] sm:$0xff] }
 0x546   : > { %1737 = vmatprep.subr.mxu1 %v1870_v8  ;;  %1739 = vmatprep.mubr.msk.f32.mxu1 %vm1871_vm1, %v1870_v8 }
 0x547   : > { %1738 = vmatpush3.msra.mxu1 %v479_v56 }
 0x548   : > { %1740 = vmatmul.mubr.msk.f32.vlgmr.msra.gmra.mxu1 %vm621_vm3, %v788_v58  ;;  %1753 = vmatprep.subr.mxu1 %v1870_v8 }
 0x549   : > { %1785 = vmatprep.mubr.msk.f32.mxu1 %vm1871_vm1, %v1870_v8  ;;  %1754 = vmatpush3.msra.mxu1 %v506_v30 }
 0x54a   : > { %1755 = vmatprep.subr.mxu1 %v1870_v8 }
 0x54b   : > { %1756 = vmatpush3.msra.mxu1 %v505_v31 }
 0x54c   : > { %1757 = vmatprep.subr.mxu1 %v1870_v8 }
 0x54d   : > { %1758 = vmatpush3.msra.mxu1 %v504_v32 }
 0x54e   : > { %1759 = vmatprep.subr.mxu1 %v1870_v8 }
 0x54f   : > { %1760 = vmatpush3.msra.mxu1 %v503_v33 }
 0x550   : > { %1761 = vmatprep.subr.mxu1 %v1870_v8 }
 0x551   : > { %1762 = vmatpush3.msra.mxu1 %v502_v34 }
 0x552   : > { %1763 = vmatprep.subr.mxu1 %v1870_v8 }
 0x553   : > { %1764 = vmatpush3.msra.mxu1 %v501_v35 }
 0x554   : > { %1765 = vmatprep.subr.mxu1 %v1870_v8 }
 0x555   : > { %1766 = vmatpush3.msra.mxu1 %v500_v36 }
 0x556   : > { %1767 = vmatprep.subr.mxu1 %v1870_v8 }
 0x557   : > { %1768 = vmatpush3.msra.mxu1 %v499_v37 }
 0x558   : > { %1769 = vmatprep.subr.mxu1 %v1870_v8 }
 0x559   : > { %1770 = vmatpush3.msra.mxu1 %v498_v38 }
 0x55a   : > { %1771 = vmatprep.subr.mxu1 %v1870_v8 }
 0x55b   : > { %1772 = vmatpush3.msra.mxu1 %v497_v39 }
 0x55c   : > { %1773 = vmatprep.subr.mxu1 %v1870_v8 }
 0x55d   : > { %1774 = vmatpush3.msra.mxu1 %v496_v40 }
 0x55e   : > { %1775 = vmatprep.subr.mxu1 %v1870_v8 }
 0x55f   : > { %1776 = vmatpush3.msra.mxu1 %v495_v41 }
 0x560   : > { %1777 = vmatprep.subr.mxu1 %v1870_v8 }
 0x561   : > { %1778 = vmatpush3.msra.mxu1 %v494_v42 }
 0x562   : > { %1779 = vmatprep.subr.mxu1 %v1870_v8 }
 0x563   : > { %1780 = vmatpush3.msra.mxu1 %v493_v43 }
 0x564   : > { %1781 = vmatprep.subr.mxu1 %v1870_v8 }
 0x565   : > { %1782 = vmatpush3.msra.mxu1 %v492_v44 }
 0x566   : > { %1783 = vmatprep.subr.mxu1 %v1870_v8 }
 0x567   : > { %1784 = vmatpush3.msra.mxu1 %v491_v45 }
 0x5ce   : > { %v876_v61 = vpop.xlane.xlu0 %875 }
 0x5cf   : > { %1838 = vrcp.f32 %v876_v61 }
 0x5dc   : > { %v1839_v62 = vpop.eup %1838 }
 0x604   : > { %v950_v63 = vpop.f32.mrf.mxu1 }
 0x605   : > { %v955_v1 = vmul.f32 %v1839_v62, %v950_v63 }
 0x606   : > { %v1727_v2 = vpop.f32.mrf.mxu1 }
 0x607   : > { %1733 = vmatmul.mubr.msk.f32.vlgmr.msra.gmra.mxu0 %vm621_vm3, %v955_v1 }
 0x608   : > { %v1098_v3 = vpop.f32.mrf.mxu1  ;;  %1750 = vmatprep.mubr.msk.f32.mxu0 %vm1871_vm1, %v1870_v8  ;;  %1743 = vmatpush3.msra.mxu0 %v489_v18  ;;  %v1640_v18 = vld [vmem:[%s2251_s2 + $0x1] ss:$0 sm:$0xff] }
 0x609   : > { %1744 = vmatprep.subr.mxu0 %v1870_v8 }
 0x60a   : > { %v1741_v4 = vpop.f32.mrf.mxu1 }
 0x6c7   : > { %v1025_v5 = vpop.f32.mrf.mxu0 }
 0x6c8   : > { %v1099_v6 = vadd.f32 %v1098_v3, %v1025_v5 }
 0x6c9   : > { %v1734_v9 = vpop.f32.mrf.mxu0 }
 0x6ca   : > { %v1102_v10 = vadd.f32 %v1099_v6, %v1986_v0  ;;  %v488_v0 = vld [vmem:[%s2258_s9 + $0x10] sm:$0xff] }
 0x6cb   : > { %1745 = vmatpush3.msra.mxu0 %v488_v0  ;;  %v1636_v9 = vld [vmem:[%s2252_s3 + $0x30] sm:$0xff] }
 0x6cc   : > { %v2089_v11 = vadd.f32 %v1626_v7, %v1102_v10  ;;  %1746 = vmatprep.subr.mxu0 %v1870_v8  ;;  %v1637_v7 = vld [vmem:[%s2252_s3 + $0x38] sm:$0xff]  ;;  %v1635_v10 = vld [vmem:[%s2252_s3 + $0x28] sm:$0xff] }
 0x6cd   : > { %1747 = vmatpush3.msra.mxu0 %v487_v19 }
 0x6ce   : > { %v1110_v12 = vsel %vm508_vm0, %v2089_v11, 0.0  ;;  %1748 = vmatprep.subr.mxu0 %v1870_v8 }
 0x6cf   : > { %1111 = vadd.xlane.f32.xlu0 %v1110_v12  ;;  %1749 = vmatpush3.msra.mxu0 %v486_v20 }
 0x6d0   : > { %1788 = vmatprep.subr.mxu0 %v1870_v8 }
 0x758   : > { %v1112_v13 = vpop.xlane.xlu0 %1111 }
 0x759   : > { %v1113_v14 = vmul.f32 0.03125, %v1112_v13 }
 0x75b   : > { %v1114_v15 = vsub.f32 %v2089_v11, %v1113_v14 }
 0x75d   : > { %v1115_v16 = vmul.f32 %v1114_v15, %v1114_v15 }
 0x75f   : > { %v1116_v17 = vsel %vm508_vm0, %v1115_v16, 0.0  ;;  %v1639_v16 = vld [vmem:[%s2250_s1 + $0x1] ss:$0 sm:$0xff] }
 0x760   : > { %1117 = vadd.xlane.f32.xlu0 %v1116_v17 }
 0x7e9   : > { %v1118_v21 = vpop.xlane.xlu0 %1117 }
 0x7ea   : > { %v1119_v22 = vmul.f32 0.03125, %v1118_v21 }
 0x7ec   : > { %v1120_v23 = vadd.f32 1e-05, %v1119_v22 }
 0x7ee   : > { %1840 = vrsqrt.f32 %v1120_v23 }
 0x7fb   : > { %v1841_v24 = vpop.eup %1840 }
 0x7fc   : > { %v1122_v26 = vmul.f32 %v1841_v24, %v1114_v15 }
 0x7fe   : > { %v1129_v28 = vmul.f32 %v1627_v25, %v1122_v26  ;;  %v1463_v25 = vld [vmem:[%s2033_s28] sm:$0x3] (%p1977_p4) }
 0x800   : > { %v1136_v29 = vadd.f32 %v1628_v27, %v1129_v28 }
 0x802   : > { %1751 = vmatmul.mubr.msk.f32.vlgmr.msra.gmra.mxu0 %vm543_vm2, %v1136_v29 }
 0x803   : > { %1796 = vmatprep.mubr.msk.f32.mxu0 %vm1871_vm1, %v1870_v8  ;;  %1789 = vmatpush3.msra.mxu0 %v1637_v7 }
 0x804   : > { %1790 = vmatprep.subr.mxu0 %v1870_v8 }
 0x805   : > { %1791 = vmatpush3.msra.mxu0 %v1636_v9 }
 0x806   : > { %1792 = vmatprep.subr.mxu0 %v1870_v8 }
 0x807   : > { %1793 = vmatpush3.msra.mxu0 %v1635_v10 }
 0x808   : > { %1794 = vmatprep.subr.mxu0 %v1870_v8  ;;  %v1641_v8 = vld [vmem:[%s2253_s4 + $0x1] ss:$0 sm:$0xff] }
 0x8c2   : > { %v1212_v47 = vpop.f32.mrf.mxu0 }
 0x8c3   : > { %v1213_v48 = vadd.f32 %v1629_v46, %v1212_v47 }
 0x8c4   : > { %v1752_v49 = vpop.f32.mrf.mxu0 }
 0x8c5   : > { %v1216_v50 = vmul.f32 %v1213_v48, %v1213_v48 }
 0x8c7   : > { %v1217_v51 = vmul.f32 %v1216_v50, %v1213_v48 }
 0x8c9   : > { %v1218_v52 = vmul.f32 0.044715, %v1217_v51 }
 0x8cb   : > { %v1219_v53 = vadd.f32 %v1218_v52, %v1213_v48 }
 0x8cd   : > { %v1220_v54 = vmul.f32 0.7978846, %v1219_v53 }
 0x8cf   : > { %1842 = vtanh.f32 %v1220_v54 }
 0x8dc   : > { %v1843_v55 = vpop.eup %1842 }
 0x8dd   : > { %v1222_v56 = vadd.f32 1.0, %v1843_v55 }
 0x8df   : > { %v1223_v57 = vmul.f32 0.5, %v1222_v56 }
 0x8e1   : > { %v1224_v58 = vmul.f32 %v1223_v57, %v1213_v48 }
 0x8e3   : > { %1786 = vmatmul.mubr.f32.vlgmr.msra.gmra.mxu1 %v1224_v58 }
 0x9a3   : > { %v1297_v60 = vpop.f32.mrf.mxu1 }
 0x9a4   : > { %v1298_v61 = vadd.f32 %v1631_v59, %v1297_v60 }
 0x9a5   : > { %v1787_v62 = vpop.f32.mrf.mxu1 }
 0x9a6   : > { %v1301_v63 = vadd.f32 %v1298_v61, %v2089_v11  ;;  %v1634_v11 = vld [vmem:[%s2252_s3 + $0x20] sm:$0xff] }
 0x9a7   : > { %1795 = vmatpush3.msra.mxu0 %v1634_v11 }
 0x9a8   : > { %v1317_v1 = vsel %vm508_vm0, %v1301_v63, 0.0 }
 0x9a9   : > { %1318 = vadd.xlane.f32.xlu0 %v1317_v1 }
 0xa32   : > { %v1319_v2 = vpop.xlane.xlu0 %1318 }
 0xa33   : > { %v1320_v3 = vmul.f32 0.03125, %v1319_v2 }
 0xa35   : > { %v1321_v4 = vsub.f32 %v1301_v63, %v1320_v3 }
 0xa37   : > { %v1322_v5 = vmul.f32 %v1321_v4, %v1321_v4 }
 0xa39   : > { %v1323_v6 = vsel %vm508_vm0, %v1322_v5, 0.0 }
 0xa3a   : > { %1324 = vadd.xlane.f32.xlu0 %v1323_v6 }
 0xac3   : > { %v1325_v12 = vpop.xlane.xlu0 %1324 }
 0xac4   : > { %v1326_v13 = vmul.f32 0.03125, %v1325_v12 }
 0xac6   : > { %v1327_v14 = vadd.f32 1e-05, %v1326_v13 }
 0xac8   : > { %1844 = vrsqrt.f32 %v1327_v14 }
 0xad5   : > { %v1845_v15 = vpop.eup %1844 }
 0xad6   : > { %v1329_v17 = vmul.f32 %v1845_v15, %v1321_v4 }
 0xad8   : > { %v1336_v0 = vmul.f32 %v1639_v16, %v1329_v17 }
 0xada   : > { %v1343_v19 = vadd.f32 %v1640_v18, %v1336_v0 }
 0xadc   : > { %1797 = vmatmul.mubr.msk.f32.vlgmr.msra.gmra.mxu0 %vm543_vm2, %v1343_v19 }
 0xb9c   : > { %v1419_v20 = vpop.f32.mrf.mxu0 }
 0xb9d   : > { %v1420_v21 = vadd.f32 %v1641_v8, %v1419_v20 }
 0xb9e   : > { %v1798_v22 = vpop.f32.mrf.mxu0 }
 0xb9f   : > { %1429 = vrot.lane.b32.xlu1 %v1420_v21, %s1872_s19  ;;  %1424 = vrot.lane.b32.xlu0 %v1420_v21, %s2266_s18  ;;  %s1446_s19 = scalar_lea.vmem (%p1977_p4), %s2262_s13, %s1647_s23 }
 0xba0   : > { %1464 = vst [vmem:[%s1446_s19] sm:$0x3] (%p1977_p4), %v1463_v25 }
 0xc0e   : > { %1444 = sbr.rel (!%p1977_p4) target bundleno = 3099 (0xc1b), region = 76 }
 0xc11   : > { %v1430_v23 = vpop.permute.xlu1 %1429  ;;  %v1425_v24 = vpop.permute.xlu0 %1424 }
 0xc12   : > { %1644 = vst.msk [vmem:[%s2029_s27 + $0x2] sm:$0x3] %vm508_vm0, %v1430_v23  ;;  %1643 = vst.msk [vmem:[%s2033_s28 + $0x2] sm:$0x3] %vm508_vm0, %v1425_v24 }
 0xc19   : > { %v1465_v26 = vld [vmem:[%s2033_s28 + $0x2] sm:$0x3] }
 0xc1a   : > { %1466 = vst [vmem:[%s1446_s19 + $0x4] sm:$0x3] %v1465_v26 }
 0xc1b PF: > { %1486 = sbr.rel (!%p1977_p4) target bundleno = 3107 (0xc23), region = 110  ;;  %s1648_s26 = sshll.u32 (%p1977_p4), %s1965_s16, 1  ;;  %v1505_v27 = vld [vmem:[%s2029_s27] sm:$0x3] (%p1977_p4) }
 0xc1c   : > { %s1488_s28 = scalar_lea.vmem (%p1977_p4), %s2263_s14, %s1648_s26 }
 0xc1d   : > { %1506 = vst [vmem:[%s1488_s28] sm:$0x3] (%p1977_p4), %v1505_v27 }
 0xc21   : > { %v1507_v28 = vld [vmem:[%s2029_s27 + $0x2] sm:$0x3] }
 0xc22   : > { %1508 = vst [vmem:[%s1488_s28 + $0x4] sm:$0x3] %v1507_v28 }
 0xc23 PF: > { %p22_p8 = scmp.ge.s32.totalorder %s1967_s17, 4   ;;  %s2267_s29 = smov %s1864_s30 }
 0xc24   : > { %s2268_s30 = smov %s1975_s20  ;;  %s2269_s15 = smov %s1967_s17 }
 0xc25   :  { %24 = sbr.rel (!%p22_p8) target bundleno = 2 (0x2), region = 188 }

// kernel: topic_model_forward.7
= control target key start
LH: loop header
LB: loop body
LE: loop exit
PB: predicated region body
PF: predicated region fallthrough
CT: control target
= control target key end

     0   :  { %s4801_s0 = inlined_call_operand.vmem [shape: f32[2,7,32], index: 0, kind: input, shape index: {}]   ;;  %s4802_s1 = inlined_call_operand.vmem [shape: f32[2,2,2,3,16], index: 1, kind: input, shape index: {}]   ;;  %s4803_s2 = inlined_call_operand.vmem [shape: f32[2,2,2,3,16], index: 2, kind: input, shape index: {}]   ;;  %s4804_s3 = inlined_call_operand.vmem [shape: s32[2,7,1], index: 3, kind: input, shape index: {}]   ;;  %s4805_s4 = inlined_call_operand.vmem [shape: s32[2,7,1], index: 4, kind: input, shape index: {}]   ;;  %s4806_s5 = inlined_call_operand.vmem [shape: f32[2,1,32], index: 5, kind: input, shape index: {}]   ;;  %s4807_s6 = inlined_call_operand.vmem [shape: f32[2,1,32], index: 6, kind: input, shape index: {}]   ;;  %s4808_s7 = inlined_call_operand.vmem [shape: f32[2,32,96], index: 7, kind: input, shape index: {}]   ;;  %s4809_s8 = inlined_call_operand.vmem [shape: f32[2,1,96], index: 8, kind: input, shape index: {}]   ;;  %s4810_s9 = inlined_call_operand.vmem [shape: f32[2,32,32], index: 9, kind: input, shape index: {}]   ;;  %s4811_s10 = inlined_call_operand.vmem [shape: f32[2,1,32], index: 10, kind: input, shape index: {}]   ;;  %s4812_s11 = inlined_call_operand.vmem [shape: f32[2,1,32], index: 11, kind: input, shape index: {}]   ;;  %s4813_s12 = inlined_call_operand.vmem [shape: f32[2,1,32], index: 12, kind: input, shape index: {}]   ;;  %s4814_s13 = inlined_call_operand.vmem [shape: f32[2,32,128], index: 13, kind: input, shape index: {}]   ;;  %s4815_s14 = inlined_call_operand.vmem [shape: f32[2,1,128], index: 14, kind: input, shape index: {}]   ;;  %s4816_s15 = inlined_call_operand.vmem [shape: f32[2,128,32], index: 15, kind: input, shape index: {}]   ;;  %s4817_s16 = inlined_call_operand.vmem [shape: f32[2,1,32], index: 16, kind: input, shape index: {}]   ;;  %s4818_s17 = inlined_call_operand.vmem [shape: f32[1,32], index: 17, kind: input, shape index: {}]   ;;  %s4819_s18 = inlined_call_operand.vmem [shape: f32[1,32], index: 18, kind: input, shape index: {}]   ;;  %s4820_s19 = inlined_call_operand.vmem [shape: f32[64,32], index: 19, kind: input, shape index: {}]   ;;  %s4821_s20 = inlined_call_operand.vmem [shape: f32[2,1,1], index: 20, kind: output, shape index: {0}]   ;;  %s4822_s21 = inlined_call_operand.vmem [shape: f32[2,1,1], index: 21, kind: output, shape index: {1}]  }
   0x1   :  { %4827 = sst [smem:[#allocation6_spill]] %s4801_s0 }
   0x2   :  { %4828 = sst [smem:[#allocation7_spill]] %s4802_s1 }
   0x3   :  { %4829 = sst [smem:[#allocation8_spill]] %s4803_s2 }
   0x4   :  { %4830 = sst [smem:[#allocation9_spill]] %s4804_s3 }
   0x5   :  { %4831 = sst [smem:[#allocation10_spill]] %s4805_s4 }
   0x6   :  { %4832 = sst [smem:[#allocation11_spill]] %s4806_s5 }
   0x7   :  { %4833 = sst [smem:[#allocation12_spill]] %s4819_s18 }
   0x8   :  { %4834 = sst [smem:[#allocation13_spill]] %s4821_s20 }
   0x9   :  { %4835 = sst [smem:[#allocation14_spill]] %s4822_s21 }
   0xa   :  { %s4171_s2 = smov 0   ;;  %s4173_s25 = smov 0  }
   0xb   :  { %s4175_s26 = smov 0  }
   0xc LB: > { %s4188_s3 = sadd.s32 1, %s4051_s26   ;;  %s65_s29 = sadd.s32 1, %s4047_s25  ;;  %s4051_s26 = sphi %s4175_s26, %s4851_s26   ;;  %s4047_s25 = sphi %s4173_s25, %s4854_s25   ;;  %s4043_s2 = sphi %s4171_s2, %s4853_s2  }
   0xd   : > { %4836 = sst [smem:[#allocation4_spill]] %s4188_s3  ;;  %s62_s28 = ssub.s32 %s4051_s26, %s4188_s3 }
   0xe   : > { %p63_p0 = scmp.eq.s32.totalorder %s62_s28, 0  ;;  %p72_p1 = scmp.ne.s32.totalorder %s4047_s25, %s4043_s2 }
   0xf   : > { %p73_p2 = scmp.eq.s32.totalorder %s4051_s26, 0  ;;  %p3482_p4 = scmp.ge.s32.totalorder %s4051_s26, 2 }
  0x10   : > { %s4197_s0 = scalar_select %p63_p0, %s4047_s25, %s65_s29  }
  0x11   : > { %p4199_p3 = por %p73_p2, %p72_p1  ;;  %588 = sbr.rel (%p3482_p4) target bundleno = 44 (0x2c), region = 76 }
  0x12   : > { %4837 = sst [smem:[#allocation5_spill]] %s4197_s0 }
  0x16   : > { %598 = sbr.rel (!%p4199_p3) target bundleno = 33 (0x21), region = 84  ;;  %s600_s30 = sand.u32 (%p4199_p3), 1, %s4047_s25  }
  0x17   : > { %s3604_s5 = sshll.u32 (%p4199_p3), %s4051_s26, 3  ;;  %s3483_s22 = sshll.u32 (%p4199_p3), %s600_s30, 4 }
  0x18   : > { %s4839_s24 = sld [smem:[#allocation7_spill]] (%p4199_p3)  ;;  %s602_s29 = scalar_lea.vmem (%p4199_p3), [#allocation2], %s3483_s22 }
  0x1e   : > { %s605_s28 = scalar_lea.vmem %s4839_s24, %s3604_s5 }
  0x1f   : > { %v622_v0 = vld [vmem:[%s605_s28] sm:$0xff]   ;;  %v626_v1 = vld [vmem:[%s605_s28 + $0x10] sm:$0xff]  }
  0x20   : > { %623 = vst [vmem:[%s602_s29] sm:$0xff] %v622_v0   ;;  %627 = vst [vmem:[%s602_s29 + $0x8] sm:$0xff] %v626_v1  }
  0x21 PF: > { %661 = sbr.rel (!%p4199_p3) target bundleno = 44 (0x2c), region = 125  ;;  %s663_s27 = sand.u32 (%p4199_p3), 1, %s4047_s25  }
  0x22   : > { %s3605_s0 = sshll.u32 (%p4199_p3), %s4051_s26, 3  ;;  %s3486_s3 = sshll.u32 (%p4199_p3), %s663_s27, 4 }
  0x23   : > { %s4840_s21 = sld [smem:[#allocation8_spill]] (%p4199_p3)  ;;  %s665_s5 = scalar_lea.vmem (%p4199_p3), [#allocation3], %s3486_s3 }
  0x29   : > { %s668_s18 = scalar_lea.vmem %s4840_s21, %s3605_s0 }
  0x2a   : > { %v685_v2 = vld [vmem:[%s668_s18] sm:$0xff]   ;;  %v689_v3 = vld [vmem:[%s668_s18 + $0x10] sm:$0xff]  }
  0x2b   : > { %686 = vst [vmem:[%s665_s5] sm:$0xff] %v685_v2   ;;  %690 = vst [vmem:[%s665_s5 + $0x8] sm:$0xff] %v689_v3  }
  0x2c PF: > { %p3489_p5 = scmp.ge.s32.totalorder %s4051_s26, 1  ;;  %p737_p6 = scmp.lt.s32.totalorder %s4051_s26, 3 }
  0x2e   : > { %p738_p7 = pnand %p3489_p5, %p737_p6 }
  0x2f   : > { %s4841_s4 = sadd.s32 (!%p738_p7), 4294967295, %s4051_s26   ;;  %s4843_s3 = sld [smem:[#allocation6_spill]] (!%p738_p7) }
  0x30   : > { %741 = sbr.rel (%p738_p7) target bundleno = 5821 (0x16bd), region = 174  ;;  %p827_p8 = scmp.lt.s32.totalorder (!%p738_p7), %s4841_s4, 1 }
  0x31   : > { %s4842_s27 = smov (!%p738_p7), %s4841_s4  ;;  %s4844_s20 = sld [smem:[#allocation11_spill]] (!%p738_p7) }
  0x32   : > { %s4055_s22 = smov (!%p738_p7), 96   ;;  %s744_s23 = sand.u32 (!%p738_p7), 1, %s4043_s2  }
  0x33   : > { %s4278_s1 = sshll.u32 (!%p738_p7), %s744_s23, 4  ;;  %s4056_s2 = smov (!%p738_p7), 64  }
  0x34   : > { %s4284_s24 = scalar_lea.vmem (!%p738_p7), [#allocation2], %s4278_s1  ;;  %s4309_s28 = scalar_lea.vmem (!%p738_p7), [#allocation3], %s4278_s1 }
  0x35   : > { %s4856_s27 = smov (!%p827_p8, %s4842_s27), 1  ;;  %vm891_vm0 = vcmask 260096   ;;  %v856_v11 = vld [vmem:[%s4808_s7 + $0x18] sm:$0xff]  ;;  %v4053_v12 = vmov 0.0   ;;  %v855_v13 = vld [vmem:[%s4808_s7 + $0x10] sm:$0xff]  ;;  %vm4054_vm1 = vmmov 0   ;;  %v846_v32 = vlaneseq }
  0x36   : > { %s4227_s18 = sshll.u32 %s4856_s27, 3  ;;  %3713 = vmatprep.subr.mxu0 %v4053_v12  ;;  %3721 = vmatprep.mubr.msk.f32.mxu0 %vm4054_vm1, %v4053_v12  ;;  %v854_v14 = vld [vmem:[%s4808_s7 + $0x8] sm:$0xff]  ;;  %v853_v15 = vld [vmem:[%s4808_s7] sm:$0xff]  ;;  %vm926_vm2 = vcmask 261120   ;;  %vm1004_vm3 = vcmask 130048   ;;  %vm1154_vm5 = vcmask 55296  }
  0x37   : > { %s830_s0 = scalar_lea.vmem %s4843_s3, %s4227_s18  ;;  %3714 = vmatpush3.msra.mxu0 %v856_v11  ;;  %3724 = vmatprep.subr.mxu1 %v4053_v12  ;;  %v3495_v20 = vld [vmem:[%s4844_s20] ss:$0 sm:$0xff]  ;;  %v4295_v33 = vshrl.u32 %v846_v32, 7  ;;  %v4297_v34 = vand.u32 127, %v846_v32  ;;  %vm1158_vm6 = vcmask 22528   ;;  %vm1180_vm7 = vcmask 1042432  }
  0x38   : > { %v4233_v4 = vld [vmem:[%s830_s0] sm:$0x7f]  ;;  %3715 = vmatprep.subr.mxu0 %v4053_v12  ;;  %3726 = vmatprep.mubr.msk.f32.mxu1 %vm4054_vm1, %v4053_v12  ;;  %s4057_s29 = smov 80   ;;  %s4058_s30 = smov 112   ;;  %vm1176_vm8 = vcmask 23552   ;;  %vm1260_vm9 = vcmask 1046528  }
  0x39   : > { %v892_v5 = vsel %vm891_vm0, %v4233_v4, 0.0  ;;  %3716 = vmatpush3.msra.mxu0 %v855_v13  ;;  %v3496_v22 = vld [vmem:[%s4807_s6] ss:$0 sm:$0xff]  ;;  %vm850_vm4 = vcmp.le.s32.totalorder %v4297_v34, %v4295_v33  ;;  %vm1256_vm10 = vcmask 56320   ;;  %v888_v54 = vld [vmem:[%s4284_s24 + $0x4] sm:$0x7] }
  0x3a   : > { %893 = vadd.xlane.f32.xlu0 %v892_v5  ;;  %3717 = vmatprep.subr.mxu0 %v4053_v12  ;;  %v3497_v25 = vld [vmem:[%s4809_s8] ss:$0 sm:$0xff]  ;;  %s4826_s5 = smov 48   ;;  %s4846_s26 = sld [smem:[#allocation12_spill]]  ;;  %vm3303_vm11 = vcmask 522240   ;;  %vm3329_vm13 = vcmask 6144  }
  0x3b   : > { %3718 = vmatpush3.msra.mxu0 %v854_v14  ;;  %v887_v31 = vld [vmem:[%s4284_s24] sm:$0x7]  ;;  %s4849_s21 = sld [smem:[#allocation14_spill]]  ;;  %vm3337_vm14 = vcmask 0  }
  0x3c   : > { %3719 = vmatprep.subr.mxu0 %v4053_v12  ;;  %v889_v42 = vld [vmem:[%s4309_s28] sm:$0x7] }
  0x3d   : > { %3720 = vmatpush3.msra.mxu0 %v853_v15 }
  0x3e   : > { %3744 = vmatprep.subr.mxu0 %v4053_v12 }
  0x41   : > { %s844_s3 = scalar_lea.vmem %s4849_s21, %s4856_s27 }
  0xc3   : > { %v894_v6 = vpop.xlane.xlu0 %893 }
  0xc4   : > { %v896_v7 = vmul.f32 0.03125, %v894_v6  ;;  %v890_v6 = vld [vmem:[%s4309_s28 + $0x4] sm:$0x7] }
  0xc6   : > { %v897_v8 = vsub.f32 %v4233_v4, %v896_v7 }
  0xc8   : > { %v898_v9 = vmul.f32 %v897_v8, %v897_v8 }
  0xca   : > { %v899_v10 = vsel %vm891_vm0, %v898_v9, 0.0 }
  0xcb   : > { %900 = vadd.xlane.f32.xlu0 %v899_v10 }
 0x154   : > { %v901_v16 = vpop.xlane.xlu0 %900 }
 0x155   : > { %v902_v17 = vmul.f32 0.03125, %v901_v16 }
 0x157   : > { %v903_v18 = vadd.f32 1e-05, %v902_v17 }
 0x159   : > { %3987 = vrsqrt.f32 %v903_v18  ;;  %v859_v18 = vld [vmem:[%s4810_s9 + $0x8] sm:$0xff] }
 0x166   : > { %v3988_v19 = vpop.eup %3987 }
 0x167   : > { %v905_v21 = vmul.f32 %v3988_v19, %v897_v8 }
 0x169   : > { %v912_v23 = vmul.f32 %v3495_v20, %v905_v21  ;;  %v858_v21 = vld [vmem:[%s4810_s9] sm:$0xff] }
 0x16b   : > { %v919_v24 = vadd.f32 %v3496_v22, %v912_v23 }
 0x16d   : > { %3722 = vmatmul.mubr.msk.f32.vlgmr.msra.gmra.mxu0 %vm926_vm2, %v919_v24 }
 0x16e   : > { %3746 = vmatprep.mubr.msk.f32.mxu0 %vm4054_vm1, %v4053_v12 }
 0x22d   : > { %v996_v26 = vpop.f32.mrf.mxu0 }
 0x22e   : > { %v4273_v27 = vadd.f32 %v3497_v25, %v996_v26 }
 0x22f   : > { %v3723_v28 = vpop.f32.mrf.mxu0 }
 0x230   : > { %1002 = vrot.lane.b32.xlu1 %v4273_v27, %s4055_s22  ;;  %v1000_v30 = vmul.f32 0.25, %v4273_v27  ;;  %v861_v28 = vld [vmem:[%s4810_s9 + $0x18] sm:$0xff] }
 0x2a2   : > { %v1003_v29 = vpop.permute.xlu1 %1002 }
 0x2a3   : > { %3725 = vmatpush3.xpose.msk.msra.mxu1 %vm1004_vm3, %v1003_v29  ;;  %v860_v29 = vld [vmem:[%s4810_s9 + $0x10] sm:$0xff] }
 0x2a4   : > { %3729 = vmatprep.subr.mxu1 %v4053_v12 }
 0x2a6   : > { %3727 = vmatmul.mubr.msk.f32.vlgmr.msra.gmra.mxu1 %vm1004_vm3, %v1000_v30 }
 0x2a7   : > { %3730 = vmatpush3.xpose.msk.msra.mxu1 %vm1004_vm3, %v887_v31  ;;  %3731 = vmatprep.mubr.msk.f32.mxu1 %vm4054_vm1, %v4053_v12 }
 0x2a8   : > { %3734 = vmatprep.subr.mxu1 %v4053_v12 }
 0x2aa   : > { %3732 = vmatmul.mubr.msk.f32.vlgmr.msra.gmra.mxu1 %vm1004_vm3, %v1000_v30 }
 0x2ab   : > { %3736 = vmatprep.mubr.msk.f32.mxu1 %vm4054_vm1, %v4053_v12  ;;  %3735 = vmatpush3.msk.msra.mxu1 %vm1180_vm7, %v889_v42 }
 0x2ac   : > { %3739 = vmatprep.subr.mxu1 %v4053_v12 }
 0x366   : > { %v1076_v35 = vpop.f32.mrf.mxu1 }
 0x367   : > { %v1080_v36 = vsel %vm850_vm4, %v1076_v35, -1e+30 }
 0x368   : > { %v3728_v37 = vpop.f32.mrf.mxu1  ;;  %v1155_v38 = vsel %vm1154_vm5, %v1080_v36, -inf }
 0x369   : > { %1156 = vmax.xlane.f32.xlu1 %v1155_v38 }
 0x36a   : > { %v1150_v39 = vpop.f32.mrf.mxu1 }
 0x36b   : > { %v1159_v40 = vsel %vm1158_vm6, %v1150_v39, -inf }
 0x36c   : > { %1160 = vmax.xlane.f32.xlu0 %v1159_v40  ;;  %v3733_v41 = vpop.f32.mrf.mxu1 }
 0x382   : > { %1254 = vrot.lane.b32.xlu0 %v4273_v27, %s4056_s2 }
 0x386   : > { %1337 = vrot.lane.b32.xlu0 %v4273_v27, %s4057_s29 }
 0x38a   : > { %1335 = vrot.lane.b32.xlu0 %v1000_v30, %s4058_s30 }
 0x3f2   : > { %v1157_v43 = vpop.xlane.xlu1 %1156 }
 0x3f5   : > { %v1161_v44 = vpop.xlane.xlu0 %1160 }
 0x3f6   : > { %v1162_v45 = vmax.f32 %v1157_v43, %v1161_v44 }
 0x3f8   : > { %v1166_v46 = vsub.f32 %v1150_v39, %v1162_v45  ;;  %v1163_v47 = vsub.f32 %v1080_v36, %v1162_v45 }
 0x3f9   : > { %v1255_v48 = vpop.permute.xlu0 %1254 }
 0x3fa   : > { %v1167_v49 = vmul.f32 1.442695, %v1166_v46  ;;  %v1164_v50 = vmul.f32 1.442695, %v1163_v47  ;;  %v3517_v46 = vld [vmem:[%s4811_s10] ss:$0 sm:$0xff] }
 0x3fc   : > { %3989 = vpow2.f32 %v1167_v49 }
 0x3fd   : > { %v1338_v51 = vpop.permute.xlu0 %1337  ;;  %3991 = vpow2.f32 %v1164_v50 }
 0x3fe   : > { %3745 = vmatpush3.xpose.msk.msra.mxu0 %vm1004_vm3, %v1338_v51 }
 0x3ff   : > { %3754 = vmatprep.subr.mxu0 %v4053_v12 }
 0x401   : > { %v1336_v52 = vpop.permute.xlu0 %1335 }
 0x402   : > { %3747 = vmatmul.mubr.msk.f32.vlgmr.msra.gmra.mxu0 %vm1004_vm3, %v1336_v52 }
 0x403   : > { %3756 = vmatprep.mubr.msk.f32.mxu0 %vm4054_vm1, %v4053_v12  ;;  %3755 = vmatpush3.msk.msra.mxu0 %vm1180_vm7, %v890_v6  ;;  %v884_v6 = vld [vmem:[%s4816_s15 + $0x70] sm:$0xff] }
 0x404   : > { %3764 = vmatprep.subr.mxu0 %v4053_v12 }
 0x409   : > { %v3990_v53 = vpop.eup %3989 }
 0x40a   : > { %3737 = vmatmul.mubr.msk.f32.vlgmr.msra.gmra.mxu1 %vm1176_vm8, %v3990_v53  ;;  %v3992_v55 = vpop.eup %3991  ;;  %v1172_v5 = vsel %vm1158_vm6, %v3990_v53, 0.0 }
 0x40b   : > { %3740 = vmatpush3.msk.msra.mxu1 %vm1260_vm9, %v1255_v48  ;;  %3741 = vmatprep.mubr.msk.f32.mxu1 %vm4054_vm1, %v4053_v12  ;;  %v1169_v7 = vsel %vm1154_vm5, %v3992_v55, 0.0 }
 0x40c   : > { %3749 = vmatprep.subr.mxu1 %v4053_v12 }
 0x40e   : > { %3742 = vmatmul.mubr.msk.f32.vlgmr.msra.gmra.mxu1 %vm1256_vm10, %v3992_v55 }
 0x40f   : > { %3750 = vmatpush3.xpose.msk.msra.mxu1 %vm1004_vm3, %v888_v54  ;;  %3751 = vmatprep.mubr.msk.f32.mxu1 %vm4054_vm1, %v4053_v12 }
 0x410   : > { %3759 = vmatprep.subr.mxu1 %v4053_v12 }
 0x412   : > { %3752 = vmatmul.mubr.msk.f32.vlgmr.msra.gmra.mxu1 %vm1004_vm3, %v1336_v52 }
 0x413   : > { %3761 = vmatprep.mubr.msk.f32.mxu1 %vm4054_vm1, %v4053_v12 }
 0x4c2   : > { %v1409_v56 = vpop.f32.mrf.mxu0 }
 0x4c3   : > { %v1413_v57 = vsel %vm850_vm4, %v1409_v56, -1e+30  ;;  %v868_v56 = vld [vmem:[%s4814_s13 + $0x18] sm:$0xff] }
 0x4c4   : > { %v3748_v58 = vpop.f32.mrf.mxu0  ;;  %v1487_v59 = vsel %vm1154_vm5, %v1413_v57, -inf }
 0x4c5   : > { %1488 = vmax.xlane.f32.xlu1 %v1487_v59  ;;  %v865_v58 = vld [vmem:[%s4814_s13] sm:$0xff] }
 0x4ca   : > { %v1250_v60 = vpop.f32.mrf.mxu1 }
 0x4cc   : > { %v3738_v61 = vpop.f32.mrf.mxu1 }
 0x4ce   : > { %v1329_v62 = vpop.f32.mrf.mxu1 }
 0x4cf   : > { %v1330_v63 = vadd.f32 %v1329_v62, %v1250_v60 }
 0x4d0   : > { %v3743_v0 = vpop.f32.mrf.mxu1 }
 0x4d2   : > { %v1483_v1 = vpop.f32.mrf.mxu1 }
 0x4d3   : > { %v1490_v2 = vsel %vm1158_vm6, %v1483_v1, -inf }
 0x4d4   : > { %1491 = vmax.xlane.f32.xlu0 %v1490_v2  ;;  %v3753_v3 = vpop.f32.mrf.mxu1 }
 0x4d6   : > { %1583 = vrot.lane.b32.xlu1 %v4273_v27, %s4826_s5  ;;  %s4847_s5 = sld [smem:[#allocation9_spill]] }
 0x4d8   : > { %1173 = vadd.xlane.f32.xlu0 %v1172_v5  ;;  %v885_v5 = vld [vmem:[%s4816_s15 + $0x78] sm:$0xff] }
 0x4dc   : > { %s834_s4 = scalar_lea.vmem %s4847_s5, %s4227_s18 }
 0x4fa   : > { %1170 = vadd.xlane.f32.xlu1 %v1169_v7  ;;  %v883_v7 = vld [vmem:[%s4816_s15 + $0x68] sm:$0xff] }
 0x54e   : > { %v1489_v8 = vpop.xlane.xlu1 %1488 }
 0x552   : > { %v1584_v9 = vpop.permute.xlu1 %1583 }
 0x553   : > { %3760 = vmatpush3.msk.msra.mxu1 %vm1260_vm9, %v1584_v9  ;;  %v881_v9 = vld [vmem:[%s4816_s15 + $0x58] sm:$0xff] }
 0x554   : > { %3771 = vmatprep.subr.mxu1 %v4053_v12 }
 0x55d   : > { %v1492_v10 = vpop.xlane.xlu0 %1491 }
 0x55e   : > { %v1493_v11 = vmax.f32 %v1489_v8, %v1492_v10  ;;  %v882_v8 = vld [vmem:[%s4816_s15 + $0x60] sm:$0xff]  ;;  %v880_v10 = vld [vmem:[%s4816_s15 + $0x50] sm:$0xff] }
 0x560   : > { %v1494_v13 = vsub.f32 %v1413_v57, %v1493_v11  ;;  %v1497_v14 = vsub.f32 %v1483_v1, %v1493_v11  ;;  %v866_v57 = vld [vmem:[%s4814_s13 + $0x8] sm:$0xff]  ;;  %v3519_v1 = vld [vmem:[%s4813_s12] ss:$0 sm:$0xff] }
 0x561   : > { %v1174_v23 = vpop.xlane.xlu0 %1173  ;;  %v879_v11 = vld [vmem:[%s4816_s15 + $0x48] sm:$0xff] }
 0x562   : > { %v1495_v15 = vmul.f32 1.442695, %v1494_v13  ;;  %v1498_v16 = vmul.f32 1.442695, %v1497_v14  ;;  %v878_v13 = vld [vmem:[%s4816_s15 + $0x40] sm:$0xff]  ;;  %v877_v14 = vld [vmem:[%s4816_s15 + $0x38] sm:$0xff] }
 0x564   : > { %3993 = vpow2.f32 %v1495_v15  ;;  %v876_v15 = vld [vmem:[%s4816_s15 + $0x30] sm:$0xff] }
 0x565   : > { %3995 = vpow2.f32 %v1498_v16  ;;  %v875_v16 = vld [vmem:[%s4816_s15 + $0x28] sm:$0xff] }
 0x571   : > { %v3994_v17 = vpop.eup %3993 }
 0x572   : > { %v3996_v19 = vpop.eup %3995  ;;  %3762 = vmatmul.mubr.msk.f32.vlgmr.msra.gmra.mxu1 %vm1256_vm10, %v3994_v17  ;;  %v1500_v20 = vsel %vm1154_vm5, %v3994_v17, 0.0  ;;  %v874_v17 = vld [vmem:[%s4816_s15 + $0x20] sm:$0xff] }
 0x573   : > { %3757 = vmatmul.mubr.msk.f32.vlgmr.msra.gmra.mxu0 %vm1176_vm8, %v3996_v19  ;;  %1501 = vadd.xlane.f32.xlu0 %v1500_v20  ;;  %v1503_v22 = vsel %vm1158_vm6, %v3996_v19, 0.0  ;;  %v872_v19 = vld [vmem:[%s4816_s15 + $0x10] sm:$0xff]  ;;  %v871_v20 = vld [vmem:[%s4816_s15 + $0x8] sm:$0xff] }
 0x574   : > { %3772 = vmatpush3.msra.mxu1 %v859_v18  ;;  %3775 = vmatprep.mubr.msk.f32.mxu1 %vm4054_vm1, %v4053_v12  ;;  %v873_v18 = vld [vmem:[%s4816_s15 + $0x18] sm:$0xff] }
 0x575   : > { %3773 = vmatprep.subr.mxu1 %v4053_v12  ;;  %3768 = vmatprep.mubr.msk.f32.mxu0 %vm4054_vm1, %v4053_v12 }
 0x576   : > { %3774 = vmatpush3.msra.mxu1 %v858_v21  ;;  %3765 = vmatpush3.msra.mxu0 %v861_v28  ;;  %v870_v21 = vld [vmem:[%s4816_s15] sm:$0xff] }
 0x577   : > { %1504 = vadd.xlane.f32.xlu0 %v1503_v22  ;;  %3789 = vmatprep.subr.mxu1 %v4053_v12  ;;  %v3520_v22 = vld [vmem:[%s4815_s14] ss:$0 sm:$0xff] }
 0x578   : > { %3766 = vmatprep.subr.mxu0 %v4053_v12 }
 0x579   : > { %3767 = vmatpush3.msra.mxu0 %v860_v29 }
 0x57a   : > { %3778 = vmatprep.subr.mxu0 %v4053_v12 }
 0x583   : > { %v1171_v24 = vpop.xlane.xlu1 %1170 }
 0x584   : > { %v1175_v25 = vadd.f32 %v1174_v23, %v1171_v24 }
 0x586   : > { %3997 = vrcp.f32 %v1175_v25 }
 0x593   : > { %v3998_v26 = vpop.eup %3997 }
 0x594   : > { %v1334_v27 = vmul.f32 %v3998_v26, %v1330_v63  ;;  %v3518_v63 = vld [vmem:[%s4812_s11] ss:$0 sm:$0xff] }
 0x596   : > { %3776 = vmatmul.mubr.msk.f32.vlgmr.msra.gmra.mxu1 %vm1004_vm3, %v1334_v27 }
 0x597   : > { %3821 = vmatprep.mubr.msk.f32.mxu1 %vm4054_vm1, %v4053_v12  ;;  %3790 = vmatpush3.msra.mxu1 %v885_v5 }
 0x598   : > { %3791 = vmatprep.subr.mxu1 %v4053_v12 }
 0x599   : > { %3792 = vmatpush3.msra.mxu1 %v884_v6 }
 0x59a   : > { %3793 = vmatprep.subr.mxu1 %v4053_v12 }
 0x59b   : > { %3794 = vmatpush3.msra.mxu1 %v883_v7 }
 0x59c   : > { %3795 = vmatprep.subr.mxu1 %v4053_v12 }
 0x59d   : > { %3796 = vmatpush3.msra.mxu1 %v882_v8 }
 0x59e   : > { %3797 = vmatprep.subr.mxu1 %v4053_v12 }
 0x59f   : > { %3798 = vmatpush3.msra.mxu1 %v881_v9 }
 0x5a0   : > { %3799 = vmatprep.subr.mxu1 %v4053_v12 }
 0x5a1   : > { %3800 = vmatpush3.msra.mxu1 %v880_v10 }
 0x5a2   : > { %3801 = vmatprep.subr.mxu1 %v4053_v12 }
 0x5a3   : > { %3802 = vmatpush3.msra.mxu1 %v879_v11 }
 0x5a4   : > { %3803 = vmatprep.subr.mxu1 %v4053_v12 }
 0x5a5   : > { %3804 = vmatpush3.msra.mxu1 %v878_v13 }
 0x5a6   : > { %3805 = vmatprep.subr.mxu1 %v4053_v12 }
 0x5a7   : > { %3806 = vmatpush3.msra.mxu1 %v877_v14 }
 0x5a8   : > { %3807 = vmatprep.subr.mxu1 %v4053_v12 }
 0x5a9   : > { %3808 = vmatpush3.msra.mxu1 %v876_v15 }
 0x5aa   : > { %3809 = vmatprep.subr.mxu1 %v4053_v12 }
 0x5ab   : > { %3810 = vmatpush3.msra.mxu1 %v875_v16 }
 0x5ac   : > { %3811 = vmatprep.subr.mxu1 %v4053_v12 }
 0x5ad   : > { %3812 = vmatpush3.msra.mxu1 %v874_v17  ;;  %v3561_v17 = vld [vmem:[%s4309_s28 + $0x8] sm:$0x7] }
 0x5ae   : > { %3813 = vmatprep.subr.mxu1 %v4053_v12 }
 0x5af   : > { %3814 = vmatpush3.msra.mxu1 %v873_v18 }
 0x5b0   : > { %3815 = vmatprep.subr.mxu1 %v4053_v12 }
 0x5b1   : > { %3816 = vmatpush3.msra.mxu1 %v872_v19 }
 0x5b2   : > { %3817 = vmatprep.subr.mxu1 %v4053_v12 }
 0x5b3   : > { %3818 = vmatpush3.msra.mxu1 %v871_v20 }
 0x5b4   : > { %3819 = vmatprep.subr.mxu1 %v4053_v12 }
 0x5b5   : > { %3820 = vmatpush3.msra.mxu1 %v870_v21 }
 0x5b6   : > { %3860 = vmatprep.subr.mxu1 %v4053_v12 }
 0x5fc   : > { %v1502_v30 = vpop.xlane.xlu0 %1501 }
 0x600   : > { %v1505_v31 = vpop.xlane.xlu0 %1504 }
 0x601   : > { %v1506_v32 = vadd.f32 %v1505_v31, %v1502_v30 }
 0x603   : > { %3999 = vrcp.f32 %v1506_v32 }
 0x610   : > { %v4000_v39 = vpop.eup %3999 }
 0x632   : > { %v1656_v35 = vpop.f32.mrf.mxu1 }
 0x633   : > { %v1579_v36 = vpop.f32.mrf.mxu0 }
 0x634   : > { %v1657_v37 = vadd.f32 %v1656_v35, %v1579_v36  ;;  %v3763_v38 = vpop.f32.mrf.mxu1 }
 0x635   : > { %v3758_v40 = vpop.f32.mrf.mxu0 }
 0x636   : > { %v1661_v41 = vmul.f32 %v4000_v39, %v1657_v37  ;;  %v3522_v37 = vld [vmem:[%s4817_s16] ss:$0 sm:$0xff] }
 0x638   : > { %3769 = vmatmul.mubr.msk.f32.vlgmr.msra.gmra.mxu0 %vm1004_vm3, %v1661_v41 }
 0x639   : > { %3786 = vmatprep.mubr.msk.f32.mxu0 %vm4054_vm1, %v4053_v12  ;;  %3779 = vmatpush3.msra.mxu0 %v868_v56  ;;  %v3563_v56 = vld [vmem:[%s4844_s20 + $0x1] ss:$0 sm:$0xff] }
 0x63a   : > { %3780 = vmatprep.subr.mxu0 %v4053_v12 }
 0x656   : > { %v1804_v42 = vpop.f32.mrf.mxu1 }
 0x658   : > { %v3777_v43 = vpop.f32.mrf.mxu1 }
 0x6f8   : > { %v1731_v44 = vpop.f32.mrf.mxu0 }
 0x6f9   : > { %v1805_v45 = vadd.f32 %v1804_v42, %v1731_v44 }
 0x6fa   : > { %v3770_v47 = vpop.f32.mrf.mxu0 }
 0x6fb   : > { %v1808_v48 = vadd.f32 %v1805_v45, %v4233_v4  ;;  %v867_v4 = vld [vmem:[%s4814_s13 + $0x10] sm:$0xff] }
 0x6fc   : > { %3781 = vmatpush3.msra.mxu0 %v867_v4 }
 0x6fd   : > { %v4384_v49 = vadd.f32 %v3517_v46, %v1808_v48  ;;  %3782 = vmatprep.subr.mxu0 %v4053_v12  ;;  %v3528_v48 = vld [vmem:[%s4808_s7 + $0x38] sm:$0xff] }
 0x6fe   : > { %3783 = vmatpush3.msra.mxu0 %v866_v57  ;;  %v3564_v57 = vld [vmem:[%s4807_s6 + $0x1] ss:$0 sm:$0xff] }
 0x6ff   : > { %v1816_v50 = vsel %vm891_vm0, %v4384_v49, 0.0  ;;  %3784 = vmatprep.subr.mxu0 %v4053_v12 }
 0x700   : > { %1817 = vadd.xlane.f32.xlu0 %v1816_v50  ;;  %3785 = vmatpush3.msra.mxu0 %v865_v58  ;;  %v3526_v50 = vld [vmem:[%s4808_s7 + $0x28] sm:$0xff] }
 0x701   : > { %3824 = vmatprep.subr.mxu0 %v4053_v12 }
 0x789   : > { %v1818_v51 = vpop.xlane.xlu0 %1817 }
 0x78a   : > { %v1819_v52 = vmul.f32 0.03125, %v1818_v51  ;;  %v3525_v51 = vld [vmem:[%s4808_s7 + $0x20] sm:$0xff] }
 0x78c   : > { %v1820_v53 = vsub.f32 %v4384_v49, %v1819_v52 }
 0x78e   : > { %v1821_v54 = vmul.f32 %v1820_v53, %v1820_v53 }
 0x790   : > { %v1822_v55 = vsel %vm891_vm0, %v1821_v54, 0.0 }
 0x791   : > { %1823 = vadd.xlane.f32.xlu0 %v1822_v55 }
 0x81a   : > { %v1824_v59 = vpop.xlane.xlu0 %1823 }
 0x81b   : > { %v1825_v60 = vmul.f32 0.03125, %v1824_v59 }
 0x81d   : > { %v1826_v61 = vadd.f32 1e-05, %v1825_v60  ;;  %v3560_v60 = vld [vmem:[%s4284_s24 + $0xc] sm:$0x7] }
 0x81f   : > { %4001 = vrsqrt.f32 %v1826_v61  ;;  %v3565_v61 = vld [vmem:[%s4809_s8 + $0x1] ss:$0 sm:$0xff] }
 0x82c   : > { %v4002_v62 = vpop.eup %4001 }
 0x82d   : > { %v1828_v0 = vmul.f32 %v4002_v62, %v1820_v53 }
 0x82f   : > { %v1835_v2 = vmul.f32 %v3518_v63, %v1828_v0 }
 0x831   : > { %v1842_v3 = vadd.f32 %v3519_v1, %v1835_v2 }
 0x833   : > { %3787 = vmatmul.mubr.msk.f32.vlgmr.msra.gmra.mxu0 %vm926_vm2, %v1842_v3  ;;  %v3559_v3 = vld [vmem:[%s4284_s24 + $0x8] sm:$0x7] }
 0x834   : > { %3832 = vmatprep.mubr.msk.f32.mxu0 %vm4054_vm1, %v4053_v12  ;;  %3825 = vmatpush3.msra.mxu0 %v3528_v48 }
 0x835   : > { %3826 = vmatprep.subr.mxu0 %v4053_v12 }
 0x8f3   : > { %v1918_v23 = vpop.f32.mrf.mxu0 }
 0x8f4   : > { %v1919_v24 = vadd.f32 %v3520_v22, %v1918_v23 }
 0x8f5   : > { %v3788_v25 = vpop.f32.mrf.mxu0 }
 0x8f6   : > { %v1922_v26 = vmul.f32 %v1919_v24, %v1919_v24 }
 0x8f8   : > { %v1923_v27 = vmul.f32 %v1922_v26, %v1919_v24 }
 0x8fa   : > { %v1924_v28 = vmul.f32 0.044715, %v1923_v27 }
 0x8fc   : > { %v1925_v29 = vadd.f32 %v1924_v28, %v1919_v24 }
 0x8fe   : > { %v1926_v30 = vmul.f32 0.7978846, %v1925_v29 }
 0x900   : > { %4003 = vtanh.f32 %v1926_v30 }
 0x90d   : > { %v4004_v31 = vpop.eup %4003 }
 0x90e   : > { %v1928_v32 = vadd.f32 1.0, %v4004_v31 }
 0x910   : > { %v1929_v35 = vmul.f32 0.5, %v1928_v32 }
 0x912   : > { %v1930_v36 = vmul.f32 %v1929_v35, %v1919_v24 }
 0x914   : > { %3822 = vmatmul.mubr.f32.vlgmr.msra.gmra.mxu1 %v1930_v36 }
 0x915   : > { %3862 = vmatprep.mubr.msk.f32.mxu1 %vm4054_vm1, %v4053_v12  ;;  %3861 = vmatpush3.xpose.msk.msra.mxu1 %vm1004_vm3, %v3560_v60 }
 0x916   : > { %3870 = vmatprep.subr.mxu1 %v4053_v12 }
 0x9d4   : > { %v2003_v38 = vpop.f32.mrf.mxu1 }
 0x9d5   : > { %v2004_v39 = vadd.f32 %v3522_v37, %v2003_v38 }
 0x9d6   : > { %v3823_v40 = vpop.f32.mrf.mxu1 }
 0x9d7   : > { %v4488_v41 = vadd.f32 %v2004_v39, %v4384_v49  ;;  %v3527_v49 = vld [vmem:[%s4808_s7 + $0x30] sm:$0xff] }
 0x9d8   : > { %3827 = vmatpush3.msra.mxu0 %v3527_v49 }
 0x9d9   : > { %v2062_v42 = vsel %vm891_vm0, %v4488_v41, 0.0  ;;  %3828 = vmatprep.subr.mxu0 %v4053_v12 }
 0x9da   : > { %2063 = vadd.xlane.f32.xlu0 %v2062_v42  ;;  %3829 = vmatpush3.msra.mxu0 %v3526_v50 }
 0x9db   : > { %3830 = vmatprep.subr.mxu0 %v4053_v12 }
 0x9dc   : > { %3831 = vmatpush3.msra.mxu0 %v3525_v51 }
 0x9dd   : > { %3835 = vmatprep.subr.mxu0 %v4053_v12 }
 0xa63   : > { %v2064_v43 = vpop.xlane.xlu0 %2063 }
 0xa64   : > { %v2065_v44 = vmul.f32 0.03125, %v2064_v43  ;;  %v3562_v43 = vld [vmem:[%s4309_s28 + $0xc] sm:$0x7] }
 0xa66   : > { %v2066_v45 = vsub.f32 %v4488_v41, %v2065_v44 }
 0xa68   : > { %v2067_v46 = vmul.f32 %v2066_v45, %v2066_v45 }
 0xa6a   : > { %v2068_v47 = vsel %vm891_vm0, %v2067_v46, 0.0 }
 0xa6b   : > { %2069 = vadd.xlane.f32.xlu0 %v2068_v47 }
 0xaf4   : > { %v2070_v52 = vpop.xlane.xlu0 %2069 }
 0xaf5   : > { %v2071_v53 = vmul.f32 0.03125, %v2070_v52 }
 0xaf7   : > { %v2072_v54 = vadd.f32 1e-05, %v2071_v53 }
 0xaf9   : > { %4005 = vrsqrt.f32 %v2072_v54  ;;  %v3531_v54 = vld [vmem:[%s4810_s9 + $0x28] sm:$0xff] }
 0xb06   : > { %v4006_v55 = vpop.eup %4005 }
 0xb07   : > { %v2074_v4 = vmul.f32 %v4006_v55, %v2066_v45 }
 0xb09   : > { %v2081_v58 = vmul.f32 %v3563_v56, %v2074_v4 }
 0xb0b   : > { %v2088_v59 = vadd.f32 %v3564_v57, %v2081_v58  ;;  %v3530_v57 = vld [vmem:[%s4810_s9 + $0x20] sm:$0xff] }
 0xb0d   : > { %3833 = vmatmul.mubr.msk.f32.vlgmr.msra.gmra.mxu0 %vm926_vm2, %v2088_v59 }
 0xb0e   : > { %3837 = vmatprep.mubr.msk.f32.mxu0 %vm4054_vm1, %v4053_v12 }
 0xbcd   : > { %v2164_v62 = vpop.f32.mrf.mxu0 }
 0xbce   : > { %v4525_v63 = vadd.f32 %v3565_v61, %v2164_v62  ;;  %v3533_v61 = vld [vmem:[%s4810_s9 + $0x38] sm:$0xff]  ;;  %v3532_v62 = vld [vmem:[%s4810_s9 + $0x30] sm:$0xff] }
 0xbcf   : > { %v3834_v0 = vpop.f32.mrf.mxu0 }
 0xbd0   : > { %2170 = vrot.lane.b32.xlu1 %v4525_v63, %s4055_s22  ;;  %v2168_v1 = vmul.f32 0.25, %v4525_v63  ;;  %s4845_s22 = smov 48  }
 0xbd4   : > { %2498 = vrot.lane.b32.xlu1 %v4525_v63, %s4057_s29 }
 0xbd8   : > { %2496 = vrot.lane.b32.xlu1 %v2168_v1, %s4058_s30 }
 0xc42   : > { %v2171_v2 = vpop.permute.xlu1 %2170 }
 0xc43   : > { %3836 = vmatpush3.xpose.msk.msra.mxu0 %vm1004_vm3, %v2171_v2 }
 0xc44   : > { %3840 = vmatprep.subr.mxu0 %v4053_v12 }
 0xc46   : > { %v2499_v5 = vpop.permute.xlu1 %2498  ;;  %3838 = vmatmul.mubr.msk.f32.vlgmr.msra.gmra.mxu0 %vm1004_vm3, %v2168_v1 }
 0xc47   : > { %3841 = vmatpush3.xpose.msk.msra.mxu0 %vm1004_vm3, %v3559_v3  ;;  %3842 = vmatprep.mubr.msk.f32.mxu0 %vm4054_vm1, %v4053_v12 }
 0xc48   : > { %3845 = vmatprep.subr.mxu0 %v4053_v12 }
 0xc4a   : > { %v2497_v6 = vpop.permute.xlu1 %2496  ;;  %3843 = vmatmul.mubr.msk.f32.vlgmr.msra.gmra.mxu0 %vm1004_vm3, %v2168_v1 }
 0xc4b   : > { %3863 = vmatmul.mubr.msk.f32.vlgmr.msra.gmra.mxu1 %vm1004_vm3, %v2497_v6  ;;  %3847 = vmatprep.mubr.msk.f32.mxu0 %vm4054_vm1, %v4053_v12 }
 0xc4c   : > { %3872 = vmatprep.mubr.msk.f32.mxu1 %vm4054_vm1, %v4053_v12  ;;  %3846 = vmatpush3.msk.msra.mxu0 %vm1180_vm7, %v3561_v17 }
 0xc4d   : > { %3850 = vmatprep.subr.mxu0 %v4053_v12 }
 0xd06   : > { %v2243_v7 = vpop.f32.mrf.mxu0 }
 0xd07   : > { %v2247_v8 = vsel %vm850_vm4, %v2243_v7, -1e+30 }
 0xd08   : > { %v3839_v9 = vpop.f32.mrf.mxu0  ;;  %v2321_v10 = vsel %vm1154_vm5, %v2247_v8, -inf }
 0xd09   : > { %2322 = vmax.xlane.f32.xlu0 %v2321_v10 }
 0xd0a   : > { %v2317_v11 = vpop.f32.mrf.mxu0 }
 0xd0b   : > { %v2644_v13 = vpop.f32.mrf.mxu1  ;;  %v2324_v14 = vsel %vm1158_vm6, %v2317_v11, -inf }
 0xd0c   : > { %v3844_v15 = vpop.f32.mrf.mxu0  ;;  %v2651_v18 = vsel %vm1158_vm6, %v2644_v13, -inf }
 0xd0d   : > { %2325 = vmax.xlane.f32.xlu0 %v2324_v14  ;;  %v3864_v16 = vpop.f32.mrf.mxu1  ;;  %v3585_v15 = vld [vmem:[%s4811_s10 + $0x1] ss:$0 sm:$0xff] }
 0xd23   : > { %2417 = vrot.lane.b32.xlu0 %v4525_v63, %s4056_s2  ;;  %s4848_s2 = sld [smem:[#allocation10_spill]] }
 0xd29   : > { %s838_s28 = scalar_lea.vmem %s4848_s2, %s4227_s18 }
 0xd42   : > { %2652 = vmax.xlane.f32.xlu0 %v2651_v18 }
 0xd92   : > { %v2323_v19 = vpop.xlane.xlu0 %2322 }
 0xd96   : > { %v2326_v20 = vpop.xlane.xlu0 %2325 }
 0xd97   : > { %v2327_v21 = vmax.f32 %v2323_v19, %v2326_v20 }
 0xd99   : > { %v2328_v22 = vsub.f32 %v2247_v8, %v2327_v21  ;;  %v2331_v23 = vsub.f32 %v2317_v11, %v2327_v21 }
 0xd9a   : > { %v2418_v29 = vpop.permute.xlu0 %2417 }
 0xd9b   : > { %v2329_v24 = vmul.f32 1.442695, %v2328_v22  ;;  %v2332_v25 = vmul.f32 1.442695, %v2331_v23 }
 0xd9d   : > { %4007 = vpow2.f32 %v2329_v24 }
 0xd9e   : > { %4009 = vpow2.f32 %v2332_v25  ;;  %v3540_v25 = vld [vmem:[%s4814_s13 + $0x38] sm:$0xff] }
 0xdaa   : > { %v4008_v26 = vpop.eup %4007 }
 0xdab   : > { %v4010_v27 = vpop.eup %4009  ;;  %v2334_v28 = vsel %vm1154_vm5, %v4008_v26, 0.0 }
 0xdac   : > { %3848 = vmatmul.mubr.msk.f32.vlgmr.msra.gmra.mxu0 %vm1176_vm8, %v4010_v27  ;;  %2335 = vadd.xlane.f32.xlu0 %v2334_v28  ;;  %v2337_v30 = vsel %vm1158_vm6, %v4010_v27, 0.0  ;;  %v3537_v27 = vld [vmem:[%s4814_s13 + $0x20] sm:$0xff] }
 0xdad   : > { %3851 = vmatpush3.msk.msra.mxu0 %vm1260_vm9, %v2418_v29  ;;  %3852 = vmatprep.mubr.msk.f32.mxu0 %vm4054_vm1, %v4053_v12 }
 0xdae   : > { %3855 = vmatprep.subr.mxu0 %v4053_v12 }
 0xdb0   : > { %3853 = vmatmul.mubr.msk.f32.vlgmr.msra.gmra.mxu0 %vm1256_vm10, %v4008_v26  ;;  %2338 = vadd.xlane.f32.xlu0 %v2337_v30  ;;  %v3538_v26 = vld [vmem:[%s4814_s13 + $0x28] sm:$0xff] }
 0xdb1   : > { %3856 = vmatpush3.xpose.msk.msra.mxu0 %vm1004_vm3, %v2499_v5  ;;  %3857 = vmatprep.mubr.msk.f32.mxu0 %vm4054_vm1, %v4053_v12 }
 0xdb2   : > { %3865 = vmatprep.subr.mxu0 %v4053_v12 }
 0xdb4   : > { %3858 = vmatmul.mubr.msk.f32.vlgmr.msra.gmra.mxu0 %vm1004_vm3, %v2497_v6 }
 0xdb5   : > { %3867 = vmatprep.mubr.msk.f32.mxu0 %vm4054_vm1, %v4053_v12  ;;  %3866 = vmatpush3.msk.msra.mxu0 %vm1180_vm7, %v3562_v43  ;;  %v3554_v43 = vld [vmem:[%s4816_s15 + $0xe0] sm:$0xff] }
 0xdb6   : > { %3875 = vmatprep.subr.mxu0 %v4053_v12 }
 0xdcb   : > { %v2653_v44 = vpop.xlane.xlu0 %2652 }
 0xe35   : > { %v2336_v45 = vpop.xlane.xlu0 %2335 }
 0xe39   : > { %v2339_v48 = vpop.xlane.xlu0 %2338 }
 0xe3a   : > { %v2340_v51 = vadd.f32 %v2339_v48, %v2336_v45  ;;  %v3552_v45 = vld [vmem:[%s4816_s15 + $0xd0] sm:$0xff]  ;;  %v3549_v48 = vld [vmem:[%s4816_s15 + $0xb8] sm:$0xff] }
 0xe6c   : > { %v2413_v31 = vpop.f32.mrf.mxu0 }
 0xe6e   : > { %v3849_v32 = vpop.f32.mrf.mxu0 }
 0xe6f   : > { %v3586_v32 = vld [vmem:[%s4812_s11 + $0x1] ss:$0 sm:$0xff] }
 0xe70   : > { %v2490_v35 = vpop.f32.mrf.mxu0 }
 0xe71   : > { %v2491_v36 = vadd.f32 %v2490_v35, %v2413_v31 }
 0xe72   : > { %v3854_v37 = vpop.f32.mrf.mxu0 }
 0xe74   : > { %v2570_v38 = vpop.f32.mrf.mxu0 }
 0xe75   : > { %v2574_v39 = vsel %vm850_vm4, %v2570_v38, -1e+30 }
 0xe76   : > { %v3859_v40 = vpop.f32.mrf.mxu0  ;;  %v2648_v42 = vsel %vm1154_vm5, %v2574_v39, -inf }
 0xe77   : > { %2649 = vmax.xlane.f32.xlu1 %v2648_v42  ;;  %v3556_v40 = vld [vmem:[%s4816_s15 + $0xf0] sm:$0xff]  ;;  %v3555_v42 = vld [vmem:[%s4816_s15 + $0xe8] sm:$0xff] }
 0xe88   : > { %2744 = vrot.lane.b32.xlu1 %v4525_v63, %s4845_s22 }
 0xf00   : > { %v2650_v46 = vpop.xlane.xlu1 %2649 }
 0xf01   : > { %v2654_v47 = vmax.f32 %v2650_v46, %v2653_v44  ;;  %v3553_v44 = vld [vmem:[%s4816_s15 + $0xd8] sm:$0xff]  ;;  %v3551_v46 = vld [vmem:[%s4816_s15 + $0xc8] sm:$0xff] }
 0xf03   : > { %v2655_v49 = vsub.f32 %v2574_v39, %v2654_v47  ;;  %v2658_v33 = vsub.f32 %v2644_v13, %v2654_v47  ;;  %v3557_v39 = vld [vmem:[%s4816_s15 + $0xf8] sm:$0xff]  ;;  %v3550_v47 = vld [vmem:[%s4816_s15 + $0xc0] sm:$0xff] }
 0xf04   : > { %v2745_v50 = vpop.permute.xlu1 %2744 }
 0xf05   : > { %v2656_v52 = vmul.f32 1.442695, %v2655_v49  ;;  %v2659_v53 = vmul.f32 1.442695, %v2658_v33  ;;  %3871 = vmatpush3.msk.msra.mxu1 %vm1260_vm9, %v2745_v50  ;;  %v3548_v49 = vld [vmem:[%s4816_s15 + $0xb0] sm:$0xff]  ;;  %v3547_v33 = vld [vmem:[%s4816_s15 + $0xa8] sm:$0xff] }
 0xf06   : > { %3882 = vmatprep.subr.mxu1 %v4053_v12  ;;  %v3546_v50 = vld [vmem:[%s4816_s15 + $0xa0] sm:$0xff] }
 0xf07   : > { %4011 = vpow2.f32 %v2656_v52  ;;  %v3544_v52 = vld [vmem:[%s4816_s15 + $0x90] sm:$0xff] }
 0xf08   : > { %4013 = vpow2.f32 %v2659_v53  ;;  %v3543_v53 = vld [vmem:[%s4816_s15 + $0x88] sm:$0xff] }
 0xf09   : > { %4015 = vrcp.f32 %v2340_v51  ;;  %v3545_v51 = vld [vmem:[%s4816_s15 + $0x98] sm:$0xff] }
 0xf14   : > { %v4012_v55 = vpop.eup %4011 }
 0xf15   : > { %v4014_v56 = vpop.eup %4013  ;;  %3873 = vmatmul.mubr.msk.f32.vlgmr.msra.gmra.mxu1 %vm1256_vm10, %v4012_v55  ;;  %v2661_v4 = vsel %vm1154_vm5, %v4012_v55, 0.0  ;;  %v3588_v55 = vld [vmem:[%s4815_s14 + $0x1] ss:$0 sm:$0xff] }
 0xf16   : > { %v4016_v58 = vpop.eup %4015  ;;  %3868 = vmatmul.mubr.msk.f32.vlgmr.msra.gmra.mxu0 %vm1176_vm8, %v4014_v56  ;;  %3883 = vmatpush3.msra.mxu1 %v3531_v54  ;;  %v2664_v60 = vsel %vm1158_vm6, %v4014_v56, 0.0  ;;  %v3542_v54 = vld [vmem:[%s4816_s15 + $0x80] sm:$0xff] }
 0xf17   : > { %v2495_v59 = vmul.f32 %v4016_v58, %v2491_v36  ;;  %2662 = vadd.xlane.f32.xlu0 %v2661_v4  ;;  %3884 = vmatprep.subr.mxu1 %v4053_v12  ;;  %v3587_v36 = vld [vmem:[%s4813_s12 + $0x1] ss:$0 sm:$0xff] }
 0xf18   : > { %3885 = vmatpush3.msra.mxu1 %v3530_v57  ;;  %3886 = vmatprep.mubr.msk.f32.mxu1 %vm4054_vm1, %v4053_v12 }
 0xf19   : > { %3887 = vmatmul.mubr.msk.f32.vlgmr.msra.gmra.mxu1 %vm1004_vm3, %v2495_v59  ;;  %3879 = vmatprep.mubr.msk.f32.mxu0 %vm4054_vm1, %v4053_v12 }
 0xf1a   : > { %3900 = vmatprep.subr.mxu1 %v4053_v12  ;;  %3932 = vmatprep.mubr.msk.f32.mxu1 %vm4054_vm1, %v4053_v12 }
 0xf1b   : > { %2665 = vadd.xlane.f32.xlu0 %v2664_v60  ;;  %3876 = vmatpush3.msra.mxu0 %v3533_v61 }
 0xf1c   : > { %3877 = vmatprep.subr.mxu0 %v4053_v12  ;;  %3901 = vmatpush3.msra.mxu1 %v3557_v39 }
 0xf1d   : > { %3878 = vmatpush3.msra.mxu0 %v3532_v62  ;;  %3902 = vmatprep.subr.mxu1 %v4053_v12 }
 0xf1e   : > { %3889 = vmatprep.subr.mxu0 %v4053_v12  ;;  %3903 = vmatpush3.msra.mxu1 %v3556_v40 }
 0xf1f   : > { %3904 = vmatprep.subr.mxu1 %v4053_v12 }
 0xf20   : > { %3905 = vmatpush3.msra.mxu1 %v3555_v42 }
 0xf21   : > { %3906 = vmatprep.subr.mxu1 %v4053_v12 }
 0xf22   : > { %3907 = vmatpush3.msra.mxu1 %v3554_v43 }
 0xf23   : > { %3908 = vmatprep.subr.mxu1 %v4053_v12 }
 0xf24   : > { %3909 = vmatpush3.msra.mxu1 %v3553_v44 }
 0xf25   : > { %3910 = vmatprep.subr.mxu1 %v4053_v12 }
 0xf26   : > { %3911 = vmatpush3.msra.mxu1 %v3552_v45 }
 0xf27   : > { %3912 = vmatprep.subr.mxu1 %v4053_v12 }
 0xf28   : > { %3913 = vmatpush3.msra.mxu1 %v3551_v46 }
 0xf29   : > { %3914 = vmatprep.subr.mxu1 %v4053_v12 }
 0xf2a   : > { %3915 = vmatpush3.msra.mxu1 %v3550_v47  ;;  %v3326_v47 = vld [vmem:[%s838_s28] sm:$0x7f] }
 0xf2b   : > { %3916 = vmatprep.subr.mxu1 %v4053_v12 }
 0xf2c   : > { %3917 = vmatpush3.msra.mxu1 %v3549_v48  ;;  %v3327_v48 = vcvt.s32.f32 %v3326_v47 }
 0xf2d   : > { %3918 = vmatprep.subr.mxu1 %v4053_v12 }
 0xf2e   : > { %3919 = vmatpush3.msra.mxu1 %v3548_v49  ;;  %v3339_v49 = vsel %vm3329_vm13, %v3327_v48, 0.0 }
 0xf2f   : > { %3920 = vmatprep.subr.mxu1 %v4053_v12 }
 0xf30   : > { %3921 = vmatpush3.msra.mxu1 %v3547_v33  ;;  %v3340_v33 = vrot.slane %v3339_v49, 4 }
 0xf31   : > { %3922 = vmatprep.subr.mxu1 %v4053_v12 }
 0xf32   : > { %3923 = vmatpush3.msra.mxu1 %v3546_v50 }
 0xf33   : > { %3924 = vmatprep.subr.mxu1 %v4053_v12 }
 0xf34   : > { %3925 = vmatpush3.msra.mxu1 %v3545_v51 }
 0xf35   : > { %3926 = vmatprep.subr.mxu1 %v4053_v12 }
 0xf36   : > { %3927 = vmatpush3.msra.mxu1 %v3544_v52 }
 0xf37   : > { %3928 = vmatprep.subr.mxu1 %v4053_v12 }
 0xf38   : > { %3929 = vmatpush3.msra.mxu1 %v3543_v53 }
 0xf39   : > { %3930 = vmatprep.subr.mxu1 %v4053_v12 }
 0xf3a   : > { %3931 = vmatpush3.msra.mxu1 %v3542_v54 }
 0xfa0   : > { %v2663_v63 = vpop.xlane.xlu0 %2662 }
 0xfa4   : > { %v2666_v0 = vpop.xlane.xlu0 %2665 }
 0xfa5   : > { %v2667_v1 = vadd.f32 %v2666_v0, %v2663_v63 }
 0xfa7   : > { %4017 = vrcp.f32 %v2667_v1 }
 0xfb4   : > { %v4018_v7 = vpop.eup %4017 }
 0xfd5   : > { %v2817_v2 = vpop.f32.mrf.mxu1 }
 0xfd6   : > { %v2740_v3 = vpop.f32.mrf.mxu0 }
 0xfd7   : > { %v2818_v5 = vadd.f32 %v2817_v2, %v2740_v3  ;;  %v3874_v6 = vpop.f32.mrf.mxu1  ;;  %v3590_v3 = vld [vmem:[%s4817_s16 + $0x1] ss:$0 sm:$0xff] }
 0xfd8   : > { %v3869_v8 = vpop.f32.mrf.mxu0 }
 0xfd9   : > { %v2822_v9 = vmul.f32 %v4018_v7, %v2818_v5  ;;  %v2965_v10 = vpop.f32.mrf.mxu1 }
 0xfdb   : > { %3880 = vmatmul.mubr.msk.f32.vlgmr.msra.gmra.mxu0 %vm1004_vm3, %v2822_v9  ;;  %v3888_v11 = vpop.f32.mrf.mxu1 }
 0xfdc   : > { %3897 = vmatprep.mubr.msk.f32.mxu0 %vm4054_vm1, %v4053_v12  ;;  %3890 = vmatpush3.msra.mxu0 %v3540_v25  ;;  %v3204_v11 = vld [vmem:[%s4820_s19 + $0x30] sm:$0xff] }
 0xfdd   : > { %3891 = vmatprep.subr.mxu0 %v4053_v12 }
0x109b   : > { %v2892_v13 = vpop.f32.mrf.mxu0 }
0x109c   : > { %v2966_v14 = vadd.f32 %v2965_v10, %v2892_v13  ;;  %v3205_v10 = vld [vmem:[%s4820_s19 + $0x38] sm:$0xff] }
0x109d   : > { %v3881_v16 = vpop.f32.mrf.mxu0 }
0x109e   : > { %v2969_v17 = vadd.f32 %v2966_v14, %v4488_v41  ;;  %v3539_v41 = vld [vmem:[%s4814_s13 + $0x30] sm:$0xff] }
0x109f   : > { %3892 = vmatpush3.msra.mxu0 %v3539_v41 }
0x10a0   : > { %v4618_v18 = vadd.f32 %v3585_v15, %v2969_v17  ;;  %3893 = vmatprep.subr.mxu0 %v4053_v12 }
0x10a1   : > { %3894 = vmatpush3.msra.mxu0 %v3538_v26 }
0x10a2   : > { %v2977_v19 = vsel %vm891_vm0, %v4618_v18, 0.0  ;;  %3895 = vmatprep.subr.mxu0 %v4053_v12 }
0x10a3   : > { %2978 = vadd.xlane.f32.xlu1 %v2977_v19  ;;  %3896 = vmatpush3.msra.mxu0 %v3537_v27  ;;  %v3202_v19 = vld [vmem:[%s4820_s19 + $0x20] sm:$0xff] }
0x10a4   : > { %3935 = vmatprep.subr.mxu0 %v4053_v12  ;;  %v3591_v27 = vld [vmem:[%s4818_s17] ss:$0 sm:$0xff] }
0x112c   : > { %v2979_v20 = vpop.xlane.xlu1 %2978 }
0x112d   : > { %v2980_v21 = vmul.f32 0.03125, %v2979_v20  ;;  %v3201_v20 = vld [vmem:[%s4820_s19 + $0x18] sm:$0xff] }
0x112f   : > { %v2981_v22 = vsub.f32 %v4618_v18, %v2980_v21  ;;  %v3200_v21 = vld [vmem:[%s4820_s19 + $0x10] sm:$0xff] }
0x1131   : > { %v2982_v23 = vmul.f32 %v2981_v22, %v2981_v22 }
0x1133   : > { %v2983_v24 = vsel %vm891_vm0, %v2982_v23, 0.0  ;;  %v3198_v23 = vld [vmem:[%s4820_s19] sm:$0xff] }
0x1134   : > { %2984 = vadd.xlane.f32.xlu0 %v2983_v24 }
0x11bd   : > { %v2985_v28 = vpop.xlane.xlu0 %2984 }
0x11be   : > { %v2986_v29 = vmul.f32 0.03125, %v2985_v28 }
0x11c0   : > { %v2987_v30 = vadd.f32 1e-05, %v2986_v29 }
0x11c2   : > { %4019 = vrsqrt.f32 %v2987_v30 }
0x11cf   : > { %v4020_v31 = vpop.eup %4019 }
0x11d0   : > { %v2989_v35 = vmul.f32 %v4020_v31, %v2981_v22  ;;  %v3199_v22 = vld [vmem:[%s4820_s19 + $0x8] sm:$0xff]  ;;  %v4060_v31 = vmov 0  }
0x11d1   : > { %3986 = vset.pattern.permute.xlu0 %v4060_v31 }
0x11d2   : > { %v2996_v37 = vmul.f32 %v3586_v32, %v2989_v35 }
0x11d4   : > { %v3003_v38 = vadd.f32 %v3587_v36, %v2996_v37  ;;  %v3316_v37 = vld [vmem:[%s834_s4] sm:$0x7f] }
0x11d6   : > { %3898 = vmatmul.mubr.msk.f32.vlgmr.msra.gmra.mxu0 %vm926_vm2, %v3003_v38 }
0x11d7   : > { %3951 = vmatprep.mubr.msk.f32.mxu0 %vm4054_vm1, %v4053_v12  ;;  %3936 = vmatpush3.xpose.msk.msra.mxu0 %vm926_vm2, %v3205_v10 }
0x11d8   : > { %3937 = vmatprep.subr.mxu0 %v4053_v12 }
0x11db   : > { %3938 = vmatpush3.xpose.msk.msra.mxu0 %vm926_vm2, %v3204_v11 }
0x11dc   : > { %3939 = vmatprep.subr.mxu0 %v4053_v12 }
0x1296   : > { %v3079_v56 = vpop.f32.mrf.mxu0 }
0x1297   : > { %v3080_v4 = vadd.f32 %v3588_v55, %v3079_v56 }
0x1298   : > { %v3899_v57 = vpop.f32.mrf.mxu0 }
0x1299   : > { %v3083_v58 = vmul.f32 %v3080_v4, %v3080_v4 }
0x129b   : > { %v3084_v59 = vmul.f32 %v3083_v58, %v3080_v4 }
0x129d   : > { %v3085_v60 = vmul.f32 0.044715, %v3084_v59 }
0x129f   : > { %v3086_v61 = vadd.f32 %v3085_v60, %v3080_v4 }
0x12a1   : > { %v3087_v62 = vmul.f32 0.7978846, %v3086_v61 }
0x12a3   : > { %4021 = vtanh.f32 %v3087_v62 }
0x12b0   : > { %v4022_v63 = vpop.eup %4021 }
0x12b1   : > { %v3089_v0 = vadd.f32 1.0, %v4022_v63 }
0x12b3   : > { %v3090_v1 = vmul.f32 0.5, %v3089_v0 }
0x12b5   : > { %v3091_v2 = vmul.f32 %v3090_v1, %v3080_v4 }
0x12b7   : > { %3933 = vmatmul.mubr.f32.vlgmr.msra.gmra.mxu1 %v3091_v2 }
0x1377   : > { %v3164_v5 = vpop.f32.mrf.mxu1 }
0x1378   : > { %v3165_v6 = vadd.f32 %v3590_v3, %v3164_v5 }
0x1379   : > { %v3934_v7 = vpop.f32.mrf.mxu1 }
0x137a   : > { %v3168_v8 = vadd.f32 %v3165_v6, %v4618_v18  ;;  %v3203_v18 = vld [vmem:[%s4820_s19 + $0x28] sm:$0xff] }
0x137b   : > { %3940 = vmatpush3.xpose.msk.msra.mxu0 %vm926_vm2, %v3203_v18 }
0x137c   : > { %v3171_v9 = vsel %vm891_vm0, %v3168_v8, 0.0  ;;  %3941 = vmatprep.subr.mxu0 %v4053_v12 }
0x137d   : > { %3172 = vadd.xlane.f32.xlu0 %v3171_v9 }
0x137f   : > { %3942 = vmatpush3.xpose.msk.msra.mxu0 %vm926_vm2, %v3202_v19 }
0x1380   : > { %3943 = vmatprep.subr.mxu0 %v4053_v12 }
0x1383   : > { %3944 = vmatpush3.xpose.msk.msra.mxu0 %vm926_vm2, %v3201_v20 }
0x1384   : > { %3945 = vmatprep.subr.mxu0 %v4053_v12 }
0x1387   : > { %3946 = vmatpush3.xpose.msk.msra.mxu0 %vm926_vm2, %v3200_v21 }
0x1388   : > { %3947 = vmatprep.subr.mxu0 %v4053_v12 }
0x138b   : > { %3948 = vmatpush3.xpose.msk.msra.mxu0 %vm926_vm2, %v3199_v22 }
0x138c   : > { %3949 = vmatprep.subr.mxu0 %v4053_v12  ;;  %v3592_v12 = vld [vmem:[%s4846_s26] ss:$0 sm:$0xff]  ;;  %s4850_s26 = sld [smem:[#allocation13_spill]] }
0x138f   : > { %3950 = vmatpush3.xpose.msk.msra.mxu0 %vm926_vm2, %v3198_v23 }
0x1392   : > { %s841_s23 = scalar_lea.vmem %s4850_s26, %s4856_s27 }
0x1406   : > { %v3173_v13 = vpop.xlane.xlu0 %3172 }
0x1407   : > { %v3174_v14 = vmul.f32 0.03125, %v3173_v13 }
0x1409   : > { %v3175_v15 = vsub.f32 %v3168_v8, %v3174_v14 }
0x140b   : > { %v3176_v16 = vmul.f32 %v3175_v15, %v3175_v15 }
0x140d   : > { %v3177_v17 = vsel %vm891_vm0, %v3176_v16, 0.0 }
0x140e   : > { %3178 = vadd.xlane.f32.xlu0 %v3177_v17 }
0x1497   : > { %v3179_v24 = vpop.xlane.xlu0 %3178 }
0x1498   : > { %v3180_v25 = vmul.f32 0.03125, %v3179_v24 }
0x149a   : > { %v3181_v41 = vadd.f32 1e-05, %v3180_v25 }
0x149c   : > { %4023 = vrsqrt.f32 %v3181_v41 }
0x14a9   : > { %v4024_v26 = vpop.eup %4023 }
0x14aa   : > { %v3183_v28 = vmul.f32 %v4024_v26, %v3175_v15 }
0x14ac   : > { %v3190_v29 = vmul.f32 %v3591_v27, %v3183_v28 }
0x14ae   : > { %v3197_v30 = vadd.f32 %v3592_v12, %v3190_v29 }
0x14b0   : > { %3952 = vmatmul.mubr.msk.f32.vlgmr.msra.gmra.mxu0 %vm926_vm2, %v3197_v30 }
0x1570   : > { %v3299_v32 = vpop.f32.mrf.mxu0 }
0x1571   : > { %v3304_v35 = vsel %vm3303_vm11, %v3299_v32, -inf }
0x1572   : > { %3305 = vmax.xlane.f32.xlu0 %v3304_v35  ;;  %v3953_v36 = vpop.f32.mrf.mxu0 }
0x1588   : > { %3318 = vperm.xlu0 %3986, %v3316_v37  }
0x15fb   : > { %v3306_v38 = vpop.xlane.xlu0 %3305 }
0x15fc   : > { %v3307_v39 = vsub.f32 %v3299_v32, %v3306_v38 }
0x15fe   : > { %v3308_v40 = vmul.f32 1.442695, %v3307_v39 }
0x1600   : > { %4025 = vpow2.f32 %v3308_v40 }
0x1603   : > { %v3319_v42 = vpop.permute.xlu0 %3318 }
0x1604   : > { %vm3320_vm12 = vcmp.eq.s32.totalorder %v4297_v34, %v3319_v42  ;;  %v3341_v34 = vadd.f32 %v3340_v33, %v3339_v49 }
0x1605   : > { %v3321_v45 = vsel %vm3320_vm12, %v3299_v32, 0.0 }
0x1606   : > { %v3322_v46 = vsel %vm3303_vm11, %v3321_v45, 0.0  ;;  %v3342_v50 = vrot.slane %v3341_v34, 2 }
0x1608   : > { %v3343_v51 = vadd.f32 %v3342_v50, %v3341_v34 }
0x160a   : > { %v3344_v52 = vrot.slane %v3343_v51, 1 }
0x160c   : > { %v3345_v53 = vadd.f32 %v3344_v52, %v3343_v51 }
0x160d   : > { %v4026_v43 = vpop.eup %4025 }
0x160e   : > { %v3310_v44 = vsel %vm3303_vm11, %v4026_v43, 0.0  ;;  %3346 = vst.msk [vmem:[%s844_s3] sm:$0x1] %vm3337_vm14, %v3345_v53 }
0x160f   : > { %3311 = vadd.xlane.f32.xlu1 %v3310_v44 }
0x1613   : > { %3323 = vadd.xlane.f32.xlu1 %v3322_v46 }
0x1698   : > { %v3312_v54 = vpop.xlane.xlu1 %3311 }
0x1699   : > { %4027 = vlog2.f32 %v3312_v54 }
0x169c   : > { %v3324_v57 = vpop.xlane.xlu1 %3323 }
0x16a6   : > { %v4028_v55 = vpop.eup %4027 }
0x16a7   : > { %v3314_v56 = vmul.f32 0.6931472, %v4028_v55 }
0x16a9   : > { %v3315_v4 = vadd.f32 %v3314_v56, %v3306_v38 }
0x16ab   : > { %v3325_v58 = vsub.f32 %v3324_v57, %v3315_v4 }
0x16ad   : > { %v3328_v59 = vmul.f32 %v3327_v48, %v3325_v58 }
0x16af   : > { %v3330_v60 = vsel %vm3329_vm13, %v3328_v59, 0.0 }
0x16b0   : > { %v3331_v61 = vrot.slane %v3330_v60, 4 }
0x16b2   : > { %v3332_v62 = vadd.f32 %v3331_v61, %v3330_v60 }
0x16b4   : > { %v3333_v63 = vrot.slane %v3332_v62, 2 }
0x16b6   : > { %v3334_v0 = vadd.f32 %v3333_v63, %v3332_v62 }
0x16b8   : > { %v3335_v1 = vrot.slane %v3334_v0, 1 }
0x16ba   : > { %v3336_v2 = vadd.f32 %v3335_v1, %v3334_v0 }
0x16bc   : > { %3338 = vst.msk [vmem:[%s841_s23] sm:$0x1] %vm3337_vm14, %v3336_v2 }
0x16bd PF: > { %s4851_s26 = sld [smem:[#allocation4_spill]]  ;;  %s4853_s2 = smov %s4047_s25 }
0x16be   : > { %s4852_s1 = sld [smem:[#allocation5_spill]] }
0x16c3   : > { %p29_p9 = scmp.ge.s32.totalorder %s4851_s26, 4  }
0x16c4   : > { %s4854_s25 = smov %s4852_s1 }
0x16c5   :  { %31 = sbr.rel (!%p29_p9) target bundleno = 12 (0xc), region = 260 }

</bundles_post_ra>
